<compile_context>
chip_gen: v7x
topology: tpu7x:2x2x1
jax: 0.10.0
libtpu: 0.0.40
codegen_flags: <defaults>
</compile_context>

<pallas_src>
import numpy as np
import jax
import jax.numpy as jnp
from jax import lax
from jax.experimental import pallas as pl
from jax.experimental.pallas import tpu as pltpu

# ---- module-consistent hyperparameters ------------------------------------------
FEAT_DIM = 32      # feat_dim
EBM_HDIM = 32      # ebm_hdim
EMB_DIM = 16       # emb_dim
EMB_HDIM = 32      # emb_hdim
NUM_CLS = 1        # num_cls (kernel supports any num_cls <= WIDTH)
NUM_BLOCKS = 16    # num_blocks (module default)
MAX_T = 6          # max_T
MAX_T_PAD = 8      # pe table padded to 8 rows (sublane tile)

BATCH = 256        # demo batch (review: >= 128 to amortize launch/DMA cost)
BM = 128           # batch tile per grid step
HALF = BM // 2     # two independent chains per tile for MXU ILP

WIDTH = EBM_HDIM + EMB_HDIM   # 64 : fused hidden width [ze-hidden | te-hidden]
assert FEAT_DIM % 8 == 0 and WIDTH % 8 == 0 and BM % 16 == 0
assert NUM_CLS <= WIDTH

# ---- single packed-slab row offsets (all multiples of 8) -------------------------
W1Z = 0                              # (FEAT_DIM, WIDTH) : [ze_w1 | 0]
PW = W1Z + FEAT_DIM                  # (8, WIDTH)        : [0 | pe_pad @ te_w1]
B1 = PW + MAX_T_PAD                  # (8, WIDTH)        : row0 = [ze_b1 | te_b1]
W2 = B1 + 8                          # (WIDTH, WIDTH)    : blockdiag(ze_w2, te_w2)
B2 = W2 + WIDTH                      # (8, WIDTH)        : row0 = [ze_b2 | te_b2]
CPW = B2 + 8                         # (WIDTH, WIDTH)    : [cp_w | 0]
CPB = CPW + WIDTH                    # (8, WIDTH)        : row0 = [cp_b | 0]
LAYW = CPB + 8                       # NUM_BLOCKS x (WIDTH, WIDTH) : lay_w in top-left
LAYB = LAYW + WIDTH * NUM_BLOCKS     # NUM_BLOCKS x (8, WIDTH)     : row0 = lay_b
OUTW = LAYB + 8 * NUM_BLOCKS         # (WIDTH, WIDTH)    : out_w in cols [:num_cls]
OUTB = OUTW + WIDTH                  # (8, WIDTH)        : row0 = out_b
P_ROWS = OUTB + 8                    # total rows (1416 for num_blocks=16)


def _leaky(x):
    # nn.LeakyReLU(0.2)
    return jnp.where(x > 0, x, 0.2 * x)


# ---- Pallas kernel ---------------------------------------------------------------
def lebm_forward_kernel(z_ref, t_ref, p_ref, o_ref):
    # The working width is WIDTH=64 lanes; the residual path keeps its upper 32
    # lanes identically zero (zero-padded weights/biases), so no lane slicing is
    # needed until the final num_cls slice.
    f32 = jnp.float32

    # Two independent half-tile chains -> the LLO scheduler interleaves their
    # strictly-serial dot chains on the MXU.
    for h in range(2):
        r0 = h * HALF
        z = z_ref[r0:r0 + HALF, :]                                   # (HALF, 32)
        tt = t_ref[r0:r0 + HALF, :]                                  # (HALF, 1) int32

        # in-kernel pe[t] "gather": one-hot over diffusion steps, folded with te_w1
        iota = lax.broadcasted_iota(jnp.int32, (HALF, MAX_T_PAD), 1)
        onehot = (iota == tt).astype(f32)                            # (HALF, 8)

        # fused first layers of self.ze / self.te (block structure, independent dots)
        hh = (jnp.dot(z, p_ref[W1Z:W1Z + FEAT_DIM, :], preferred_element_type=f32)
              + jnp.dot(onehot, p_ref[PW:PW + MAX_T_PAD, :], preferred_element_type=f32)
              + p_ref[B1:B1 + 1, :])                                 # (HALF, 64)

        # fused second layers (block-diagonal) -> e == concat([z_emb, t_emb])
        e = jnp.dot(_leaky(hh), p_ref[W2:W2 + WIDTH, :],
                    preferred_element_type=f32) + p_ref[B2:B2 + 1, :]

        # self.concat_proj : LeakyReLU -> Linear
        f = jnp.dot(_leaky(e), p_ref[CPW:CPW + WIDTH, :],
                    preferred_element_type=f32) + p_ref[CPB:CPB + 1, :]

        # residual blocks, statically unrolled: f = (LeakyReLU -> Linear)(f) + f
        for i in range(NUM_BLOCKS):
            w0 = LAYW + WIDTH * i
            b0 = LAYB + 8 * i
            f = (jnp.dot(_leaky(f), p_ref[w0:w0 + WIDTH, :], preferred_element_type=f32)
                 + p_ref[b0:b0 + 1, :] + f)

        # self.out_z : LeakyReLU -> Linear(ebm_hdim, num_cls)
        out = (jnp.dot(_leaky(f), p_ref[OUTW:OUTW + WIDTH, :], preferred_element_type=f32)
               + p_ref[OUTB:OUTB + 1, :])
        o_ref[r0:r0 + HALF, :] = out[:, :NUM_CLS]


# ---- wrapper ----------------------------------------------------------------------
def lebm_forward(z, t, slab, bm=BM):
    m = z.shape[0]
    mp = ((m + bm - 1) // bm) * bm
    if mp != m:                                   # pad batch to a multiple of the tile
        z = jnp.pad(z, ((0, mp - m), (0, 0)))
        t = jnp.pad(t, ((0, mp - m),))
    t2 = t.astype(jnp.int32).reshape(mp, 1)

    out = pl.pallas_call(
        lebm_forward_kernel,
        out_shape=jax.ShapeDtypeStruct((mp, NUM_CLS), jnp.float32),
        grid=(mp // bm,),
        in_specs=[
            pl.BlockSpec((bm, FEAT_DIM), lambda i: (i, 0)),     # z tile
            pl.BlockSpec((bm, 1), lambda i: (i, 0)),            # t tile (int32)
            pl.BlockSpec((P_ROWS, WIDTH), lambda i: (0, 0)),    # param slab, resident
        ],
        out_specs=pl.BlockSpec((bm, NUM_CLS), lambda i: (i, 0)),
        compiler_params=pltpu.CompilerParams(
            dimension_semantics=("parallel",)),                 # v7x: shard over 2 TCs
    )(z, t2, slab)
    return out[:m]


# ---- deterministic parameter construction ------------------------------------------
def _sn(w):
    # PyTorch spectral_norm divides the weight by its largest singular value
    # (power-iteration estimate). Applied here in exact/converged form; it is a
    # no-op for the orthogonal init used by the module.
    return w / jnp.linalg.norm(w, ord=2)


def make_params(seed=0):
    ortho = jax.nn.initializers.orthogonal(scale=1.0)   # _init_weights('orthogonal', 1.0)
    keys = iter(jax.random.split(jax.random.PRNGKey(seed), 8 + NUM_BLOCKS))

    def lin(n_in, n_out):
        w = _sn(ortho(next(keys), (n_in, n_out), jnp.float32))
        b = jnp.zeros((1, n_out), jnp.float32)           # biases initialized to 0
        return w, b

    # positional embedding table (same formula as PositionalEmbedding.__init__)
    pe = np.zeros((MAX_T, EMB_DIM), dtype=np.float32)
    position = np.arange(MAX_T, dtype=np.float64)[:, None]
    div_term = np.exp(np.arange(0, EMB_DIM, 2, dtype=np.float64)
                      * -(np.log(10000.0) / EMB_DIM))
    pe[:, 0::2] = np.sin(position * div_term)
    pe[:, 1::2] = np.cos(position * div_term)

    ze_w1, ze_b1 = lin(FEAT_DIM, EBM_HDIM)
    ze_w2, ze_b2 = lin(EBM_HDIM, EBM_HDIM)
    te_w1, te_b1 = lin(EMB_DIM, EMB_HDIM)
    te_w2, te_b2 = lin(EMB_HDIM, EMB_HDIM)
    cp_w, cp_b = lin(EBM_HDIM + EMB_HDIM, EBM_HDIM)      # cat order is [z_emb, t_emb]
    lay_w = jnp.stack([lin(EBM_HDIM, EBM_HDIM)[0] for _ in range(NUM_BLOCKS)], 0)
    lay_b = jnp.zeros((NUM_BLOCKS, 1, EBM_HDIM), jnp.float32)
    out_w, out_b = lin(EBM_HDIM, NUM_CLS)

    return dict(pe=jnp.asarray(pe),
                ze_w1=ze_w1, ze_b1=ze_b1, ze_w2=ze_w2, ze_b2=ze_b2,
                te_w1=te_w1, te_b1=te_b1, te_w2=te_w2, te_b2=te_b2,
                cp_w=cp_w, cp_b=cp_b, lay_w=lay_w, lay_b=lay_b,
                out_w=out_w, out_b=out_b)


def pack_params(p):
    """Pack everything into ONE batch-independent, 64-lane-wide f32 slab."""
    slab = jnp.zeros((P_ROWS, WIDTH), jnp.float32)

    # fused first layer: z path into cols [0:32], te path (pre-folded with pe) into [32:64]
    slab = slab.at[W1Z:W1Z + FEAT_DIM, :EBM_HDIM].set(p["ze_w1"])
    pe_pad = jnp.zeros((MAX_T_PAD, EMB_DIM), jnp.float32).at[:MAX_T].set(p["pe"])
    slab = slab.at[PW:PW + MAX_T_PAD, EBM_HDIM:WIDTH].set(pe_pad @ p["te_w1"])
    slab = slab.at[B1, :EBM_HDIM].set(p["ze_b1"][0])
    slab = slab.at[B1, EBM_HDIM:WIDTH].set(p["te_b1"][0])

    # fused second layer: block-diagonal
    slab = slab.at[W2:W2 + EBM_HDIM, :EBM_HDIM].set(p["ze_w2"])
    slab = slab.at[W2 + EBM_HDIM:W2 + WIDTH, EBM_HDIM:WIDTH].set(p["te_w2"])
    slab = slab.at[B2, :EBM_HDIM].set(p["ze_b2"][0])
    slab = slab.at[B2, EBM_HDIM:WIDTH].set(p["te_b2"][0])

    # concat_proj
    slab = slab.at[CPW:CPW + WIDTH, :EBM_HDIM].set(p["cp_w"])
    slab = slab.at[CPB, :EBM_HDIM].set(p["cp_b"][0])

    # residual blocks (weights occupy top-left (32,32) of each 64x64 block)
    for i in range(NUM_BLOCKS):
        slab = slab.at[LAYW + WIDTH * i: LAYW + WIDTH * i + EBM_HDIM,
                       :EBM_HDIM].set(p["lay_w"][i])
        slab = slab.at[LAYB + 8 * i, :EBM_HDIM].set(p["lay_b"][i, 0])

    # output head (num_cls columns, rest zero)
    slab = slab.at[OUTW:OUTW + EBM_HDIM, :NUM_CLS].set(p["out_w"])
    slab = slab.at[OUTB, :NUM_CLS].set(p["out_b"][0])
    return slab


# ---- pure-JAX reference (sanity check only, uses the original unpacked params) -----
def ref_forward(z, t, p):
    pe_t = p["pe"][t]
    z_emb = _leaky(z @ p["ze_w1"] + p["ze_b1"]) @ p["ze_w2"] + p["ze_b2"]
    t_emb = _leaky(pe_t @ p["te_w1"] + p["te_b1"]) @ p["te_w2"] + p["te_b2"]
    cat = jnp.concatenate([z_emb, t_emb], axis=-1)
    f = _leaky(cat) @ p["cp_w"] + p["cp_b"]
    for i in range(NUM_BLOCKS):
        f = (_leaky(f) @ p["lay_w"][i] + p["lay_b"][i]) + f
    return _leaky(f) @ p["out_w"] + p["out_b"]


if __name__ == "__main__":
    params = make_params(seed=0)
    slab = pack_params(params)

    kz, kt = jax.random.split(jax.random.PRNGKey(0))
    z = jax.random.normal(kz, (BATCH, FEAT_DIM), dtype=jnp.float32)
    t = jax.random.randint(kt, (BATCH,), 0, MAX_T, dtype=jnp.int32)

    fwd = jax.jit(lebm_forward)
    out = jax.block_until_ready(fwd(z, t, slab))

    ref = ref_forward(z, t, params)
    np.testing.assert_allclose(np.asarray(out), np.asarray(ref), rtol=1e-4, atol=1e-4)
    assert out.shape == (BATCH, NUM_CLS)
    print("KERNEL_OK")
</pallas_src>

<mosaic_0001>
module attributes {stable_mosaic.version = 11 : i64} {
  func.func @lebm_forward_kernel(%arg0: i32, %arg1: memref<128x32xf32, #tpu.memory_space<vmem>>, %arg2: memref<128x1xi32, #tpu.memory_space<vmem>>, %arg3: memref<1416x64xf32, #tpu.memory_space<vmem>>, %arg4: memref<128x1xf32, #tpu.memory_space<vmem>>) attributes {dimension_semantics = [#tpu.dimension_semantics<parallel>], iteration_bounds = array<i64: 2>, scalar_prefetch = 0 : i64, scratch_operands = 0 : i64, tpu.core_type = #tpu.core_type<tc>, window_params = [{transform_indices = @transform_0, window_bounds = array<i64: 128, 32>}, {transform_indices = @transform_1, window_bounds = array<i64: 128, 1>}, {pipeline_mode = #tpu.pipeline_mode<synchronous>, transform_indices = @transform_2, window_bounds = array<i64: 1416, 64>}, {transform_indices = @transform_3, window_bounds = array<i64: 128, 1>}]} {
    %c0 = arith.constant 0 : index
    %c0_0 = arith.constant 0 : index
    %0 = vector.load %arg1[%c0, %c0_0] : memref<128x32xf32, #tpu.memory_space<vmem>>, vector<64x32xf32>
    %c0_1 = arith.constant 0 : index
    %c0_2 = arith.constant 0 : index
    %1 = vector.load %arg2[%c0_1, %c0_2] : memref<128x1xi32, #tpu.memory_space<vmem>>, vector<64x1xi32>
    %2 = tpu.iota {dimensions = array<i32: 1>} : vector<64x8xi32>
    %3 = vector.broadcast %1 : vector<64x1xi32> to vector<64x8xi32>
    %4 = arith.cmpi eq, %2, %3 : vector<64x8xi32>
    %5 = arith.extui %4 : vector<64x8xi1> to vector<64x8xi32>
    %6 = arith.sitofp %5 : vector<64x8xi32> to vector<64x8xf32>
    %c0_3 = arith.constant 0 : index
    %c0_4 = arith.constant 0 : index
    %7 = vector.load %arg3[%c0_3, %c0_4] : memref<1416x64xf32, #tpu.memory_space<vmem>>, vector<32x64xf32>
    %cst = arith.constant dense<0.000000e+00> : vector<64x64xf32>
    %8 = tpu.matmul %0, %7, %cst {dimension_numbers = #tpu.dot_dimension_numbers<[1], [0], [0], [1], [0, 0, 1, 1], [], []>} : vector<64x32xf32>, vector<32x64xf32>, vector<64x64xf32> -> vector<64x64xf32>
    %c32 = arith.constant 32 : index
    %c0_5 = arith.constant 0 : index
    %9 = vector.load %arg3[%c32, %c0_5] : memref<1416x64xf32, #tpu.memory_space<vmem>>, vector<8x64xf32>
    %cst_6 = arith.constant dense<0.000000e+00> : vector<64x64xf32>
    %10 = tpu.matmul %6, %9, %cst_6 {dimension_numbers = #tpu.dot_dimension_numbers<[1], [0], [0], [1], [0, 0, 1, 1], [], []>} : vector<64x8xf32>, vector<8x64xf32>, vector<64x64xf32> -> vector<64x64xf32>
    %11 = arith.addf %8, %10 : vector<64x64xf32>
    %c40 = arith.constant 40 : index
    %c0_7 = arith.constant 0 : index
    %12 = vector.load %arg3[%c40, %c0_7] : memref<1416x64xf32, #tpu.memory_space<vmem>>, vector<1x64xf32>
    %13 = vector.broadcast %12 : vector<1x64xf32> to vector<64x64xf32>
    %14 = arith.addf %11, %13 : vector<64x64xf32>
    %cst_8 = arith.constant 0.000000e+00 : f32
    %15 = vector.broadcast %cst_8 : f32 to vector<64x64xf32>
    %16 = arith.cmpf ogt, %14, %15 : vector<64x64xf32>
    %cst_9 = arith.constant 2.000000e-01 : f32
    %17 = vector.broadcast %cst_9 : f32 to vector<64x64xf32>
    %18 = arith.mulf %17, %14 : vector<64x64xf32>
    %19 = arith.select %16, %14, %18 : vector<64x64xi1>, vector<64x64xf32>
    %c48 = arith.constant 48 : index
    %c0_10 = arith.constant 0 : index
    %20 = vector.load %arg3[%c48, %c0_10] : memref<1416x64xf32, #tpu.memory_space<vmem>>, vector<64x64xf32>
    %cst_11 = arith.constant dense<0.000000e+00> : vector<64x64xf32>
    %21 = tpu.matmul %19, %20, %cst_11 {dimension_numbers = #tpu.dot_dimension_numbers<[1], [0], [0], [1], [0, 0, 1, 1], [], []>} : vector<64x64xf32>, vector<64x64xf32>, vector<64x64xf32> -> vector<64x64xf32>
    %c112 = arith.constant 112 : index
    %c0_12 = arith.constant 0 : index
    %22 = vector.load %arg3[%c112, %c0_12] : memref<1416x64xf32, #tpu.memory_space<vmem>>, vector<1x64xf32>
    %23 = vector.broadcast %22 : vector<1x64xf32> to vector<64x64xf32>
    %24 = arith.addf %21, %23 : vector<64x64xf32>
    %cst_13 = arith.constant 0.000000e+00 : f32
    %25 = vector.broadcast %cst_13 : f32 to vector<64x64xf32>
    %26 = arith.cmpf ogt, %24, %25 : vector<64x64xf32>
    %cst_14 = arith.constant 2.000000e-01 : f32
    %27 = vector.broadcast %cst_14 : f32 to vector<64x64xf32>
    %28 = arith.mulf %27, %24 : vector<64x64xf32>
    %29 = arith.select %26, %24, %28 : vector<64x64xi1>, vector<64x64xf32>
    %c120 = arith.constant 120 : index
    %c0_15 = arith.constant 0 : index
    %30 = vector.load %arg3[%c120, %c0_15] : memref<1416x64xf32, #tpu.memory_space<vmem>>, vector<64x64xf32>
    %cst_16 = arith.constant dense<0.000000e+00> : vector<64x64xf32>
    %31 = tpu.matmul %29, %30, %cst_16 {dimension_numbers = #tpu.dot_dimension_numbers<[1], [0], [0], [1], [0, 0, 1, 1], [], []>} : vector<64x64xf32>, vector<64x64xf32>, vector<64x64xf32> -> vector<64x64xf32>
    %c184 = arith.constant 184 : index
    %c0_17 = arith.constant 0 : index
    %32 = vector.load %arg3[%c184, %c0_17] : memref<1416x64xf32, #tpu.memory_space<vmem>>, vector<1x64xf32>
    %33 = vector.broadcast %32 : vector<1x64xf32> to vector<64x64xf32>
    %34 = arith.addf %31, %33 : vector<64x64xf32>
    %cst_18 = arith.constant 0.000000e+00 : f32
    %35 = vector.broadcast %cst_18 : f32 to vector<64x64xf32>
    %36 = arith.cmpf ogt, %34, %35 : vector<64x64xf32>
    %cst_19 = arith.constant 2.000000e-01 : f32
    %37 = vector.broadcast %cst_19 : f32 to vector<64x64xf32>
    %38 = arith.mulf %37, %34 : vector<64x64xf32>
    %39 = arith.select %36, %34, %38 : vector<64x64xi1>, vector<64x64xf32>
    %c192 = arith.constant 192 : index
    %c0_20 = arith.constant 0 : index
    %40 = vector.load %arg3[%c192, %c0_20] : memref<1416x64xf32, #tpu.memory_space<vmem>>, vector<64x64xf32>
    %cst_21 = arith.constant dense<0.000000e+00> : vector<64x64xf32>
    %41 = tpu.matmul %39, %40, %cst_21 {dimension_numbers = #tpu.dot_dimension_numbers<[1], [0], [0], [1], [0, 0, 1, 1], [], []>} : vector<64x64xf32>, vector<64x64xf32>, vector<64x64xf32> -> vector<64x64xf32>
    %c1216 = arith.constant 1216 : index
    %c0_22 = arith.constant 0 : index
    %42 = vector.load %arg3[%c1216, %c0_22] : memref<1416x64xf32, #tpu.memory_space<vmem>>, vector<1x64xf32>
    %43 = vector.broadcast %42 : vector<1x64xf32> to vector<64x64xf32>
    %44 = arith.addf %41, %43 : vector<64x64xf32>
    %45 = arith.addf %44, %34 : vector<64x64xf32>
    %cst_23 = arith.constant 0.000000e+00 : f32
    %46 = vector.broadcast %cst_23 : f32 to vector<64x64xf32>
    %47 = arith.cmpf ogt, %45, %46 : vector<64x64xf32>
    %cst_24 = arith.constant 2.000000e-01 : f32
    %48 = vector.broadcast %cst_24 : f32 to vector<64x64xf32>
    %49 = arith.mulf %48, %45 : vector<64x64xf32>
    %50 = arith.select %47, %45, %49 : vector<64x64xi1>, vector<64x64xf32>
    %c256 = arith.constant 256 : index
    %c0_25 = arith.constant 0 : index
    %51 = vector.load %arg3[%c256, %c0_25] : memref<1416x64xf32, #tpu.memory_space<vmem>>, vector<64x64xf32>
    %cst_26 = arith.constant dense<0.000000e+00> : vector<64x64xf32>
    %52 = tpu.matmul %50, %51, %cst_26 {dimension_numbers = #tpu.dot_dimension_numbers<[1], [0], [0], [1], [0, 0, 1, 1], [], []>} : vector<64x64xf32>, vector<64x64xf32>, vector<64x64xf32> -> vector<64x64xf32>
    %c1224 = arith.constant 1224 : index
    %c0_27 = arith.constant 0 : index
    %53 = vector.load %arg3[%c1224, %c0_27] : memref<1416x64xf32, #tpu.memory_space<vmem>>, vector<1x64xf32>
    %54 = vector.broadcast %53 : vector<1x64xf32> to vector<64x64xf32>
    %55 = arith.addf %52, %54 : vector<64x64xf32>
    %56 = arith.addf %55, %45 : vector<64x64xf32>
    %cst_28 = arith.constant 0.000000e+00 : f32
    %57 = vector.broadcast %cst_28 : f32 to vector<64x64xf32>
    %58 = arith.cmpf ogt, %56, %57 : vector<64x64xf32>
    %cst_29 = arith.constant 2.000000e-01 : f32
    %59 = vector.broadcast %cst_29 : f32 to vector<64x64xf32>
    %60 = arith.mulf %59, %56 : vector<64x64xf32>
    %61 = arith.select %58, %56, %60 : vector<64x64xi1>, vector<64x64xf32>
    %c320 = arith.constant 320 : index
    %c0_30 = arith.constant 0 : index
    %62 = vector.load %arg3[%c320, %c0_30] : memref<1416x64xf32, #tpu.memory_space<vmem>>, vector<64x64xf32>
    %cst_31 = arith.constant dense<0.000000e+00> : vector<64x64xf32>
    %63 = tpu.matmul %61, %62, %cst_31 {dimension_numbers = #tpu.dot_dimension_numbers<[1], [0], [0], [1], [0, 0, 1, 1], [], []>} : vector<64x64xf32>, vector<64x64xf32>, vector<64x64xf32> -> vector<64x64xf32>
    %c1232 = arith.constant 1232 : index
    %c0_32 = arith.constant 0 : index
    %64 = vector.load %arg3[%c1232, %c0_32] : memref<1416x64xf32, #tpu.memory_space<vmem>>, vector<1x64xf32>
    %65 = vector.broadcast %64 : vector<1x64xf32> to vector<64x64xf32>
    %66 = arith.addf %63, %65 : vector<64x64xf32>
    %67 = arith.addf %66, %56 : vector<64x64xf32>
    %cst_33 = arith.constant 0.000000e+00 : f32
    %68 = vector.broadcast %cst_33 : f32 to vector<64x64xf32>
    %69 = arith.cmpf ogt, %67, %68 : vector<64x64xf32>
    %cst_34 = arith.constant 2.000000e-01 : f32
    %70 = vector.broadcast %cst_34 : f32 to vector<64x64xf32>
    %71 = arith.mulf %70, %67 : vector<64x64xf32>
    %72 = arith.select %69, %67, %71 : vector<64x64xi1>, vector<64x64xf32>
    %c384 = arith.constant 384 : index
    %c0_35 = arith.constant 0 : index
    %73 = vector.load %arg3[%c384, %c0_35] : memref<1416x64xf32, #tpu.memory_space<vmem>>, vector<64x64xf32>
    %cst_36 = arith.constant dense<0.000000e+00> : vector<64x64xf32>
    %74 = tpu.matmul %72, %73, %cst_36 {dimension_numbers = #tpu.dot_dimension_numbers<[1], [0], [0], [1], [0, 0, 1, 1], [], []>} : vector<64x64xf32>, vector<64x64xf32>, vector<64x64xf32> -> vector<64x64xf32>
    %c1240 = arith.constant 1240 : index
    %c0_37 = arith.constant 0 : index
    %75 = vector.load %arg3[%c1240, %c0_37] : memref<1416x64xf32, #tpu.memory_space<vmem>>, vector<1x64xf32>
    %76 = vector.broadcast %75 : vector<1x64xf32> to vector<64x64xf32>
    %77 = arith.addf %74, %76 : vector<64x64xf32>
    %78 = arith.addf %77, %67 : vector<64x64xf32>
    %cst_38 = arith.constant 0.000000e+00 : f32
    %79 = vector.broadcast %cst_38 : f32 to vector<64x64xf32>
    %80 = arith.cmpf ogt, %78, %79 : vector<64x64xf32>
    %cst_39 = arith.constant 2.000000e-01 : f32
    %81 = vector.broadcast %cst_39 : f32 to vector<64x64xf32>
    %82 = arith.mulf %81, %78 : vector<64x64xf32>
    %83 = arith.select %80, %78, %82 : vector<64x64xi1>, vector<64x64xf32>
    %c448 = arith.constant 448 : index
    %c0_40 = arith.constant 0 : index
    %84 = vector.load %arg3[%c448, %c0_40] : memref<1416x64xf32, #tpu.memory_space<vmem>>, vector<64x64xf32>
    %cst_41 = arith.constant dense<0.000000e+00> : vector<64x64xf32>
    %85 = tpu.matmul %83, %84, %cst_41 {dimension_numbers = #tpu.dot_dimension_numbers<[1], [0], [0], [1], [0, 0, 1, 1], [], []>} : vector<64x64xf32>, vector<64x64xf32>, vector<64x64xf32> -> vector<64x64xf32>
    %c1248 = arith.constant 1248 : index
    %c0_42 = arith.constant 0 : index
    %86 = vector.load %arg3[%c1248, %c0_42] : memref<1416x64xf32, #tpu.memory_space<vmem>>, vector<1x64xf32>
    %87 = vector.broadcast %86 : vector<1x64xf32> to vector<64x64xf32>
    %88 = arith.addf %85, %87 : vector<64x64xf32>
    %89 = arith.addf %88, %78 : vector<64x64xf32>
    %cst_43 = arith.constant 0.000000e+00 : f32
    %90 = vector.broadcast %cst_43 : f32 to vector<64x64xf32>
    %91 = arith.cmpf ogt, %89, %90 : vector<64x64xf32>
    %cst_44 = arith.constant 2.000000e-01 : f32
    %92 = vector.broadcast %cst_44 : f32 to vector<64x64xf32>
    %93 = arith.mulf %92, %89 : vector<64x64xf32>
    %94 = arith.select %91, %89, %93 : vector<64x64xi1>, vector<64x64xf32>
    %c512 = arith.constant 512 : index
    %c0_45 = arith.constant 0 : index
    %95 = vector.load %arg3[%c512, %c0_45] : memref<1416x64xf32, #tpu.memory_space<vmem>>, vector<64x64xf32>
    %cst_46 = arith.constant dense<0.000000e+00> : vector<64x64xf32>
    %96 = tpu.matmul %94, %95, %cst_46 {dimension_numbers = #tpu.dot_dimension_numbers<[1], [0], [0], [1], [0, 0, 1, 1], [], []>} : vector<64x64xf32>, vector<64x64xf32>, vector<64x64xf32> -> vector<64x64xf32>
    %c1256 = arith.constant 1256 : index
    %c0_47 = arith.constant 0 : index
    %97 = vector.load %arg3[%c1256, %c0_47] : memref<1416x64xf32, #tpu.memory_space<vmem>>, vector<1x64xf32>
    %98 = vector.broadcast %97 : vector<1x64xf32> to vector<64x64xf32>
    %99 = arith.addf %96, %98 : vector<64x64xf32>
    %100 = arith.addf %99, %89 : vector<64x64xf32>
    %cst_48 = arith.constant 0.000000e+00 : f32
    %101 = vector.broadcast %cst_48 : f32 to vector<64x64xf32>
    %102 = arith.cmpf ogt, %100, %101 : vector<64x64xf32>
    %cst_49 = arith.constant 2.000000e-01 : f32
    %103 = vector.broadcast %cst_49 : f32 to vector<64x64xf32>
    %104 = arith.mulf %103, %100 : vector<64x64xf32>
    %105 = arith.select %102, %100, %104 : vector<64x64xi1>, vector<64x64xf32>
    %c576 = arith.constant 576 : index
    %c0_50 = arith.constant 0 : index
    %106 = vector.load %arg3[%c576, %c0_50] : memref<1416x64xf32, #tpu.memory_space<vmem>>, vector<64x64xf32>
    %cst_51 = arith.constant dense<0.000000e+00> : vector<64x64xf32>
    %107 = tpu.matmul %105, %106, %cst_51 {dimension_numbers = #tpu.dot_dimension_numbers<[1], [0], [0], [1], [0, 0, 1, 1], [], []>} : vector<64x64xf32>, vector<64x64xf32>, vector<64x64xf32> -> vector<64x64xf32>
    %c1264 = arith.constant 1264 : index
    %c0_52 = arith.constant 0 : index
    %108 = vector.load %arg3[%c1264, %c0_52] : memref<1416x64xf32, #tpu.memory_space<vmem>>, vector<1x64xf32>
    %109 = vector.broadcast %108 : vector<1x64xf32> to vector<64x64xf32>
    %110 = arith.addf %107, %109 : vector<64x64xf32>
    %111 = arith.addf %110, %100 : vector<64x64xf32>
    %cst_53 = arith.constant 0.000000e+00 : f32
    %112 = vector.broadcast %cst_53 : f32 to vector<64x64xf32>
    %113 = arith.cmpf ogt, %111, %112 : vector<64x64xf32>
    %cst_54 = arith.constant 2.000000e-01 : f32
    %114 = vector.broadcast %cst_54 : f32 to vector<64x64xf32>
    %115 = arith.mulf %114, %111 : vector<64x64xf32>
    %116 = arith.select %113, %111, %115 : vector<64x64xi1>, vector<64x64xf32>
    %c640 = arith.constant 640 : index
    %c0_55 = arith.constant 0 : index
    %117 = vector.load %arg3[%c640, %c0_55] : memref<1416x64xf32, #tpu.memory_space<vmem>>, vector<64x64xf32>
    %cst_56 = arith.constant dense<0.000000e+00> : vector<64x64xf32>
    %118 = tpu.matmul %116, %117, %cst_56 {dimension_numbers = #tpu.dot_dimension_numbers<[1], [0], [0], [1], [0, 0, 1, 1], [], []>} : vector<64x64xf32>, vector<64x64xf32>, vector<64x64xf32> -> vector<64x64xf32>
    %c1272 = arith.constant 1272 : index
    %c0_57 = arith.constant 0 : index
    %119 = vector.load %arg3[%c1272, %c0_57] : memref<1416x64xf32, #tpu.memory_space<vmem>>, vector<1x64xf32>
    %120 = vector.broadcast %119 : vector<1x64xf32> to vector<64x64xf32>
    %121 = arith.addf %118, %120 : vector<64x64xf32>
    %122 = arith.addf %121, %111 : vector<64x64xf32>
    %cst_58 = arith.constant 0.000000e+00 : f32
    %123 = vector.broadcast %cst_58 : f32 to vector<64x64xf32>
    %124 = arith.cmpf ogt, %122, %123 : vector<64x64xf32>
    %cst_59 = arith.constant 2.000000e-01 : f32
    %125 = vector.broadcast %cst_59 : f32 to vector<64x64xf32>
    %126 = arith.mulf %125, %122 : vector<64x64xf32>
    %127 = arith.select %124, %122, %126 : vector<64x64xi1>, vector<64x64xf32>
    %c704 = arith.constant 704 : index
    %c0_60 = arith.constant 0 : index
    %128 = vector.load %arg3[%c704, %c0_60] : memref<1416x64xf32, #tpu.memory_space<vmem>>, vector<64x64xf32>
    %cst_61 = arith.constant dense<0.000000e+00> : vector<64x64xf32>
    %129 = tpu.matmul %127, %128, %cst_61 {dimension_numbers = #tpu.dot_dimension_numbers<[1], [0], [0], [1], [0, 0, 1, 1], [], []>} : vector<64x64xf32>, vector<64x64xf32>, vector<64x64xf32> -> vector<64x64xf32>
    %c1280 = arith.constant 1280 : index
    %c0_62 = arith.constant 0 : index
    %130 = vector.load %arg3[%c1280, %c0_62] : memref<1416x64xf32, #tpu.memory_space<vmem>>, vector<1x64xf32>
    %131 = vector.broadcast %130 : vector<1x64xf32> to vector<64x64xf32>
    %132 = arith.addf %129, %131 : vector<64x64xf32>
    %133 = arith.addf %132, %122 : vector<64x64xf32>
    %cst_63 = arith.constant 0.000000e+00 : f32
    %134 = vector.broadcast %cst_63 : f32 to vector<64x64xf32>
    %135 = arith.cmpf ogt, %133, %134 : vector<64x64xf32>
    %cst_64 = arith.constant 2.000000e-01 : f32
    %136 = vector.broadcast %cst_64 : f32 to vector<64x64xf32>
    %137 = arith.mulf %136, %133 : vector<64x64xf32>
    %138 = arith.select %135, %133, %137 : vector<64x64xi1>, vector<64x64xf32>
    %c768 = arith.constant 768 : index
    %c0_65 = arith.constant 0 : index
    %139 = vector.load %arg3[%c768, %c0_65] : memref<1416x64xf32, #tpu.memory_space<vmem>>, vector<64x64xf32>
    %cst_66 = arith.constant dense<0.000000e+00> : vector<64x64xf32>
    %140 = tpu.matmul %138, %139, %cst_66 {dimension_numbers = #tpu.dot_dimension_numbers<[1], [0], [0], [1], [0, 0, 1, 1], [], []>} : vector<64x64xf32>, vector<64x64xf32>, vector<64x64xf32> -> vector<64x64xf32>
    %c1288 = arith.constant 1288 : index
    %c0_67 = arith.constant 0 : index
    %141 = vector.load %arg3[%c1288, %c0_67] : memref<1416x64xf32, #tpu.memory_space<vmem>>, vector<1x64xf32>
    %142 = vector.broadcast %141 : vector<1x64xf32> to vector<64x64xf32>
    %143 = arith.addf %140, %142 : vector<64x64xf32>
    %144 = arith.addf %143, %133 : vector<64x64xf32>
    %cst_68 = arith.constant 0.000000e+00 : f32
    %145 = vector.broadcast %cst_68 : f32 to vector<64x64xf32>
    %146 = arith.cmpf ogt, %144, %145 : vector<64x64xf32>
    %cst_69 = arith.constant 2.000000e-01 : f32
    %147 = vector.broadcast %cst_69 : f32 to vector<64x64xf32>
    %148 = arith.mulf %147, %144 : vector<64x64xf32>
    %149 = arith.select %146, %144, %148 : vector<64x64xi1>, vector<64x64xf32>
    %c832 = arith.constant 832 : index
    %c0_70 = arith.constant 0 : index
    %150 = vector.load %arg3[%c832, %c0_70] : memref<1416x64xf32, #tpu.memory_space<vmem>>, vector<64x64xf32>
    %cst_71 = arith.constant dense<0.000000e+00> : vector<64x64xf32>
    %151 = tpu.matmul %149, %150, %cst_71 {dimension_numbers = #tpu.dot_dimension_numbers<[1], [0], [0], [1], [0, 0, 1, 1], [], []>} : vector<64x64xf32>, vector<64x64xf32>, vector<64x64xf32> -> vector<64x64xf32>
    %c1296 = arith.constant 1296 : index
    %c0_72 = arith.constant 0 : index
    %152 = vector.load %arg3[%c1296, %c0_72] : memref<1416x64xf32, #tpu.memory_space<vmem>>, vector<1x64xf32>
    %153 = vector.broadcast %152 : vector<1x64xf32> to vector<64x64xf32>
    %154 = arith.addf %151, %153 : vector<64x64xf32>
    %155 = arith.addf %154, %144 : vector<64x64xf32>
    %cst_73 = arith.constant 0.000000e+00 : f32
    %156 = vector.broadcast %cst_73 : f32 to vector<64x64xf32>
    %157 = arith.cmpf ogt, %155, %156 : vector<64x64xf32>
    %cst_74 = arith.constant 2.000000e-01 : f32
    %158 = vector.broadcast %cst_74 : f32 to vector<64x64xf32>
    %159 = arith.mulf %158, %155 : vector<64x64xf32>
    %160 = arith.select %157, %155, %159 : vector<64x64xi1>, vector<64x64xf32>
    %c896 = arith.constant 896 : index
    %c0_75 = arith.constant 0 : index
    %161 = vector.load %arg3[%c896, %c0_75] : memref<1416x64xf32, #tpu.memory_space<vmem>>, vector<64x64xf32>
    %cst_76 = arith.constant dense<0.000000e+00> : vector<64x64xf32>
    %162 = tpu.matmul %160, %161, %cst_76 {dimension_numbers = #tpu.dot_dimension_numbers<[1], [0], [0], [1], [0, 0, 1, 1], [], []>} : vector<64x64xf32>, vector<64x64xf32>, vector<64x64xf32> -> vector<64x64xf32>
    %c1304 = arith.constant 1304 : index
    %c0_77 = arith.constant 0 : index
    %163 = vector.load %arg3[%c1304, %c0_77] : memref<1416x64xf32, #tpu.memory_space<vmem>>, vector<1x64xf32>
    %164 = vector.broadcast %163 : vector<1x64xf32> to vector<64x64xf32>
    %165 = arith.addf %162, %164 : vector<64x64xf32>
    %166 = arith.addf %165, %155 : vector<64x64xf32>
    %cst_78 = arith.constant 0.000000e+00 : f32
    %167 = vector.broadcast %cst_78 : f32 to vector<64x64xf32>
    %168 = arith.cmpf ogt, %166, %167 : vector<64x64xf32>
    %cst_79 = arith.constant 2.000000e-01 : f32
    %169 = vector.broadcast %cst_79 : f32 to vector<64x64xf32>
    %170 = arith.mulf %169, %166 : vector<64x64xf32>
    %171 = arith.select %168, %166, %170 : vector<64x64xi1>, vector<64x64xf32>
    %c960 = arith.constant 960 : index
    %c0_80 = arith.constant 0 : index
    %172 = vector.load %arg3[%c960, %c0_80] : memref<1416x64xf32, #tpu.memory_space<vmem>>, vector<64x64xf32>
    %cst_81 = arith.constant dense<0.000000e+00> : vector<64x64xf32>
    %173 = tpu.matmul %171, %172, %cst_81 {dimension_numbers = #tpu.dot_dimension_numbers<[1], [0], [0], [1], [0, 0, 1, 1], [], []>} : vector<64x64xf32>, vector<64x64xf32>, vector<64x64xf32> -> vector<64x64xf32>
    %c1312 = arith.constant 1312 : index
    %c0_82 = arith.constant 0 : index
    %174 = vector.load %arg3[%c1312, %c0_82] : memref<1416x64xf32, #tpu.memory_space<vmem>>, vector<1x64xf32>
    %175 = vector.broadcast %174 : vector<1x64xf32> to vector<64x64xf32>
    %176 = arith.addf %173, %175 : vector<64x64xf32>
    %177 = arith.addf %176, %166 : vector<64x64xf32>
    %cst_83 = arith.constant 0.000000e+00 : f32
    %178 = vector.broadcast %cst_83 : f32 to vector<64x64xf32>
    %179 = arith.cmpf ogt, %177, %178 : vector<64x64xf32>
    %cst_84 = arith.constant 2.000000e-01 : f32
    %180 = vector.broadcast %cst_84 : f32 to vector<64x64xf32>
    %181 = arith.mulf %180, %177 : vector<64x64xf32>
    %182 = arith.select %179, %177, %181 : vector<64x64xi1>, vector<64x64xf32>
    %c1024 = arith.constant 1024 : index
    %c0_85 = arith.constant 0 : index
    %183 = vector.load %arg3[%c1024, %c0_85] : memref<1416x64xf32, #tpu.memory_space<vmem>>, vector<64x64xf32>
    %cst_86 = arith.constant dense<0.000000e+00> : vector<64x64xf32>
    %184 = tpu.matmul %182, %183, %cst_86 {dimension_numbers = #tpu.dot_dimension_numbers<[1], [0], [0], [1], [0, 0, 1, 1], [], []>} : vector<64x64xf32>, vector<64x64xf32>, vector<64x64xf32> -> vector<64x64xf32>
    %c1320 = arith.constant 1320 : index
    %c0_87 = arith.constant 0 : index
    %185 = vector.load %arg3[%c1320, %c0_87] : memref<1416x64xf32, #tpu.memory_space<vmem>>, vector<1x64xf32>
    %186 = vector.broadcast %185 : vector<1x64xf32> to vector<64x64xf32>
    %187 = arith.addf %184, %186 : vector<64x64xf32>
    %188 = arith.addf %187, %177 : vector<64x64xf32>
    %cst_88 = arith.constant 0.000000e+00 : f32
    %189 = vector.broadcast %cst_88 : f32 to vector<64x64xf32>
    %190 = arith.cmpf ogt, %188, %189 : vector<64x64xf32>
    %cst_89 = arith.constant 2.000000e-01 : f32
    %191 = vector.broadcast %cst_89 : f32 to vector<64x64xf32>
    %192 = arith.mulf %191, %188 : vector<64x64xf32>
    %193 = arith.select %190, %188, %192 : vector<64x64xi1>, vector<64x64xf32>
    %c1088 = arith.constant 1088 : index
    %c0_90 = arith.constant 0 : index
    %194 = vector.load %arg3[%c1088, %c0_90] : memref<1416x64xf32, #tpu.memory_space<vmem>>, vector<64x64xf32>
    %cst_91 = arith.constant dense<0.000000e+00> : vector<64x64xf32>
    %195 = tpu.matmul %193, %194, %cst_91 {dimension_numbers = #tpu.dot_dimension_numbers<[1], [0], [0], [1], [0, 0, 1, 1], [], []>} : vector<64x64xf32>, vector<64x64xf32>, vector<64x64xf32> -> vector<64x64xf32>
    %c1328 = arith.constant 1328 : index
    %c0_92 = arith.constant 0 : index
    %196 = vector.load %arg3[%c1328, %c0_92] : memref<1416x64xf32, #tpu.memory_space<vmem>>, vector<1x64xf32>
    %197 = vector.broadcast %196 : vector<1x64xf32> to vector<64x64xf32>
    %198 = arith.addf %195, %197 : vector<64x64xf32>
    %199 = arith.addf %198, %188 : vector<64x64xf32>
    %cst_93 = arith.constant 0.000000e+00 : f32
    %200 = vector.broadcast %cst_93 : f32 to vector<64x64xf32>
    %201 = arith.cmpf ogt, %199, %200 : vector<64x64xf32>
    %cst_94 = arith.constant 2.000000e-01 : f32
    %202 = vector.broadcast %cst_94 : f32 to vector<64x64xf32>
    %203 = arith.mulf %202, %199 : vector<64x64xf32>
    %204 = arith.select %201, %199, %203 : vector<64x64xi1>, vector<64x64xf32>
    %c1152 = arith.constant 1152 : index
    %c0_95 = arith.constant 0 : index
    %205 = vector.load %arg3[%c1152, %c0_95] : memref<1416x64xf32, #tpu.memory_space<vmem>>, vector<64x64xf32>
    %cst_96 = arith.constant dense<0.000000e+00> : vector<64x64xf32>
    %206 = tpu.matmul %204, %205, %cst_96 {dimension_numbers = #tpu.dot_dimension_numbers<[1], [0], [0], [1], [0, 0, 1, 1], [], []>} : vector<64x64xf32>, vector<64x64xf32>, vector<64x64xf32> -> vector<64x64xf32>
    %c1336 = arith.constant 1336 : index
    %c0_97 = arith.constant 0 : index
    %207 = vector.load %arg3[%c1336, %c0_97] : memref<1416x64xf32, #tpu.memory_space<vmem>>, vector<1x64xf32>
    %208 = vector.broadcast %207 : vector<1x64xf32> to vector<64x64xf32>
    %209 = arith.addf %206, %208 : vector<64x64xf32>
    %210 = arith.addf %209, %199 : vector<64x64xf32>
    %cst_98 = arith.constant 0.000000e+00 : f32
    %211 = vector.broadcast %cst_98 : f32 to vector<64x64xf32>
    %212 = arith.cmpf ogt, %210, %211 : vector<64x64xf32>
    %cst_99 = arith.constant 2.000000e-01 : f32
    %213 = vector.broadcast %cst_99 : f32 to vector<64x64xf32>
    %214 = arith.mulf %213, %210 : vector<64x64xf32>
    %215 = arith.select %212, %210, %214 : vector<64x64xi1>, vector<64x64xf32>
    %c1344 = arith.constant 1344 : index
    %c0_100 = arith.constant 0 : index
    %216 = vector.load %arg3[%c1344, %c0_100] : memref<1416x64xf32, #tpu.memory_space<vmem>>, vector<64x64xf32>
    %cst_101 = arith.constant dense<0.000000e+00> : vector<64x64xf32>
    %217 = tpu.matmul %215, %216, %cst_101 {dimension_numbers = #tpu.dot_dimension_numbers<[1], [0], [0], [1], [0, 0, 1, 1], [], []>} : vector<64x64xf32>, vector<64x64xf32>, vector<64x64xf32> -> vector<64x64xf32>
    %c1408 = arith.constant 1408 : index
    %c0_102 = arith.constant 0 : index
    %218 = vector.load %arg3[%c1408, %c0_102] : memref<1416x64xf32, #tpu.memory_space<vmem>>, vector<1x64xf32>
    %219 = vector.broadcast %218 : vector<1x64xf32> to vector<64x64xf32>
    %220 = arith.addf %217, %219 : vector<64x64xf32>
    %221 = vector.extract_strided_slice %220 {offsets = [0, 0], sizes = [64, 1], strides = [1, 1]} : vector<64x64xf32> to vector<64x1xf32>
    %c0_103 = arith.constant 0 : index
    %c0_104 = arith.constant 0 : index
    %222 = vector.load %arg4[%c0_103, %c0_104] : memref<128x1xf32, #tpu.memory_space<vmem>>, vector<64x1xf32>
    tpu.vector_store %arg4[%c0_103, %c0_104], %221 {strides = array<i32>} : memref<128x1xf32, #tpu.memory_space<vmem>>, vector<64x1xf32>,
    %c64 = arith.constant 64 : index
    %c0_105 = arith.constant 0 : index
    %223 = vector.load %arg1[%c64, %c0_105] : memref<128x32xf32, #tpu.memory_space<vmem>>, vector<64x32xf32>
    %c64_106 = arith.constant 64 : index
    %c0_107 = arith.constant 0 : index
    %224 = vector.load %arg2[%c64_106, %c0_107] : memref<128x1xi32, #tpu.memory_space<vmem>>, vector<64x1xi32>
    %225 = tpu.iota {dimensions = array<i32: 1>} : vector<64x8xi32>
    %226 = vector.broadcast %224 : vector<64x1xi32> to vector<64x8xi32>
    %227 = arith.cmpi eq, %225, %226 : vector<64x8xi32>
    %228 = arith.extui %227 : vector<64x8xi1> to vector<64x8xi32>
    %229 = arith.sitofp %228 : vector<64x8xi32> to vector<64x8xf32>
    %c0_108 = arith.constant 0 : index
    %c0_109 = arith.constant 0 : index
    %230 = vector.load %arg3[%c0_108, %c0_109] : memref<1416x64xf32, #tpu.memory_space<vmem>>, vector<32x64xf32>
    %cst_110 = arith.constant dense<0.000000e+00> : vector<64x64xf32>
    %231 = tpu.matmul %223, %230, %cst_110 {dimension_numbers = #tpu.dot_dimension_numbers<[1], [0], [0], [1], [0, 0, 1, 1], [], []>} : vector<64x32xf32>, vector<32x64xf32>, vector<64x64xf32> -> vector<64x64xf32>
    %c32_111 = arith.constant 32 : index
    %c0_112 = arith.constant 0 : index
    %232 = vector.load %arg3[%c32_111, %c0_112] : memref<1416x64xf32, #tpu.memory_space<vmem>>, vector<8x64xf32>
    %cst_113 = arith.constant dense<0.000000e+00> : vector<64x64xf32>
    %233 = tpu.matmul %229, %232, %cst_113 {dimension_numbers = #tpu.dot_dimension_numbers<[1], [0], [0], [1], [0, 0, 1, 1], [], []>} : vector<64x8xf32>, vector<8x64xf32>, vector<64x64xf32> -> vector<64x64xf32>
    %234 = arith.addf %231, %233 : vector<64x64xf32>
    %c40_114 = arith.constant 40 : index
    %c0_115 = arith.constant 0 : index
    %235 = vector.load %arg3[%c40_114, %c0_115] : memref<1416x64xf32, #tpu.memory_space<vmem>>, vector<1x64xf32>
    %236 = vector.broadcast %235 : vector<1x64xf32> to vector<64x64xf32>
    %237 = arith.addf %234, %236 : vector<64x64xf32>
    %cst_116 = arith.constant 0.000000e+00 : f32
    %238 = vector.broadcast %cst_116 : f32 to vector<64x64xf32>
    %239 = arith.cmpf ogt, %237, %238 : vector<64x64xf32>
    %cst_117 = arith.constant 2.000000e-01 : f32
    %240 = vector.broadcast %cst_117 : f32 to vector<64x64xf32>
    %241 = arith.mulf %240, %237 : vector<64x64xf32>
    %242 = arith.select %239, %237, %241 : vector<64x64xi1>, vector<64x64xf32>
    %c48_118 = arith.constant 48 : index
    %c0_119 = arith.constant 0 : index
    %243 = vector.load %arg3[%c48_118, %c0_119] : memref<1416x64xf32, #tpu.memory_space<vmem>>, vector<64x64xf32>
    %cst_120 = arith.constant dense<0.000000e+00> : vector<64x64xf32>
    %244 = tpu.matmul %242, %243, %cst_120 {dimension_numbers = #tpu.dot_dimension_numbers<[1], [0], [0], [1], [0, 0, 1, 1], [], []>} : vector<64x64xf32>, vector<64x64xf32>, vector<64x64xf32> -> vector<64x64xf32>
    %c112_121 = arith.constant 112 : index
    %c0_122 = arith.constant 0 : index
    %245 = vector.load %arg3[%c112_121, %c0_122] : memref<1416x64xf32, #tpu.memory_space<vmem>>, vector<1x64xf32>
    %246 = vector.broadcast %245 : vector<1x64xf32> to vector<64x64xf32>
    %247 = arith.addf %244, %246 : vector<64x64xf32>
    %cst_123 = arith.constant 0.000000e+00 : f32
    %248 = vector.broadcast %cst_123 : f32 to vector<64x64xf32>
    %249 = arith.cmpf ogt, %247, %248 : vector<64x64xf32>
    %cst_124 = arith.constant 2.000000e-01 : f32
    %250 = vector.broadcast %cst_124 : f32 to vector<64x64xf32>
    %251 = arith.mulf %250, %247 : vector<64x64xf32>
    %252 = arith.select %249, %247, %251 : vector<64x64xi1>, vector<64x64xf32>
    %c120_125 = arith.constant 120 : index
    %c0_126 = arith.constant 0 : index
    %253 = vector.load %arg3[%c120_125, %c0_126] : memref<1416x64xf32, #tpu.memory_space<vmem>>, vector<64x64xf32>
    %cst_127 = arith.constant dense<0.000000e+00> : vector<64x64xf32>
    %254 = tpu.matmul %252, %253, %cst_127 {dimension_numbers = #tpu.dot_dimension_numbers<[1], [0], [0], [1], [0, 0, 1, 1], [], []>} : vector<64x64xf32>, vector<64x64xf32>, vector<64x64xf32> -> vector<64x64xf32>
    %c184_128 = arith.constant 184 : index
    %c0_129 = arith.constant 0 : index
    %255 = vector.load %arg3[%c184_128, %c0_129] : memref<1416x64xf32, #tpu.memory_space<vmem>>, vector<1x64xf32>
    %256 = vector.broadcast %255 : vector<1x64xf32> to vector<64x64xf32>
    %257 = arith.addf %254, %256 : vector<64x64xf32>
    %cst_130 = arith.constant 0.000000e+00 : f32
    %258 = vector.broadcast %cst_130 : f32 to vector<64x64xf32>
    %259 = arith.cmpf ogt, %257, %258 : vector<64x64xf32>
    %cst_131 = arith.constant 2.000000e-01 : f32
    %260 = vector.broadcast %cst_131 : f32 to vector<64x64xf32>
    %261 = arith.mulf %260, %257 : vector<64x64xf32>
    %262 = arith.select %259, %257, %261 : vector<64x64xi1>, vector<64x64xf32>
    %c192_132 = arith.constant 192 : index
    %c0_133 = arith.constant 0 : index
    %263 = vector.load %arg3[%c192_132, %c0_133] : memref<1416x64xf32, #tpu.memory_space<vmem>>, vector<64x64xf32>
    %cst_134 = arith.constant dense<0.000000e+00> : vector<64x64xf32>
    %264 = tpu.matmul %262, %263, %cst_134 {dimension_numbers = #tpu.dot_dimension_numbers<[1], [0], [0], [1], [0, 0, 1, 1], [], []>} : vector<64x64xf32>, vector<64x64xf32>, vector<64x64xf32> -> vector<64x64xf32>
    %c1216_135 = arith.constant 1216 : index
    %c0_136 = arith.constant 0 : index
    %265 = vector.load %arg3[%c1216_135, %c0_136] : memref<1416x64xf32, #tpu.memory_space<vmem>>, vector<1x64xf32>
    %266 = vector.broadcast %265 : vector<1x64xf32> to vector<64x64xf32>
    %267 = arith.addf %264, %266 : vector<64x64xf32>
    %268 = arith.addf %267, %257 : vector<64x64xf32>
    %cst_137 = arith.constant 0.000000e+00 : f32
    %269 = vector.broadcast %cst_137 : f32 to vector<64x64xf32>
    %270 = arith.cmpf ogt, %268, %269 : vector<64x64xf32>
    %cst_138 = arith.constant 2.000000e-01 : f32
    %271 = vector.broadcast %cst_138 : f32 to vector<64x64xf32>
    %272 = arith.mulf %271, %268 : vector<64x64xf32>
    %273 = arith.select %270, %268, %272 : vector<64x64xi1>, vector<64x64xf32>
    %c256_139 = arith.constant 256 : index
    %c0_140 = arith.constant 0 : index
    %274 = vector.load %arg3[%c256_139, %c0_140] : memref<1416x64xf32, #tpu.memory_space<vmem>>, vector<64x64xf32>
    %cst_141 = arith.constant dense<0.000000e+00> : vector<64x64xf32>
    %275 = tpu.matmul %273, %274, %cst_141 {dimension_numbers = #tpu.dot_dimension_numbers<[1], [0], [0], [1], [0, 0, 1, 1], [], []>} : vector<64x64xf32>, vector<64x64xf32>, vector<64x64xf32> -> vector<64x64xf32>
    %c1224_142 = arith.constant 1224 : index
    %c0_143 = arith.constant 0 : index
    %276 = vector.load %arg3[%c1224_142, %c0_143] : memref<1416x64xf32, #tpu.memory_space<vmem>>, vector<1x64xf32>
    %277 = vector.broadcast %276 : vector<1x64xf32> to vector<64x64xf32>
    %278 = arith.addf %275, %277 : vector<64x64xf32>
    %279 = arith.addf %278, %268 : vector<64x64xf32>
    %cst_144 = arith.constant 0.000000e+00 : f32
    %280 = vector.broadcast %cst_144 : f32 to vector<64x64xf32>
    %281 = arith.cmpf ogt, %279, %280 : vector<64x64xf32>
    %cst_145 = arith.constant 2.000000e-01 : f32
    %282 = vector.broadcast %cst_145 : f32 to vector<64x64xf32>
    %283 = arith.mulf %282, %279 : vector<64x64xf32>
    %284 = arith.select %281, %279, %283 : vector<64x64xi1>, vector<64x64xf32>
    %c320_146 = arith.constant 320 : index
    %c0_147 = arith.constant 0 : index
    %285 = vector.load %arg3[%c320_146, %c0_147] : memref<1416x64xf32, #tpu.memory_space<vmem>>, vector<64x64xf32>
    %cst_148 = arith.constant dense<0.000000e+00> : vector<64x64xf32>
    %286 = tpu.matmul %284, %285, %cst_148 {dimension_numbers = #tpu.dot_dimension_numbers<[1], [0], [0], [1], [0, 0, 1, 1], [], []>} : vector<64x64xf32>, vector<64x64xf32>, vector<64x64xf32> -> vector<64x64xf32>
    %c1232_149 = arith.constant 1232 : index
    %c0_150 = arith.constant 0 : index
    %287 = vector.load %arg3[%c1232_149, %c0_150] : memref<1416x64xf32, #tpu.memory_space<vmem>>, vector<1x64xf32>
    %288 = vector.broadcast %287 : vector<1x64xf32> to vector<64x64xf32>
    %289 = arith.addf %286, %288 : vector<64x64xf32>
    %290 = arith.addf %289, %279 : vector<64x64xf32>
    %cst_151 = arith.constant 0.000000e+00 : f32
    %291 = vector.broadcast %cst_151 : f32 to vector<64x64xf32>
    %292 = arith.cmpf ogt, %290, %291 : vector<64x64xf32>
    %cst_152 = arith.constant 2.000000e-01 : f32
    %293 = vector.broadcast %cst_152 : f32 to vector<64x64xf32>
    %294 = arith.mulf %293, %290 : vector<64x64xf32>
    %295 = arith.select %292, %290, %294 : vector<64x64xi1>, vector<64x64xf32>
    %c384_153 = arith.constant 384 : index
    %c0_154 = arith.constant 0 : index
    %296 = vector.load %arg3[%c384_153, %c0_154] : memref<1416x64xf32, #tpu.memory_space<vmem>>, vector<64x64xf32>
    %cst_155 = arith.constant dense<0.000000e+00> : vector<64x64xf32>
    %297 = tpu.matmul %295, %296, %cst_155 {dimension_numbers = #tpu.dot_dimension_numbers<[1], [0], [0], [1], [0, 0, 1, 1], [], []>} : vector<64x64xf32>, vector<64x64xf32>, vector<64x64xf32> -> vector<64x64xf32>
    %c1240_156 = arith.constant 1240 : index
    %c0_157 = arith.constant 0 : index
    %298 = vector.load %arg3[%c1240_156, %c0_157] : memref<1416x64xf32, #tpu.memory_space<vmem>>, vector<1x64xf32>
    %299 = vector.broadcast %298 : vector<1x64xf32> to vector<64x64xf32>
    %300 = arith.addf %297, %299 : vector<64x64xf32>
    %301 = arith.addf %300, %290 : vector<64x64xf32>
    %cst_158 = arith.constant 0.000000e+00 : f32
    %302 = vector.broadcast %cst_158 : f32 to vector<64x64xf32>
    %303 = arith.cmpf ogt, %301, %302 : vector<64x64xf32>
    %cst_159 = arith.constant 2.000000e-01 : f32
    %304 = vector.broadcast %cst_159 : f32 to vector<64x64xf32>
    %305 = arith.mulf %304, %301 : vector<64x64xf32>
    %306 = arith.select %303, %301, %305 : vector<64x64xi1>, vector<64x64xf32>
    %c448_160 = arith.constant 448 : index
    %c0_161 = arith.constant 0 : index
    %307 = vector.load %arg3[%c448_160, %c0_161] : memref<1416x64xf32, #tpu.memory_space<vmem>>, vector<64x64xf32>
    %cst_162 = arith.constant dense<0.000000e+00> : vector<64x64xf32>
    %308 = tpu.matmul %306, %307, %cst_162 {dimension_numbers = #tpu.dot_dimension_numbers<[1], [0], [0], [1], [0, 0, 1, 1], [], []>} : vector<64x64xf32>, vector<64x64xf32>, vector<64x64xf32> -> vector<64x64xf32>
    %c1248_163 = arith.constant 1248 : index
    %c0_164 = arith.constant 0 : index
    %309 = vector.load %arg3[%c1248_163, %c0_164] : memref<1416x64xf32, #tpu.memory_space<vmem>>, vector<1x64xf32>
    %310 = vector.broadcast %309 : vector<1x64xf32> to vector<64x64xf32>
    %311 = arith.addf %308, %310 : vector<64x64xf32>
    %312 = arith.addf %311, %301 : vector<64x64xf32>
    %cst_165 = arith.constant 0.000000e+00 : f32
    %313 = vector.broadcast %cst_165 : f32 to vector<64x64xf32>
    %314 = arith.cmpf ogt, %312, %313 : vector<64x64xf32>
    %cst_166 = arith.constant 2.000000e-01 : f32
    %315 = vector.broadcast %cst_166 : f32 to vector<64x64xf32>
    %316 = arith.mulf %315, %312 : vector<64x64xf32>
    %317 = arith.select %314, %312, %316 : vector<64x64xi1>, vector<64x64xf32>
    %c512_167 = arith.constant 512 : index
    %c0_168 = arith.constant 0 : index
    %318 = vector.load %arg3[%c512_167, %c0_168] : memref<1416x64xf32, #tpu.memory_space<vmem>>, vector<64x64xf32>
    %cst_169 = arith.constant dense<0.000000e+00> : vector<64x64xf32>
    %319 = tpu.matmul %317, %318, %cst_169 {dimension_numbers = #tpu.dot_dimension_numbers<[1], [0], [0], [1], [0, 0, 1, 1], [], []>} : vector<64x64xf32>, vector<64x64xf32>, vector<64x64xf32> -> vector<64x64xf32>
    %c1256_170 = arith.constant 1256 : index
    %c0_171 = arith.constant 0 : index
    %320 = vector.load %arg3[%c1256_170, %c0_171] : memref<1416x64xf32, #tpu.memory_space<vmem>>, vector<1x64xf32>
    %321 = vector.broadcast %320 : vector<1x64xf32> to vector<64x64xf32>
    %322 = arith.addf %319, %321 : vector<64x64xf32>
    %323 = arith.addf %322, %312 : vector<64x64xf32>
    %cst_172 = arith.constant 0.000000e+00 : f32
    %324 = vector.broadcast %cst_172 : f32 to vector<64x64xf32>
    %325 = arith.cmpf ogt, %323, %324 : vector<64x64xf32>
    %cst_173 = arith.constant 2.000000e-01 : f32
    %326 = vector.broadcast %cst_173 : f32 to vector<64x64xf32>
    %327 = arith.mulf %326, %323 : vector<64x64xf32>
    %328 = arith.select %325, %323, %327 : vector<64x64xi1>, vector<64x64xf32>
    %c576_174 = arith.constant 576 : index
    %c0_175 = arith.constant 0 : index
    %329 = vector.load %arg3[%c576_174, %c0_175] : memref<1416x64xf32, #tpu.memory_space<vmem>>, vector<64x64xf32>
    %cst_176 = arith.constant dense<0.000000e+00> : vector<64x64xf32>
    %330 = tpu.matmul %328, %329, %cst_176 {dimension_numbers = #tpu.dot_dimension_numbers<[1], [0], [0], [1], [0, 0, 1, 1], [], []>} : vector<64x64xf32>, vector<64x64xf32>, vector<64x64xf32> -> vector<64x64xf32>
    %c1264_177 = arith.constant 1264 : index
    %c0_178 = arith.constant 0 : index
    %331 = vector.load %arg3[%c1264_177, %c0_178] : memref<1416x64xf32, #tpu.memory_space<vmem>>, vector<1x64xf32>
    %332 = vector.broadcast %331 : vector<1x64xf32> to vector<64x64xf32>
    %333 = arith.addf %330, %332 : vector<64x64xf32>
    %334 = arith.addf %333, %323 : vector<64x64xf32>
    %cst_179 = arith.constant 0.000000e+00 : f32
    %335 = vector.broadcast %cst_179 : f32 to vector<64x64xf32>
    %336 = arith.cmpf ogt, %334, %335 : vector<64x64xf32>
    %cst_180 = arith.constant 2.000000e-01 : f32
    %337 = vector.broadcast %cst_180 : f32 to vector<64x64xf32>
    %338 = arith.mulf %337, %334 : vector<64x64xf32>
    %339 = arith.select %336, %334, %338 : vector<64x64xi1>, vector<64x64xf32>
    %c640_181 = arith.constant 640 : index
    %c0_182 = arith.constant 0 : index
    %340 = vector.load %arg3[%c640_181, %c0_182] : memref<1416x64xf32, #tpu.memory_space<vmem>>, vector<64x64xf32>
    %cst_183 = arith.constant dense<0.000000e+00> : vector<64x64xf32>
    %341 = tpu.matmul %339, %340, %cst_183 {dimension_numbers = #tpu.dot_dimension_numbers<[1], [0], [0], [1], [0, 0, 1, 1], [], []>} : vector<64x64xf32>, vector<64x64xf32>, vector<64x64xf32> -> vector<64x64xf32>
    %c1272_184 = arith.constant 1272 : index
    %c0_185 = arith.constant 0 : index
    %342 = vector.load %arg3[%c1272_184, %c0_185] : memref<1416x64xf32, #tpu.memory_space<vmem>>, vector<1x64xf32>
    %343 = vector.broadcast %342 : vector<1x64xf32> to vector<64x64xf32>
    %344 = arith.addf %341, %343 : vector<64x64xf32>
    %345 = arith.addf %344, %334 : vector<64x64xf32>
    %cst_186 = arith.constant 0.000000e+00 : f32
    %346 = vector.broadcast %cst_186 : f32 to vector<64x64xf32>
    %347 = arith.cmpf ogt, %345, %346 : vector<64x64xf32>
    %cst_187 = arith.constant 2.000000e-01 : f32
    %348 = vector.broadcast %cst_187 : f32 to vector<64x64xf32>
    %349 = arith.mulf %348, %345 : vector<64x64xf32>
    %350 = arith.select %347, %345, %349 : vector<64x64xi1>, vector<64x64xf32>
    %c704_188 = arith.constant 704 : index
    %c0_189 = arith.constant 0 : index
    %351 = vector.load %arg3[%c704_188, %c0_189] : memref<1416x64xf32, #tpu.memory_space<vmem>>, vector<64x64xf32>
    %cst_190 = arith.constant dense<0.000000e+00> : vector<64x64xf32>
    %352 = tpu.matmul %350, %351, %cst_190 {dimension_numbers = #tpu.dot_dimension_numbers<[1], [0], [0], [1], [0, 0, 1, 1], [], []>} : vector<64x64xf32>, vector<64x64xf32>, vector<64x64xf32> -> vector<64x64xf32>
    %c1280_191 = arith.constant 1280 : index
    %c0_192 = arith.constant 0 : index
    %353 = vector.load %arg3[%c1280_191, %c0_192] : memref<1416x64xf32, #tpu.memory_space<vmem>>, vector<1x64xf32>
    %354 = vector.broadcast %353 : vector<1x64xf32> to vector<64x64xf32>
    %355 = arith.addf %352, %354 : vector<64x64xf32>
    %356 = arith.addf %355, %345 : vector<64x64xf32>
    %cst_193 = arith.constant 0.000000e+00 : f32
    %357 = vector.broadcast %cst_193 : f32 to vector<64x64xf32>
    %358 = arith.cmpf ogt, %356, %357 : vector<64x64xf32>
    %cst_194 = arith.constant 2.000000e-01 : f32
    %359 = vector.broadcast %cst_194 : f32 to vector<64x64xf32>
    %360 = arith.mulf %359, %356 : vector<64x64xf32>
    %361 = arith.select %358, %356, %360 : vector<64x64xi1>, vector<64x64xf32>
    %c768_195 = arith.constant 768 : index
    %c0_196 = arith.constant 0 : index
    %362 = vector.load %arg3[%c768_195, %c0_196] : memref<1416x64xf32, #tpu.memory_space<vmem>>, vector<64x64xf32>
    %cst_197 = arith.constant dense<0.000000e+00> : vector<64x64xf32>
    %363 = tpu.matmul %361, %362, %cst_197 {dimension_numbers = #tpu.dot_dimension_numbers<[1], [0], [0], [1], [0, 0, 1, 1], [], []>} : vector<64x64xf32>, vector<64x64xf32>, vector<64x64xf32> -> vector<64x64xf32>
    %c1288_198 = arith.constant 1288 : index
    %c0_199 = arith.constant 0 : index
    %364 = vector.load %arg3[%c1288_198, %c0_199] : memref<1416x64xf32, #tpu.memory_space<vmem>>, vector<1x64xf32>
    %365 = vector.broadcast %364 : vector<1x64xf32> to vector<64x64xf32>
    %366 = arith.addf %363, %365 : vector<64x64xf32>
    %367 = arith.addf %366, %356 : vector<64x64xf32>
    %cst_200 = arith.constant 0.000000e+00 : f32
    %368 = vector.broadcast %cst_200 : f32 to vector<64x64xf32>
    %369 = arith.cmpf ogt, %367, %368 : vector<64x64xf32>
    %cst_201 = arith.constant 2.000000e-01 : f32
    %370 = vector.broadcast %cst_201 : f32 to vector<64x64xf32>
    %371 = arith.mulf %370, %367 : vector<64x64xf32>
    %372 = arith.select %369, %367, %371 : vector<64x64xi1>, vector<64x64xf32>
    %c832_202 = arith.constant 832 : index
    %c0_203 = arith.constant 0 : index
    %373 = vector.load %arg3[%c832_202, %c0_203] : memref<1416x64xf32, #tpu.memory_space<vmem>>, vector<64x64xf32>
    %cst_204 = arith.constant dense<0.000000e+00> : vector<64x64xf32>
    %374 = tpu.matmul %372, %373, %cst_204 {dimension_numbers = #tpu.dot_dimension_numbers<[1], [0], [0], [1], [0, 0, 1, 1], [], []>} : vector<64x64xf32>, vector<64x64xf32>, vector<64x64xf32> -> vector<64x64xf32>
    %c1296_205 = arith.constant 1296 : index
    %c0_206 = arith.constant 0 : index
    %375 = vector.load %arg3[%c1296_205, %c0_206] : memref<1416x64xf32, #tpu.memory_space<vmem>>, vector<1x64xf32>
    %376 = vector.broadcast %375 : vector<1x64xf32> to vector<64x64xf32>
    %377 = arith.addf %374, %376 : vector<64x64xf32>
    %378 = arith.addf %377, %367 : vector<64x64xf32>
    %cst_207 = arith.constant 0.000000e+00 : f32
    %379 = vector.broadcast %cst_207 : f32 to vector<64x64xf32>
    %380 = arith.cmpf ogt, %378, %379 : vector<64x64xf32>
    %cst_208 = arith.constant 2.000000e-01 : f32
    %381 = vector.broadcast %cst_208 : f32 to vector<64x64xf32>
    %382 = arith.mulf %381, %378 : vector<64x64xf32>
    %383 = arith.select %380, %378, %382 : vector<64x64xi1>, vector<64x64xf32>
    %c896_209 = arith.constant 896 : index
    %c0_210 = arith.constant 0 : index
    %384 = vector.load %arg3[%c896_209, %c0_210] : memref<1416x64xf32, #tpu.memory_space<vmem>>, vector<64x64xf32>
    %cst_211 = arith.constant dense<0.000000e+00> : vector<64x64xf32>
    %385 = tpu.matmul %383, %384, %cst_211 {dimension_numbers = #tpu.dot_dimension_numbers<[1], [0], [0], [1], [0, 0, 1, 1], [], []>} : vector<64x64xf32>, vector<64x64xf32>, vector<64x64xf32> -> vector<64x64xf32>
    %c1304_212 = arith.constant 1304 : index
    %c0_213 = arith.constant 0 : index
    %386 = vector.load %arg3[%c1304_212, %c0_213] : memref<1416x64xf32, #tpu.memory_space<vmem>>, vector<1x64xf32>
    %387 = vector.broadcast %386 : vector<1x64xf32> to vector<64x64xf32>
    %388 = arith.addf %385, %387 : vector<64x64xf32>
    %389 = arith.addf %388, %378 : vector<64x64xf32>
    %cst_214 = arith.constant 0.000000e+00 : f32
    %390 = vector.broadcast %cst_214 : f32 to vector<64x64xf32>
    %391 = arith.cmpf ogt, %389, %390 : vector<64x64xf32>
    %cst_215 = arith.constant 2.000000e-01 : f32
    %392 = vector.broadcast %cst_215 : f32 to vector<64x64xf32>
    %393 = arith.mulf %392, %389 : vector<64x64xf32>
    %394 = arith.select %391, %389, %393 : vector<64x64xi1>, vector<64x64xf32>
    %c960_216 = arith.constant 960 : index
    %c0_217 = arith.constant 0 : index
    %395 = vector.load %arg3[%c960_216, %c0_217] : memref<1416x64xf32, #tpu.memory_space<vmem>>, vector<64x64xf32>
    %cst_218 = arith.constant dense<0.000000e+00> : vector<64x64xf32>
    %396 = tpu.matmul %394, %395, %cst_218 {dimension_numbers = #tpu.dot_dimension_numbers<[1], [0], [0], [1], [0, 0, 1, 1], [], []>} : vector<64x64xf32>, vector<64x64xf32>, vector<64x64xf32> -> vector<64x64xf32>
    %c1312_219 = arith.constant 1312 : index
    %c0_220 = arith.constant 0 : index
    %397 = vector.load %arg3[%c1312_219, %c0_220] : memref<1416x64xf32, #tpu.memory_space<vmem>>, vector<1x64xf32>
    %398 = vector.broadcast %397 : vector<1x64xf32> to vector<64x64xf32>
    %399 = arith.addf %396, %398 : vector<64x64xf32>
    %400 = arith.addf %399, %389 : vector<64x64xf32>
    %cst_221 = arith.constant 0.000000e+00 : f32
    %401 = vector.broadcast %cst_221 : f32 to vector<64x64xf32>
    %402 = arith.cmpf ogt, %400, %401 : vector<64x64xf32>
    %cst_222 = arith.constant 2.000000e-01 : f32
    %403 = vector.broadcast %cst_222 : f32 to vector<64x64xf32>
    %404 = arith.mulf %403, %400 : vector<64x64xf32>
    %405 = arith.select %402, %400, %404 : vector<64x64xi1>, vector<64x64xf32>
    %c1024_223 = arith.constant 1024 : index
    %c0_224 = arith.constant 0 : index
    %406 = vector.load %arg3[%c1024_223, %c0_224] : memref<1416x64xf32, #tpu.memory_space<vmem>>, vector<64x64xf32>
    %cst_225 = arith.constant dense<0.000000e+00> : vector<64x64xf32>
    %407 = tpu.matmul %405, %406, %cst_225 {dimension_numbers = #tpu.dot_dimension_numbers<[1], [0], [0], [1], [0, 0, 1, 1], [], []>} : vector<64x64xf32>, vector<64x64xf32>, vector<64x64xf32> -> vector<64x64xf32>
    %c1320_226 = arith.constant 1320 : index
    %c0_227 = arith.constant 0 : index
    %408 = vector.load %arg3[%c1320_226, %c0_227] : memref<1416x64xf32, #tpu.memory_space<vmem>>, vector<1x64xf32>
    %409 = vector.broadcast %408 : vector<1x64xf32> to vector<64x64xf32>
    %410 = arith.addf %407, %409 : vector<64x64xf32>
    %411 = arith.addf %410, %400 : vector<64x64xf32>
    %cst_228 = arith.constant 0.000000e+00 : f32
    %412 = vector.broadcast %cst_228 : f32 to vector<64x64xf32>
    %413 = arith.cmpf ogt, %411, %412 : vector<64x64xf32>
    %cst_229 = arith.constant 2.000000e-01 : f32
    %414 = vector.broadcast %cst_229 : f32 to vector<64x64xf32>
    %415 = arith.mulf %414, %411 : vector<64x64xf32>
    %416 = arith.select %413, %411, %415 : vector<64x64xi1>, vector<64x64xf32>
    %c1088_230 = arith.constant 1088 : index
    %c0_231 = arith.constant 0 : index
    %417 = vector.load %arg3[%c1088_230, %c0_231] : memref<1416x64xf32, #tpu.memory_space<vmem>>, vector<64x64xf32>
    %cst_232 = arith.constant dense<0.000000e+00> : vector<64x64xf32>
    %418 = tpu.matmul %416, %417, %cst_232 {dimension_numbers = #tpu.dot_dimension_numbers<[1], [0], [0], [1], [0, 0, 1, 1], [], []>} : vector<64x64xf32>, vector<64x64xf32>, vector<64x64xf32> -> vector<64x64xf32>
    %c1328_233 = arith.constant 1328 : index
    %c0_234 = arith.constant 0 : index
    %419 = vector.load %arg3[%c1328_233, %c0_234] : memref<1416x64xf32, #tpu.memory_space<vmem>>, vector<1x64xf32>
    %420 = vector.broadcast %419 : vector<1x64xf32> to vector<64x64xf32>
    %421 = arith.addf %418, %420 : vector<64x64xf32>
    %422 = arith.addf %421, %411 : vector<64x64xf32>
    %cst_235 = arith.constant 0.000000e+00 : f32
    %423 = vector.broadcast %cst_235 : f32 to vector<64x64xf32>
    %424 = arith.cmpf ogt, %422, %423 : vector<64x64xf32>
    %cst_236 = arith.constant 2.000000e-01 : f32
    %425 = vector.broadcast %cst_236 : f32 to vector<64x64xf32>
    %426 = arith.mulf %425, %422 : vector<64x64xf32>
    %427 = arith.select %424, %422, %426 : vector<64x64xi1>, vector<64x64xf32>
    %c1152_237 = arith.constant 1152 : index
    %c0_238 = arith.constant 0 : index
    %428 = vector.load %arg3[%c1152_237, %c0_238] : memref<1416x64xf32, #tpu.memory_space<vmem>>, vector<64x64xf32>
    %cst_239 = arith.constant dense<0.000000e+00> : vector<64x64xf32>
    %429 = tpu.matmul %427, %428, %cst_239 {dimension_numbers = #tpu.dot_dimension_numbers<[1], [0], [0], [1], [0, 0, 1, 1], [], []>} : vector<64x64xf32>, vector<64x64xf32>, vector<64x64xf32> -> vector<64x64xf32>
    %c1336_240 = arith.constant 1336 : index
    %c0_241 = arith.constant 0 : index
    %430 = vector.load %arg3[%c1336_240, %c0_241] : memref<1416x64xf32, #tpu.memory_space<vmem>>, vector<1x64xf32>
    %431 = vector.broadcast %430 : vector<1x64xf32> to vector<64x64xf32>
    %432 = arith.addf %429, %431 : vector<64x64xf32>
    %433 = arith.addf %432, %422 : vector<64x64xf32>
    %cst_242 = arith.constant 0.000000e+00 : f32
    %434 = vector.broadcast %cst_242 : f32 to vector<64x64xf32>
    %435 = arith.cmpf ogt, %433, %434 : vector<64x64xf32>
    %cst_243 = arith.constant 2.000000e-01 : f32
    %436 = vector.broadcast %cst_243 : f32 to vector<64x64xf32>
    %437 = arith.mulf %436, %433 : vector<64x64xf32>
    %438 = arith.select %435, %433, %437 : vector<64x64xi1>, vector<64x64xf32>
    %c1344_244 = arith.constant 1344 : index
    %c0_245 = arith.constant 0 : index
    %439 = vector.load %arg3[%c1344_244, %c0_245] : memref<1416x64xf32, #tpu.memory_space<vmem>>, vector<64x64xf32>
    %cst_246 = arith.constant dense<0.000000e+00> : vector<64x64xf32>
    %440 = tpu.matmul %438, %439, %cst_246 {dimension_numbers = #tpu.dot_dimension_numbers<[1], [0], [0], [1], [0, 0, 1, 1], [], []>} : vector<64x64xf32>, vector<64x64xf32>, vector<64x64xf32> -> vector<64x64xf32>
    %c1408_247 = arith.constant 1408 : index
    %c0_248 = arith.constant 0 : index
    %441 = vector.load %arg3[%c1408_247, %c0_248] : memref<1416x64xf32, #tpu.memory_space<vmem>>, vector<1x64xf32>
    %442 = vector.broadcast %441 : vector<1x64xf32> to vector<64x64xf32>
    %443 = arith.addf %440, %442 : vector<64x64xf32>
    %444 = vector.extract_strided_slice %443 {offsets = [0, 0], sizes = [64, 1], strides = [1, 1]} : vector<64x64xf32> to vector<64x1xf32>
    %c64_249 = arith.constant 64 : index
    %c0_250 = arith.constant 0 : index
    %445 = vector.load %arg4[%c64_249, %c0_250] : memref<128x1xf32, #tpu.memory_space<vmem>>, vector<64x1xf32>
    tpu.vector_store %arg4[%c64_249, %c0_250], %444 {strides = array<i32>} : memref<128x1xf32, #tpu.memory_space<vmem>>, vector<64x1xf32>,
    return
  }
  func.func @transform_0(%arg0: i32) -> (i32, i32) {
    %c0_i32 = arith.constant 0 : i32
    %c0_i32_0 = arith.constant 0 : i32
    return %arg0, %c0_i32 : i32, i32
  }
  func.func @transform_1(%arg0: i32) -> (i32, i32) {
    %c0_i32 = arith.constant 0 : i32
    %c0_i32_0 = arith.constant 0 : i32
    return %arg0, %c0_i32 : i32, i32
  }
  func.func @transform_2(%arg0: i32) -> (i32, i32) {
    %c0_i32 = arith.constant 0 : i32
    %c0_i32_0 = arith.constant 0 : i32
    %c0_i32_1 = arith.constant 0 : i32
    return %c0_i32, %c0_i32_0 : i32, i32
  }
  func.func @transform_3(%arg0: i32) -> (i32, i32) {
    %c0_i32 = arith.constant 0 : i32
    %c0_i32_0 = arith.constant 0 : i32
    return %arg0, %c0_i32 : i32, i32
  }
}

</mosaic_0001>

<bundles_post_ra>
// kernel: lebm_forward.1
= control target key start
LH: loop header
LB: loop body
LE: loop exit
PB: predicated region body
PF: predicated region fallthrough
CT: control target
= control target key end

     0   :  { %s10407_s12 = smov 0   ;;  %s13494_s0 = inlined_call_operand.vmem [shape: f32[256,32], index: 0, kind: input, shape index: {}]   ;;  %s13495_s1 = inlined_call_operand.vmem [shape: s32[256,1], index: 1, kind: input, shape index: {}]   ;;  %s13496_s2 = inlined_call_operand.vmem [shape: f32[1416,64], index: 2, kind: input, shape index: {}]   ;;  %s13497_s3 = inlined_call_operand.vmem [shape: f32[256,1], index: 3, kind: output, shape index: {}]  }
   0x1 LB: > { %s7530_s13 = sadd.s32 4294967295, %s10383_s12   ;;  %p7534_p0 = scmp.ge.s32.totalorder %s10383_s12, 1  ;;  %s10383_s12 = sphi %s10407_s12, %s13_s12  }
   0x2   : > { %p149_p1 = scmp.lt.s32.totalorder %s10383_s12, 3 }
   0x4   : > { %p150_p2 = pnand %p7534_p0, %p149_p1 }
   0x5   : > { %s7535_s14 = sshll.u32 (!%p150_p2), %s7530_s13, 4  ;;  %v10385_v0 = vmov (!%p150_p2), 0   ;;  %v266_v6 = vld [vmem:[%s13496_s2 + $0x20] sm:$0xff] (!%p150_p2)  ;;  %v263_v9 = vld [vmem:[%s13496_s2 + $0x8] sm:$0xff] (!%p150_p2)  ;;  %v564_v21 = vld [vmem:[%s13496_s2 + $0x30] sm:$0xff] (!%p150_p2)  ;;  %v212_v27 = vlaneseq (!%p150_p2)  ;;  %vm267_vm0 = vcmask (!%p150_p2), 64512  }
   0x6   : > { %153 = sbr.rel (%p150_p2) target bundleno = 8592 (0x2190), region = 32  ;;  %10376 = vset.pattern.permute.xlu1 (!%p150_p2), %v10385_v0  ;;  %10375 = vset.pattern.permute.xlu0 (!%p150_p2), %v10385_v0  ;;  %p179_p3 = scmp.lt.s32.totalorder (!%p150_p2), %s7535_s14, 31  ;;  %v262_v8 = vld [vmem:[%s13496_s2] sm:$0xff] (!%p150_p2)  ;;  %v565_v22 = vld [vmem:[%s13496_s2 + $0x38] sm:$0xff] (!%p150_p2)  ;;  %v567_v25 = vld [vmem:[%s13496_s2 + $0x48] sm:$0xff] (!%p150_p2)  ;;  %v10386_v31 = vmov (!%p150_p2), 0.0  }
   0x7   : > { %8585 = vmatprep.subr.mxu0 (!%p150_p2), %v266_v6  ;;  %v9717_v10 = vpack.c.bf16 (!%p150_p2), %v263_v9, %v262_v8  ;;  %v566_v23 = vld [vmem:[%s13496_s2 + $0x40] sm:$0xff] (!%p150_p2)  ;;  %v9725_v24 = vpack.c.bf16 (!%p150_p2), %v565_v22, %v564_v21  ;;  %v10460_v28 = vand.u32 (!%p150_p2), 127, %v212_v27  ;;  %v264_v33 = vld [vmem:[%s13496_s2 + $0x10] sm:$0xff] (!%p150_p2)  ;;  %v265_v34 = vld [vmem:[%s13496_s2 + $0x18] sm:$0xff] (!%p150_p2)  ;;  %vm397_vm11 = vcmask (!%p150_p2), 261120  }
   0x8   : > { %8586 = vmatpush3.msra.mxu0 (!%p150_p2), %v266_v6  ;;  %v9729_v26 = vpack.c.bf16 (!%p150_p2), %v567_v25, %v566_v23  ;;  %v9721_v38 = vpack.c.bf16 (!%p150_p2), %v265_v34, %v264_v33  ;;  %v568_v9 = vld [vmem:[%s13496_s2 + $0x50] sm:$0xff] (!%p150_p2) }
   0x9   : > { %9718 = vmatprep.subr.bf16.mxu0 (!%p150_p2), %v9717_v10  ;;  %9726 = vmatprep.subr.bf16.mxu1 (!%p150_p2), %v9725_v24  ;;  %v734_v25 = vld [vmem:[%s13496_s2 + $0x90] sm:$0xff] (!%p150_p2) }
   0xa   : > { %9728 = vmatpush3.bf16.msra.mxu1 (!%p150_p2), %v9725_v24  ;;  %v733_v24 = vld [vmem:[%s13496_s2 + $0x88] sm:$0xff] (!%p150_p2) }
   0xb   : > { %9730 = vmatprep.subr.bf16.mxu1 (!%p150_p2), %v9729_v26 }
   0xd   : > { %s13499_s14 = smov (!%p179_p3, %s7535_s14), 31 }
   0xe   : > { %s10415_s15 = sshll.u32 %s13499_s14, 3  ;;  %9732 = vmatpush3.bf16.msra.mxu1 %v9729_v26 }
   0xf   : > { %s10421_s18 = scalar_lea.vmem %s13495_s1, %s10415_s15  ;;  %s10491_s13 = scalar_lea.vmem %s13494_s0, %s10415_s15 }
  0x10   : > { %v206_v1 = vld [vmem:[%s10421_s18 + $0x10] sm:$0xff]  ;;  %v204_v2 = vld [vmem:[%s10421_s18] sm:$0xff]  ;;  %v207_v3 = vld [vmem:[%s10421_s18 + $0x18] sm:$0xff]  ;;  %s12098_s22 = scalar_lea.vmem %s13497_s3, %s10415_s15 }
  0x11   : > { %221 = vperm.xlu1 %10376, %v206_v1   ;;  %215 = vperm.xlu0 %10375, %v204_v2   ;;  %v205_v4 = vld [vmem:[%s10421_s18 + $0x8] sm:$0xff]  ;;  %v208_v7 = vld [vmem:[%s10421_s18 + $0x20] sm:$0xff]  ;;  %v211_v11 = vld [vmem:[%s10421_s18 + $0x38] sm:$0xff] }
  0x12   : > { %v209_v5 = vld [vmem:[%s10421_s18 + $0x28] sm:$0xff]  ;;  %v210_v12 = vld [vmem:[%s10421_s18 + $0x30] sm:$0xff]  ;;  %v3840_v14 = vld [vmem:[%s10421_s18 + $0x40] sm:$0xff] }
  0x13   : > { %v3841_v13 = vld [vmem:[%s10421_s18 + $0x48] sm:$0xff]  ;;  %v3843_v15 = vld [vmem:[%s10421_s18 + $0x58] sm:$0xff]  ;;  %v3842_v16 = vld [vmem:[%s10421_s18 + $0x50] sm:$0xff] }
  0x14   : > { %v3845_v17 = vld [vmem:[%s10421_s18 + $0x68] sm:$0xff]  ;;  %v3844_v18 = vld [vmem:[%s10421_s18 + $0x60] sm:$0xff]  ;;  %v3847_v19 = vld [vmem:[%s10421_s18 + $0x78] sm:$0xff] }
  0x15   : > { %224 = vperm.xlu1 %10376, %v207_v3   ;;  %218 = vperm.xlu0 %10375, %v205_v4   ;;  %v3846_v20 = vld [vmem:[%s10421_s18 + $0x70] sm:$0xff]  ;;  %v196_v50 = vld [vmem:[%s10491_s13] sm:$0xff]  ;;  %v197_v56 = vld [vmem:[%s10491_s13 + $0x8] sm:$0xff] }
  0x16   : > { %v198_v57 = vld [vmem:[%s10491_s13 + $0x10] sm:$0xff]  ;;  %v199_v62 = vld [vmem:[%s10491_s13 + $0x18] sm:$0xff]  ;;  %v200_v63 = vld [vmem:[%s10491_s13 + $0x20] sm:$0xff] }
  0x17   : > { %v201_v4 = vld [vmem:[%s10491_s13 + $0x28] sm:$0xff]  ;;  %v203_v8 = vld [vmem:[%s10491_s13 + $0x38] sm:$0xff] }
  0x19   : > { %230 = vperm.xlu1 %10376, %v209_v5   ;;  %227 = vperm.xlu0 %10375, %v208_v7   ;;  %v202_v5 = vld [vmem:[%s10491_s13 + $0x30] sm:$0xff] }
  0x1d   : > { %236 = vperm.xlu1 %10376, %v211_v11   ;;  %233 = vperm.xlu0 %10375, %v210_v12   ;;  %v570_v12 = vld [vmem:[%s13496_s2 + $0x60] sm:$0xff] }
  0x21   : > { %3852 = vperm.xlu1 %10376, %v3841_v13   ;;  %3849 = vperm.xlu0 %10375, %v3840_v14   ;;  %v571_v13 = vld [vmem:[%s13496_s2 + $0x68] sm:$0xff] }
  0x22   : > { %v9737_v14 = vpack.c.bf16 %v571_v13, %v570_v12  ;;  %v7566_v13 = vld [vmem:[%s13496_s2 + $0x70] ss:$0 sm:$0xff] }
  0x25   : > { %3858 = vperm.xlu1 %10376, %v3843_v15   ;;  %3855 = vperm.xlu0 %10375, %v3842_v16   ;;  %v731_v15 = vld [vmem:[%s13496_s2 + $0x78] sm:$0xff]  ;;  %v732_v16 = vld [vmem:[%s13496_s2 + $0x80] sm:$0xff] }
  0x29   : > { %3864 = vperm.xlu1 %10376, %v3845_v17   ;;  %3861 = vperm.xlu0 %10375, %v3844_v18   ;;  %v9741_v17 = vpack.c.bf16 %v732_v16, %v731_v15  ;;  %v7565_v18 = vld [vmem:[%s13496_s2 + $0x28] ss:$0 sm:$0xff] }
  0x2d   : > { %3870 = vperm.xlu1 %10376, %v3847_v19   ;;  %3867 = vperm.xlu0 %10375, %v3846_v20  }
  0x90   : > { %v222_v29 = vpop.permute.xlu1 %221  ;;  %v216_v30 = vpop.permute.xlu0 %215 }
  0x91   : > { %vm238_vm1 = vcmp.eq.s32.totalorder %v10460_v28, %v216_v30  ;;  %vm240_vm2 = vcmp.eq.s32.totalorder %v10460_v28, %v222_v29 }
  0x92   : > { %v7541_v32 = vsel %vm238_vm1, 1.0, %v10386_v31  ;;  %v7543_v37 = vsel %vm240_vm2, 1.0, %v10386_v31 }
  0x93   : > { %8587 = vmatprep.mubr.msk.f32.mxu0 %vm267_vm0, %v7541_v32  ;;  %v9745_v32 = vpack.c.bf16 %v734_v25, %v733_v24 }
  0x94   : > { %v225_v35 = vpop.permute.xlu1 %224  ;;  %v219_v36 = vpop.permute.xlu0 %218 }
  0x95   : > { %vm239_vm3 = vcmp.eq.s32.totalorder %v10460_v28, %v219_v36  ;;  %vm241_vm4 = vcmp.eq.s32.totalorder %v10460_v28, %v225_v35  ;;  %v735_v35 = vld [vmem:[%s13496_s2 + $0x98] sm:$0xff]  ;;  %v736_v36 = vld [vmem:[%s13496_s2 + $0xa0] sm:$0xff] }
  0x96   : > { %v7542_v39 = vsel %vm239_vm3, 1.0, %v10386_v31  ;;  %v7544_v42 = vsel %vm241_vm4, 1.0, %v10386_v31 }
  0x97   : > { %8588 = vmatmul.mubr.msk.f32.vlgmr.msra.gmra.mrb[0].mxu0 %vm267_vm0, %v7542_v39 }
  0x98   : > { %9720 = vmatpush3.bf16.msra.mxu0 %v9717_v10  ;;  %v231_v40 = vpop.permute.xlu1 %230  ;;  %8590 = vmatprep.mubr.msk.f32.mxu0 %vm267_vm0, %v7543_v37  ;;  %v228_v41 = vpop.permute.xlu0 %227  ;;  %v569_v10 = vld [vmem:[%s13496_s2 + $0x58] sm:$0xff] }
  0x99   : > { %vm242_vm5 = vcmp.eq.s32.totalorder %v10460_v28, %v228_v41  ;;  %9722 = vmatprep.subr.bf16.mxu0 %v9721_v38  ;;  %vm243_vm6 = vcmp.eq.s32.totalorder %v10460_v28, %v231_v40  ;;  %v9733_v11 = vpack.c.bf16 %v569_v10, %v568_v9  ;;  %v901_v10 = vld [vmem:[%s13496_s2 + $0xe0] sm:$0xff] }
  0x9a   : > { %v7545_v43 = vsel %vm242_vm5, 1.0, %v10386_v31  ;;  %v7546_v46 = vsel %vm243_vm6, 1.0, %v10386_v31  ;;  %vm577_vm5 = vcmask 523264  }
  0x9b   : > { %8591 = vmatmul.mubr.msk.f32.gmra.mrb[2].mxu0 %vm267_vm0, %v7544_v42  ;;  %9734 = vmatprep.subr.bf16.mxu1 %v9733_v11 }
  0x9c   : > { %v237_v44 = vpop.permute.xlu1 %236  ;;  %8593 = vmatprep.mubr.msk.f32.mxu0 %vm267_vm0, %v7545_v43  ;;  %v234_v45 = vpop.permute.xlu0 %233  ;;  %9724 = vmatpush3.bf16.msra.mxu0 %v9721_v38  ;;  %v9749_v43 = vpack.c.bf16 %v736_v36, %v735_v35 }
  0x9d   : > { %vm244_vm7 = vcmp.eq.s32.totalorder %v10460_v28, %v234_v45  ;;  %vm245_vm8 = vcmp.eq.s32.totalorder %v10460_v28, %v237_v44  ;;  %9736 = vmatpush3.bf16.msra.mxu1 %v9733_v11  ;;  %v902_v11 = vld [vmem:[%s13496_s2 + $0xe8] sm:$0xff] }
  0x9e   : > { %v7547_v47 = vsel %vm244_vm7, 1.0, %v10386_v31  ;;  %v7548_v51 = vsel %vm245_vm8, 1.0, %v10386_v31  ;;  %9738 = vmatprep.subr.bf16.mxu1 %v9737_v14  ;;  %v9765_v12 = vpack.c.bf16 %v902_v11, %v901_v10 }
  0x9f   : > { %8594 = vmatmul.mubr.msk.f32.gmra.mrb[4].mxu0 %vm267_vm0, %v7546_v46 }
  0xa0   : > { %v3853_v48 = vpop.permute.xlu1 %3852  ;;  %8596 = vmatprep.mubr.msk.f32.mxu0 %vm267_vm0, %v7547_v47  ;;  %v3850_v49 = vpop.permute.xlu0 %3849 }
  0xa1   : > { %vm3873_vm9 = vcmp.eq.s32.totalorder %v10460_v28, %v3853_v48  ;;  %vm3872_vm10 = vcmp.eq.s32.totalorder %v10460_v28, %v3850_v49  ;;  %9740 = vmatpush3.bf16.msra.mxu1 %v9737_v14 }
  0xa2   : > { %v10501_v52 = vsel %vm3873_vm9, 1.0, %v10386_v31  ;;  %v10504_v53 = vsel %vm3872_vm10, 1.0, %v10386_v31  ;;  %9742 = vmatprep.subr.bf16.mxu1 %v9741_v17 }
  0xa3   : > { %8597 = vmatmul.mubr.msk.f32.gmra.mrb[6].mxu0 %vm267_vm0, %v7548_v51 }
  0xa4   : > { %v3859_v54 = vpop.permute.xlu1 %3858  ;;  %v3856_v55 = vpop.permute.xlu0 %3855  ;;  %8607 = vmatprep.mubr.msk.f32.mxu0 %vm397_vm11, %v196_v50 }
  0xa5   : > { %vm3875_vm12 = vcmp.eq.s32.totalorder %v10460_v28, %v3859_v54  ;;  %vm3874_vm13 = vcmp.eq.s32.totalorder %v10460_v28, %v3856_v55 }
  0xa6   : > { %v10513_v58 = vsel %vm3875_vm12, 1.0, %v10386_v31  ;;  %v10516_v59 = vsel %vm3874_vm13, 1.0, %v10386_v31 }
  0xa7   : > { %8608 = vmatmul.mubr.msk.f32.vlgmr.msra.gmra.mrb[0].mxu0 %vm397_vm11, %v197_v56 }
  0xa8   : > { %v3865_v60 = vpop.permute.xlu1 %3864  ;;  %v3862_v61 = vpop.permute.xlu0 %3861  ;;  %8610 = vmatprep.mubr.msk.f32.mxu0 %vm397_vm11, %v198_v57 }
  0xa9   : > { %vm3877_vm14 = vcmp.eq.s32.totalorder %v10460_v28, %v3865_v60  ;;  %vm3876_vm15 = vcmp.eq.s32.totalorder %v10460_v28, %v3862_v61  ;;  %v737_v61 = vld [vmem:[%s13496_s2 + $0xa8] sm:$0xff] }
  0xaa   : > { %v10525_v0 = vsel %vm3877_vm14, 1.0, %v10386_v31  ;;  %v10528_v1 = vsel %vm3876_vm15, 1.0, %v10386_v31 }
  0xab   : > { %8611 = vmatmul.mubr.msk.f32.gmra.mrb[2].mxu0 %vm397_vm11, %v199_v62  ;;  %v738_v62 = vld [vmem:[%s13496_s2 + $0xb0] sm:$0xff] }
  0xac   : > { %v3871_v2 = vpop.permute.xlu1 %3870  ;;  %v3868_v3 = vpop.permute.xlu0 %3867  ;;  %8613 = vmatprep.mubr.msk.f32.mxu0 %vm397_vm11, %v200_v63  ;;  %v9753_v63 = vpack.c.bf16 %v738_v62, %v737_v61 }
  0xad   : > { %vm3879_vm1 = vcmp.eq.s32.totalorder %v10460_v28, %v3871_v2  ;;  %vm3878_vm2 = vcmp.eq.s32.totalorder %v10460_v28, %v3868_v3  ;;  %v897_v2 = vld [vmem:[%s13496_s2 + $0xc0] sm:$0xff]  ;;  %v898_v3 = vld [vmem:[%s13496_s2 + $0xc8] sm:$0xff] }
  0xae   : > { %v10537_v6 = vsel %vm3879_vm1, 1.0, %v10386_v31  ;;  %v10540_v7 = vsel %vm3878_vm2, 1.0, %v10386_v31 }
  0xaf   : > { %8614 = vmatmul.mubr.msk.f32.gmra.mrb[4].mxu0 %vm397_vm11, %v201_v4  ;;  %v899_v4 = vld [vmem:[%s13496_s2 + $0xd0] sm:$0xff] }
  0xb0   : > { %8616 = vmatprep.mubr.msk.f32.mxu0 %vm397_vm11, %v202_v5  ;;  %v9757_v5 = vpack.c.bf16 %v898_v3, %v897_v2 }
  0xb2   : > { %9758 = vmatprep.subr.bf16.mxu0 %v9757_v5 }
  0xb3   : > { %8617 = vmatmul.mubr.msk.f32.gmra.mrb[6].mxu0 %vm397_vm11, %v203_v8  ;;  %v900_v8 = vld [vmem:[%s13496_s2 + $0xd8] sm:$0xff] }
  0xb4   : > { %v9761_v9 = vpack.c.bf16 %v900_v8, %v899_v4  ;;  %9760 = vmatpush3.bf16.msra.mxu0 %v9757_v5 }
  0xb6   : > { %9762 = vmatprep.subr.bf16.mxu0 %v9761_v9 }
  0xb8   : > { %9764 = vmatpush3.bf16.msra.mxu0 %v9761_v9 }
  0xb9   : > { %9766 = vmatprep.subr.bf16.mxu0 %v9765_v12 }
  0xbc   : > { %9768 = vmatpush3.bf16.msra.mxu0 %v9765_v12 }
 0x17a   : > { %v8609_v19 = vpop.f32.mrb[0].mxu0 }
 0x17b   : > { %v533_v20 = vadd.f32 %v8609_v19, %v7565_v18  ;;  %v488_v21 = vpop.f32.mrb[1].mxu0 }
 0x17c   : > { %v532_v22 = vadd.f32 %v7565_v18, %v488_v21 }
 0x17d   : > { %v549_v23 = vmul.f32 0.2, %v533_v20  ;;  %vm541_vm3 = vcmp.gt.f32.partialorder %v533_v20, 0.0 }
 0x17e   : > { %v8612_v26 = vpop.f32.mrb[2].mxu0  ;;  %vm540_vm4 = vcmp.gt.f32.partialorder %v532_v22, 0.0  ;;  %v548_v27 = vmul.f32 0.2, %v532_v22 }
 0x17f   : > { %v535_v28 = vadd.f32 %v8612_v26, %v7565_v18  ;;  %v498_v29 = vpop.f32.mrb[3].mxu0  ;;  %v557_v34 = vsel %vm541_vm3, %v533_v20, %v549_v23 }
 0x180   : > { %v534_v30 = vadd.f32 %v7565_v18, %v498_v29  ;;  %v556_v31 = vsel %vm540_vm4, %v532_v22, %v548_v27 }
 0x181   : > { %v551_v33 = vmul.f32 0.2, %v535_v28  ;;  %8635 = vmatprep.mubr.msk.f32.mxu1 %vm577_vm5, %v556_v31  ;;  %vm543_vm6 = vcmp.gt.f32.partialorder %v535_v28, 0.0 }
 0x182   : > { %vm542_vm7 = vcmp.gt.f32.partialorder %v534_v30, 0.0  ;;  %v550_v37 = vmul.f32 0.2, %v534_v30  ;;  %v8615_v38 = vpop.f32.mrb[4].mxu0  ;;  %8636 = vmatmul.mubr.msk.f32.vlgmr.msra.gmra.mrb[0].mxu1 %vm577_vm5, %v557_v34 }
 0x183   : > { %v537_v39 = vadd.f32 %v8615_v38, %v7565_v18  ;;  %v508_v40 = vpop.f32.mrb[5].mxu0  ;;  %9744 = vmatpush3.bf16.msra.mxu1 %v9741_v17  ;;  %v559_v45 = vsel %vm543_vm6, %v535_v28, %v551_v33 }
 0x184   : > { %v536_v41 = vadd.f32 %v7565_v18, %v508_v40  ;;  %v558_v42 = vsel %vm542_vm7, %v534_v30, %v550_v37  ;;  %9746 = vmatprep.subr.bf16.mxu1 %v9745_v32 }
 0x185   : > { %v553_v44 = vmul.f32 0.2, %v537_v39  ;;  %8638 = vmatprep.mubr.msk.f32.mxu1 %vm577_vm5, %v558_v42  ;;  %vm545_vm8 = vcmp.gt.f32.partialorder %v537_v39, 0.0 }
 0x186   : > { %vm544_vm9 = vcmp.gt.f32.partialorder %v536_v41, 0.0  ;;  %v552_v46 = vmul.f32 0.2, %v536_v41  ;;  %v8618_v47 = vpop.f32.mrb[6].mxu0  ;;  %8639 = vmatmul.mubr.msk.f32.gmra.mrb[2].mxu1 %vm577_vm5, %v559_v45 }
 0x187   : > { %v539_v48 = vadd.f32 %v8618_v47, %v7565_v18  ;;  %v518_v49 = vpop.f32.mrb[7].mxu0  ;;  %9748 = vmatpush3.bf16.msra.mxu1 %v9745_v32  ;;  %v561_v55 = vsel %vm545_vm8, %v537_v39, %v553_v44  ;;  %v904_v47 = vld [vmem:[%s13496_s2 + $0xf8] sm:$0xff] }
 0x188   : > { %v538_v50 = vadd.f32 %v7565_v18, %v518_v49  ;;  %v560_v51 = vsel %vm544_vm9, %v536_v41, %v552_v46  ;;  %9750 = vmatprep.subr.bf16.mxu1 %v9749_v43  ;;  %v903_v46 = vld [vmem:[%s13496_s2 + $0xf0] sm:$0xff]  ;;  %v1071_v49 = vld [vmem:[%s13496_s2 + $0x100] sm:$0xff] }
 0x189   : > { %v555_v54 = vmul.f32 0.2, %v539_v48  ;;  %8641 = vmatprep.mubr.msk.f32.mxu1 %vm577_vm5, %v560_v51  ;;  %vm547_vm10 = vcmp.gt.f32.partialorder %v539_v48, 0.0  ;;  %v1073_v51 = vld [vmem:[%s13496_s2 + $0x110] sm:$0xff] }
 0x18a   : > { %vm546_vm12 = vcmp.gt.f32.partialorder %v538_v50, 0.0  ;;  %v554_v56 = vmul.f32 0.2, %v538_v50  ;;  %8642 = vmatmul.mubr.msk.f32.gmra.mrb[4].mxu1 %vm577_vm5, %v561_v55  ;;  %v1074_v55 = vld [vmem:[%s13496_s2 + $0x118] sm:$0xff] }
 0x18b   : > { %9752 = vmatpush3.bf16.msra.mxu1 %v9749_v43  ;;  %v563_v60 = vsel %vm547_vm10, %v539_v48, %v555_v54  ;;  %v9769_v48 = vpack.c.bf16 %v904_v47, %v903_v46 }
 0x18c   : > { %v562_v57 = vsel %vm546_vm12, %v538_v50, %v554_v56  ;;  %9754 = vmatprep.subr.bf16.mxu1 %v9753_v63  ;;  %v1072_v50 = vld [vmem:[%s13496_s2 + $0x108] sm:$0xff]  ;;  %v9777_v56 = vpack.c.bf16 %v1074_v55, %v1073_v51 }
 0x18d   : > { %8644 = vmatprep.mubr.msk.f32.mxu1 %vm577_vm5, %v562_v57  ;;  %9770 = vmatprep.subr.bf16.mxu0 %v9769_v48  ;;  %v9773_v54 = vpack.c.bf16 %v1072_v50, %v1071_v49  ;;  %v7575_v57 = vld [vmem:[%s13496_s2 + $0xb8] ss:$0 sm:$0xff] }
 0x18e   : > { %8645 = vmatmul.mubr.msk.f32.gmra.mrb[6].mxu1 %vm577_vm5, %v563_v60  ;;  %9772 = vmatpush3.bf16.msra.mxu0 %v9769_v48 }
 0x18f   : > { %9756 = vmatpush3.bf16.msra.mxu1 %v9753_v63 }
 0x190   : > { %9774 = vmatprep.subr.bf16.mxu1 %v9773_v54 }
 0x255   : > { %v8637_v14 = vpop.f32.mrb[0].mxu1 }
 0x256   : > { %v674_v15 = vadd.f32 %v8637_v14, %v7566_v13  ;;  %v668_v16 = vpop.f32.mrb[1].mxu1 }
 0x257   : > { %v669_v17 = vadd.f32 %v7566_v13, %v668_v16 }
 0x258   : > { %v716_v18 = vmul.f32 0.2, %v674_v15  ;;  %vm708_vm13 = vcmp.gt.f32.partialorder %v674_v15, 0.0 }
 0x259   : > { %vm707_vm14 = vcmp.gt.f32.partialorder %v669_v17, 0.0  ;;  %v715_v19 = vmul.f32 0.2, %v669_v17  ;;  %v8640_v20 = vpop.f32.mrb[2].mxu1 }
 0x25a   : > { %v684_v21 = vadd.f32 %v8640_v20, %v7566_v13  ;;  %v678_v22 = vpop.f32.mrb[3].mxu1  ;;  %v724_v25 = vsel %vm708_vm13, %v674_v15, %v716_v18 }
 0x25b   : > { %v679_v23 = vadd.f32 %v7566_v13, %v678_v22  ;;  %v723_v24 = vsel %vm707_vm14, %v669_v17, %v715_v19 }
 0x25c   : > { %v718_v26 = vmul.f32 0.2, %v684_v21  ;;  %8663 = vmatprep.mubr.msk.f32.mxu1 %vm577_vm5, %v723_v24  ;;  %vm710_vm15 = vcmp.gt.f32.partialorder %v684_v21, 0.0 }
 0x25d   : > { %vm709_vm1 = vcmp.gt.f32.partialorder %v679_v23, 0.0  ;;  %v717_v27 = vmul.f32 0.2, %v679_v23  ;;  %v8643_v28 = vpop.f32.mrb[4].mxu1  ;;  %8664 = vmatmul.mubr.msk.f32.vlgmr.msra.gmra.mrb[8].mxu1 %vm577_vm5, %v724_v25 }
 0x25e   : > { %v694_v29 = vadd.f32 %v8643_v28, %v7566_v13  ;;  %v688_v30 = vpop.f32.mrb[5].mxu1  ;;  %v726_v34 = vsel %vm710_vm15, %v684_v21, %v718_v26  ;;  %9776 = vmatpush3.bf16.msra.mxu1 %v9773_v54 }
 0x25f   : > { %v689_v31 = vadd.f32 %v7566_v13, %v688_v30  ;;  %v725_v32 = vsel %vm709_vm1, %v679_v23, %v717_v27  ;;  %9778 = vmatprep.subr.bf16.mxu1 %v9777_v56 }
 0x260   : > { %v720_v33 = vmul.f32 0.2, %v694_v29  ;;  %8666 = vmatprep.mubr.msk.f32.mxu1 %vm577_vm5, %v725_v32  ;;  %vm712_vm2 = vcmp.gt.f32.partialorder %v694_v29, 0.0  ;;  %v1075_v32 = vld [vmem:[%s13496_s2 + $0x120] sm:$0xff] }
 0x261   : > { %vm711_vm3 = vcmp.gt.f32.partialorder %v689_v31, 0.0  ;;  %v719_v35 = vmul.f32 0.2, %v689_v31  ;;  %v8646_v36 = vpop.f32.mrb[6].mxu1  ;;  %8667 = vmatmul.mubr.msk.f32.gmra.mrb[10].mxu1 %vm577_vm5, %v726_v34 }
 0x262   : > { %v704_v37 = vadd.f32 %v8646_v36, %v7566_v13  ;;  %v698_v38 = vpop.f32.mrb[7].mxu1  ;;  %v728_v42 = vsel %vm712_vm2, %v694_v29, %v720_v33  ;;  %9780 = vmatpush3.bf16.msra.mxu1 %v9777_v56  ;;  %v1076_v33 = vld [vmem:[%s13496_s2 + $0x128] sm:$0xff]  ;;  %v1078_v36 = vld [vmem:[%s13496_s2 + $0x138] sm:$0xff] }
 0x263   : > { %v699_v39 = vadd.f32 %v7566_v13, %v698_v38  ;;  %v727_v40 = vsel %vm711_vm3, %v689_v31, %v719_v35  ;;  %v9781_v34 = vpack.c.bf16 %v1076_v33, %v1075_v32  ;;  %v1077_v35 = vld [vmem:[%s13496_s2 + $0x130] sm:$0xff]  ;;  %v1245_v38 = vld [vmem:[%s13496_s2 + $0x140] sm:$0xff]  ;;  %v1252_v33 = vld [vmem:[%s13496_s2 + $0x178] sm:$0xff] }
 0x264   : > { %v722_v41 = vmul.f32 0.2, %v704_v37  ;;  %8669 = vmatprep.mubr.msk.f32.mxu1 %vm577_vm5, %v727_v40  ;;  %vm714_vm4 = vcmp.gt.f32.partialorder %v704_v37, 0.0  ;;  %v1247_v40 = vld [vmem:[%s13496_s2 + $0x150] sm:$0xff] }
 0x265   : > { %vm713_vm6 = vcmp.gt.f32.partialorder %v699_v39, 0.0  ;;  %v721_v43 = vmul.f32 0.2, %v699_v39  ;;  %8670 = vmatmul.mubr.msk.f32.gmra.mrb[12].mxu1 %vm577_vm5, %v728_v42  ;;  %9782 = vmatprep.subr.bf16.mxu1 %v9781_v34  ;;  %v1248_v42 = vld [vmem:[%s13496_s2 + $0x158] sm:$0xff]  ;;  %v1251_v32 = vld [vmem:[%s13496_s2 + $0x170] sm:$0xff] }
 0x266   : > { %v730_v45 = vsel %vm714_vm4, %v704_v37, %v722_v41  ;;  %9784 = vmatpush3.bf16.msra.mxu1 %v9781_v34  ;;  %v9785_v37 = vpack.c.bf16 %v1078_v36, %v1077_v35  ;;  %v9801_v34 = vpack.c.bf16 %v1252_v33, %v1251_v32  ;;  %v1419_v35 = vld [vmem:[%s13496_s2 + $0x180] sm:$0xff]  ;;  %v1420_v36 = vld [vmem:[%s13496_s2 + $0x188] sm:$0xff] }
 0x267   : > { %v729_v44 = vsel %vm713_vm6, %v699_v39, %v721_v43  ;;  %v1246_v39 = vld [vmem:[%s13496_s2 + $0x148] sm:$0xff]  ;;  %v9793_v43 = vpack.c.bf16 %v1248_v42, %v1247_v40  ;;  %v1593_v32 = vld [vmem:[%s13496_s2 + $0x1c0] sm:$0xff] }
 0x268   : > { %8672 = vmatprep.mubr.msk.f32.mxu1 %vm577_vm5, %v729_v44  ;;  %9786 = vmatprep.subr.bf16.mxu1 %v9785_v37  ;;  %v9789_v41 = vpack.c.bf16 %v1246_v39, %v1245_v38  ;;  %v7584_v44 = vld [vmem:[%s13496_s2 + $0x4c0] ss:$0 sm:$0xff]  ;;  %v9805_v38 = vpack.c.bf16 %v1420_v36, %v1419_v35  ;;  %v1422_v39 = vld [vmem:[%s13496_s2 + $0x198] sm:$0xff]  ;;  %v1594_v33 = vld [vmem:[%s13496_s2 + $0x1c8] sm:$0xff] }
 0x269   : > { %8673 = vmatmul.mubr.msk.f32.gmra.mrb[14].mxu1 %vm577_vm5, %v730_v45  ;;  %v9821_v35 = vpack.c.bf16 %v1594_v33, %v1593_v32  ;;  %v1596_v36 = vld [vmem:[%s13496_s2 + $0x1d8] sm:$0xff] }
 0x26a   : > { %9788 = vmatpush3.bf16.msra.mxu1 %v9785_v37  ;;  %9790 = vmatprep.subr.bf16.mxu0 %v9789_v41  ;;  %v1421_v37 = vld [vmem:[%s13496_s2 + $0x190] sm:$0xff]  ;;  %v1770_v33 = vld [vmem:[%s13496_s2 + $0x218] sm:$0xff] }
 0x26b   : > { %v9809_v40 = vpack.c.bf16 %v1422_v39, %v1421_v37  ;;  %9806 = vmatprep.subr.bf16.mxu1 %v9805_v38 }
 0x330   : > { %v8665_v60 = vpop.f32.mrb[8].mxu1 }
 0x331   : > { %v10643_v61 = vadd.f32 %v8665_v60, %v7575_v57  ;;  %v834_v62 = vpop.f32.mrb[9].mxu1 }
 0x332   : > { %v10645_v63 = vadd.f32 %v7575_v57, %v834_v62 }
 0x333   : > { %v882_v2 = vmul.f32 0.2, %v10643_v61  ;;  %vm874_vm7 = vcmp.gt.f32.partialorder %v10643_v61, 0.0 }
 0x334   : > { %v8668_v3 = vpop.f32.mrb[10].mxu1  ;;  %vm873_vm8 = vcmp.gt.f32.partialorder %v10645_v63, 0.0  ;;  %v881_v4 = vmul.f32 0.2, %v10645_v63 }
 0x335   : > { %v10651_v5 = vadd.f32 %v8668_v3, %v7575_v57  ;;  %v844_v8 = vpop.f32.mrb[11].mxu1  ;;  %v890_v11 = vsel %vm874_vm7, %v10643_v61, %v882_v2 }
 0x336   : > { %v10653_v9 = vadd.f32 %v7575_v57, %v844_v8  ;;  %v889_v10 = vsel %vm873_vm8, %v10645_v63, %v881_v4 }
 0x337   : > { %8691 = vmatprep.mubr.msk.f32.mxu0 %vm577_vm5, %v889_v10  ;;  %v884_v12 = vmul.f32 0.2, %v10651_v5  ;;  %vm876_vm10 = vcmp.gt.f32.partialorder %v10651_v5, 0.0 }
 0x338   : > { %v8671_v13 = vpop.f32.mrb[12].mxu1  ;;  %8692 = vmatmul.mubr.msk.f32.vlgmr.msra.gmra.mrb[8].mxu0 %vm577_vm5, %v890_v11  ;;  %vm875_vm9 = vcmp.gt.f32.partialorder %v10653_v9, 0.0  ;;  %v883_v14 = vmul.f32 0.2, %v10653_v9 }
 0x339   : > { %v10663_v15 = vadd.f32 %v8671_v13, %v7575_v57  ;;  %v854_v16 = vpop.f32.mrb[13].mxu1  ;;  %v892_v19 = vsel %vm876_vm10, %v10651_v5, %v884_v12  ;;  %9792 = vmatpush3.bf16.msra.mxu0 %v9789_v41  ;;  %v7593_v41 = vld [vmem:[%s13496_s2 + $0x4c8] ss:$0 sm:$0xff] }
 0x33a   : > { %v10665_v17 = vadd.f32 %v7575_v57, %v854_v16  ;;  %v891_v18 = vsel %vm875_vm9, %v10653_v9, %v883_v14  ;;  %9794 = vmatprep.subr.bf16.mxu0 %v9793_v43 }
 0x33b   : > { %8694 = vmatprep.mubr.msk.f32.mxu0 %vm577_vm5, %v891_v18  ;;  %v886_v20 = vmul.f32 0.2, %v10663_v15  ;;  %vm878_vm13 = vcmp.gt.f32.partialorder %v10663_v15, 0.0 }
 0x33c   : > { %v8674_v21 = vpop.f32.mrb[14].mxu1  ;;  %8695 = vmatmul.mubr.msk.f32.gmra.mrb[10].mxu0 %vm577_vm5, %v892_v19  ;;  %vm877_vm12 = vcmp.gt.f32.partialorder %v10665_v17, 0.0  ;;  %v885_v22 = vmul.f32 0.2, %v10665_v17 }
 0x33d   : > { %v10675_v23 = vadd.f32 %v8674_v21, %v7575_v57  ;;  %v864_v24 = vpop.f32.mrb[15].mxu1  ;;  %v894_v27 = vsel %vm878_vm13, %v10663_v15, %v886_v20  ;;  %9796 = vmatpush3.bf16.msra.mxu0 %v9793_v43 }
 0x33e   : > { %v10677_v25 = vadd.f32 %v7575_v57, %v864_v24  ;;  %v893_v26 = vsel %vm877_vm12, %v10665_v17, %v885_v22 }
 0x33f   : > { %8697 = vmatprep.mubr.msk.f32.mxu0 %vm577_vm5, %v893_v26  ;;  %v888_v28 = vmul.f32 0.2, %v10675_v23  ;;  %vm880_vm15 = vcmp.gt.f32.partialorder %v10675_v23, 0.0 }
 0x340   : > { %8698 = vmatmul.mubr.msk.f32.gmra.mrb[12].mxu0 %vm577_vm5, %v894_v27  ;;  %vm879_vm14 = vcmp.gt.f32.partialorder %v10677_v25, 0.0  ;;  %v887_v29 = vmul.f32 0.2, %v10677_v25 }
 0x341   : > { %v896_v31 = vsel %vm880_vm15, %v10675_v23, %v888_v28 }
 0x342   : > { %v895_v30 = vsel %vm879_vm14, %v10677_v25, %v887_v29  ;;  %v1249_v29 = vld [vmem:[%s13496_s2 + $0x160] sm:$0xff] }
 0x343   : > { %8700 = vmatprep.mubr.msk.f32.mxu0 %vm577_vm5, %v895_v30  ;;  %v1250_v30 = vld [vmem:[%s13496_s2 + $0x168] sm:$0xff] }
 0x344   : > { %8701 = vmatmul.mubr.msk.f32.gmra.mrb[14].mxu0 %vm577_vm5, %v896_v31  ;;  %v9797_v31 = vpack.c.bf16 %v1250_v30, %v1249_v29  ;;  %v1425_v29 = vld [vmem:[%s13496_s2 + $0x1b0] sm:$0xff]  ;;  %v1426_v30 = vld [vmem:[%s13496_s2 + $0x1b8] sm:$0xff] }
 0x346   : > { %9798 = vmatprep.subr.bf16.mxu0 %v9797_v31 }
 0x347   : > { %9800 = vmatpush3.bf16.msra.mxu0 %v9797_v31  ;;  %v9817_v31 = vpack.c.bf16 %v1426_v30, %v1425_v29  ;;  %v1767_v29 = vld [vmem:[%s13496_s2 + $0x200] sm:$0xff]  ;;  %v1768_v30 = vld [vmem:[%s13496_s2 + $0x208] sm:$0xff] }
 0x348   : > { %9802 = vmatprep.subr.bf16.mxu0 %v9801_v34  ;;  %v9837_v32 = vpack.c.bf16 %v1768_v30, %v1767_v29  ;;  %v1944_v30 = vld [vmem:[%s13496_s2 + $0x258] sm:$0xff] }
 0x34b   : > { %9804 = vmatpush3.bf16.msra.mxu0 %v9801_v34  ;;  %v1595_v34 = vld [vmem:[%s13496_s2 + $0x1d0] sm:$0xff] }
 0x34c   : > { %v9825_v37 = vpack.c.bf16 %v1596_v36, %v1595_v34  ;;  %9822 = vmatprep.subr.bf16.mxu0 %v9821_v35 }
 0x40b   : > { %v8693_v45 = vpop.f32.mrb[8].mxu0 }
 0x40c   : > { %v1006_v46 = vadd.f32 %v8693_v45, %v7584_v44  ;;  %v1000_v47 = vpop.f32.mrb[9].mxu0 }
 0x40d   : > { %v1001_v48 = vadd.f32 %v7584_v44, %v1000_v47 }
 0x40e   : > { %v10719_v49 = vadd.f32 %v1006_v46, %v10643_v61 }
 0x40f   : > { %v10722_v50 = vadd.f32 %v1001_v48, %v10645_v63  ;;  %v8696_v51 = vpop.f32.mrb[10].mxu0 }
 0x410   : > { %v1056_v54 = vmul.f32 0.2, %v10719_v49  ;;  %v1016_v55 = vadd.f32 %v8696_v51, %v7584_v44  ;;  %v1010_v56 = vpop.f32.mrb[11].mxu0  ;;  %vm1048_vm1 = vcmp.gt.f32.partialorder %v10719_v49, 0.0 }
 0x411   : > { %v1011_v57 = vadd.f32 %v7584_v44, %v1010_v56  ;;  %vm1047_vm2 = vcmp.gt.f32.partialorder %v10722_v50, 0.0  ;;  %v1055_v60 = vmul.f32 0.2, %v10722_v50 }
 0x412   : > { %v10729_v62 = vadd.f32 %v1016_v55, %v10651_v5  ;;  %v1064_v8 = vsel %vm1048_vm1, %v10719_v49, %v1056_v54 }
 0x413   : > { %v10732_v61 = vadd.f32 %v1011_v57, %v10653_v9  ;;  %v8699_v63 = vpop.f32.mrb[12].mxu0  ;;  %v1063_v2 = vsel %vm1047_vm2, %v10722_v50, %v1055_v60 }
 0x414   : > { %v1026_v3 = vadd.f32 %v8699_v63, %v7584_v44  ;;  %v1020_v4 = vpop.f32.mrb[13].mxu0  ;;  %8719 = vmatprep.mubr.msk.f32.mxu1 %vm577_vm5, %v1063_v2  ;;  %v1058_v10 = vmul.f32 0.2, %v10729_v62  ;;  %vm1050_vm4 = vcmp.gt.f32.partialorder %v10729_v62, 0.0 }
 0x415   : > { %v1021_v11 = vadd.f32 %v7584_v44, %v1020_v4  ;;  %8720 = vmatmul.mubr.msk.f32.vlgmr.msra.gmra.mrb[16].mxu1 %vm577_vm5, %v1064_v8  ;;  %vm1049_vm3 = vcmp.gt.f32.partialorder %v10732_v61, 0.0  ;;  %v1057_v5 = vmul.f32 0.2, %v10732_v61 }
 0x416   : > { %v10743_v9 = vadd.f32 %v1026_v3, %v10663_v15  ;;  %v1066_v19 = vsel %vm1050_vm4, %v10729_v62, %v1058_v10  ;;  %9808 = vmatpush3.bf16.msra.mxu1 %v9805_v38  ;;  %v7602_v38 = vld [vmem:[%s13496_s2 + $0x4d0] ss:$0 sm:$0xff] }
 0x417   : > { %v10746_v12 = vadd.f32 %v1021_v11, %v10665_v17  ;;  %v8702_v13 = vpop.f32.mrb[14].mxu0  ;;  %v1065_v14 = vsel %vm1049_vm3, %v10732_v61, %v1057_v5  ;;  %9810 = vmatprep.subr.bf16.mxu1 %v9809_v40 }
 0x418   : > { %v1036_v16 = vadd.f32 %v8702_v13, %v7584_v44  ;;  %v1030_v18 = vpop.f32.mrb[15].mxu0  ;;  %8722 = vmatprep.mubr.msk.f32.mxu1 %vm577_vm5, %v1065_v14  ;;  %v1060_v20 = vmul.f32 0.2, %v10743_v9  ;;  %vm1052_vm7 = vcmp.gt.f32.partialorder %v10743_v9, 0.0 }
 0x419   : > { %v1031_v21 = vadd.f32 %v7584_v44, %v1030_v18  ;;  %8723 = vmatmul.mubr.msk.f32.gmra.mrb[18].mxu1 %vm577_vm5, %v1066_v19  ;;  %vm1051_vm6 = vcmp.gt.f32.partialorder %v10746_v12, 0.0  ;;  %v1059_v15 = vmul.f32 0.2, %v10746_v12 }
 0x41a   : > { %v10757_v17 = vadd.f32 %v1036_v16, %v10675_v23  ;;  %v1068_v26 = vsel %vm1052_vm7, %v10743_v9, %v1060_v20  ;;  %9812 = vmatpush3.bf16.msra.mxu1 %v9809_v40 }
 0x41b   : > { %v10760_v22 = vadd.f32 %v1031_v21, %v10677_v25  ;;  %v1067_v24 = vsel %vm1051_vm6, %v10746_v12, %v1059_v15 }
 0x41c   : > { %8725 = vmatprep.mubr.msk.f32.mxu1 %vm577_vm5, %v1067_v24  ;;  %v1062_v27 = vmul.f32 0.2, %v10757_v17  ;;  %vm1054_vm9 = vcmp.gt.f32.partialorder %v10757_v17, 0.0 }
 0x41d   : > { %8726 = vmatmul.mubr.msk.f32.gmra.mrb[20].mxu1 %vm577_vm5, %v1068_v26  ;;  %vm1053_vm8 = vcmp.gt.f32.partialorder %v10760_v22, 0.0  ;;  %v1061_v28 = vmul.f32 0.2, %v10760_v22 }
 0x41e   : > { %v1070_v25 = vsel %vm1054_vm9, %v10757_v17, %v1062_v27 }
 0x41f   : > { %v1069_v23 = vsel %vm1053_vm8, %v10760_v22, %v1061_v28  ;;  %v1423_v28 = vld [vmem:[%s13496_s2 + $0x1a0] sm:$0xff] }
 0x420   : > { %8728 = vmatprep.mubr.msk.f32.mxu1 %vm577_vm5, %v1069_v23  ;;  %v1424_v23 = vld [vmem:[%s13496_s2 + $0x1a8] sm:$0xff] }
 0x421   : > { %8729 = vmatmul.mubr.msk.f32.gmra.mrb[22].mxu1 %vm577_vm5, %v1070_v25  ;;  %v9813_v25 = vpack.c.bf16 %v1424_v23, %v1423_v28  ;;  %v1599_v28 = vld [vmem:[%s13496_s2 + $0x1f0] sm:$0xff]  ;;  %v1600_v23 = vld [vmem:[%s13496_s2 + $0x1f8] sm:$0xff] }
 0x423   : > { %9814 = vmatprep.subr.bf16.mxu1 %v9813_v25 }
 0x424   : > { %9816 = vmatpush3.bf16.msra.mxu1 %v9813_v25  ;;  %v9833_v25 = vpack.c.bf16 %v1600_v23, %v1599_v28  ;;  %v1941_v28 = vld [vmem:[%s13496_s2 + $0x240] sm:$0xff]  ;;  %v1942_v23 = vld [vmem:[%s13496_s2 + $0x248] sm:$0xff] }
 0x425   : > { %9818 = vmatprep.subr.bf16.mxu1 %v9817_v31  ;;  %v9853_v29 = vpack.c.bf16 %v1942_v23, %v1941_v28  ;;  %v2118_v23 = vld [vmem:[%s13496_s2 + $0x298] sm:$0xff] }
 0x428   : > { %9820 = vmatpush3.bf16.msra.mxu1 %v9817_v31  ;;  %v1769_v31 = vld [vmem:[%s13496_s2 + $0x210] sm:$0xff] }
 0x429   : > { %v9841_v34 = vpack.c.bf16 %v1770_v33, %v1769_v31  ;;  %9838 = vmatprep.subr.bf16.mxu1 %v9837_v32 }
 0x4e8   : > { %v8721_v42 = vpop.f32.mrb[16].mxu1 }
 0x4e9   : > { %v1180_v43 = vadd.f32 %v8721_v42, %v7593_v41  ;;  %v1174_v44 = vpop.f32.mrb[17].mxu1 }
 0x4ea   : > { %v1175_v45 = vadd.f32 %v7593_v41, %v1174_v44 }
 0x4eb   : > { %v10802_v46 = vadd.f32 %v1180_v43, %v10719_v49 }
 0x4ec   : > { %v10805_v47 = vadd.f32 %v1175_v45, %v10722_v50  ;;  %v8724_v48 = vpop.f32.mrb[18].mxu1 }
 0x4ed   : > { %v1230_v51 = vmul.f32 0.2, %v10802_v46  ;;  %v1190_v54 = vadd.f32 %v8724_v48, %v7593_v41  ;;  %v1184_v55 = vpop.f32.mrb[19].mxu1  ;;  %vm1222_vm10 = vcmp.gt.f32.partialorder %v10802_v46, 0.0 }
 0x4ee   : > { %v1185_v56 = vadd.f32 %v7593_v41, %v1184_v55  ;;  %vm1221_vm12 = vcmp.gt.f32.partialorder %v10805_v47, 0.0  ;;  %v1229_v57 = vmul.f32 0.2, %v10805_v47 }
 0x4ef   : > { %v10812_v60 = vadd.f32 %v1190_v54, %v10729_v62  ;;  %v1238_v4 = vsel %vm1222_vm10, %v10802_v46, %v1230_v51 }
 0x4f0   : > { %v10815_v49 = vadd.f32 %v1185_v56, %v10732_v61  ;;  %v8727_v50 = vpop.f32.mrb[20].mxu1  ;;  %v1237_v63 = vsel %vm1221_vm12, %v10805_v47, %v1229_v57 }
 0x4f1   : > { %v1200_v2 = vadd.f32 %v8727_v50, %v7593_v41  ;;  %v1194_v3 = vpop.f32.mrb[21].mxu1  ;;  %8747 = vmatprep.mubr.msk.f32.mxu0 %vm577_vm5, %v1237_v63  ;;  %v1232_v8 = vmul.f32 0.2, %v10812_v60  ;;  %vm1224_vm14 = vcmp.gt.f32.partialorder %v10812_v60, 0.0 }
 0x4f2   : > { %v1195_v10 = vadd.f32 %v7593_v41, %v1194_v3  ;;  %8748 = vmatmul.mubr.msk.f32.vlgmr.msra.gmra.mrb[16].mxu0 %vm577_vm5, %v1238_v4  ;;  %vm1223_vm13 = vcmp.gt.f32.partialorder %v10815_v49, 0.0  ;;  %v1231_v62 = vmul.f32 0.2, %v10815_v49 }
 0x4f3   : > { %v10826_v61 = vadd.f32 %v1200_v2, %v10743_v9  ;;  %v1240_v18 = vsel %vm1224_vm14, %v10812_v60, %v1232_v8  ;;  %9824 = vmatpush3.bf16.msra.mxu0 %v9821_v35  ;;  %v7611_v35 = vld [vmem:[%s13496_s2 + $0x4d8] ss:$0 sm:$0xff] }
 0x4f4   : > { %v10829_v11 = vadd.f32 %v1195_v10, %v10746_v12  ;;  %v8730_v5 = vpop.f32.mrb[22].mxu1  ;;  %v1239_v13 = vsel %vm1223_vm13, %v10815_v49, %v1231_v62  ;;  %9826 = vmatprep.subr.bf16.mxu0 %v9825_v37 }
 0x4f5   : > { %v1210_v14 = vadd.f32 %v8730_v5, %v7593_v41  ;;  %v1204_v16 = vpop.f32.mrb[23].mxu1  ;;  %8750 = vmatprep.mubr.msk.f32.mxu0 %vm577_vm5, %v1239_v13  ;;  %v1234_v19 = vmul.f32 0.2, %v10826_v61  ;;  %vm1226_vm1 = vcmp.gt.f32.partialorder %v10826_v61, 0.0 }
 0x4f6   : > { %v1205_v20 = vadd.f32 %v7593_v41, %v1204_v16  ;;  %8751 = vmatmul.mubr.msk.f32.gmra.mrb[18].mxu0 %vm577_vm5, %v1240_v18  ;;  %vm1225_vm15 = vcmp.gt.f32.partialorder %v10829_v11, 0.0  ;;  %v1233_v9 = vmul.f32 0.2, %v10829_v11 }
 0x4f7   : > { %v10840_v12 = vadd.f32 %v1210_v14, %v10757_v17  ;;  %v1242_v24 = vsel %vm1226_vm1, %v10826_v61, %v1234_v19  ;;  %9828 = vmatpush3.bf16.msra.mxu0 %v9825_v37 }
 0x4f8   : > { %v10843_v21 = vadd.f32 %v1205_v20, %v10760_v22  ;;  %v1241_v15 = vsel %vm1225_vm15, %v10829_v11, %v1233_v9 }
 0x4f9   : > { %8753 = vmatprep.mubr.msk.f32.mxu0 %vm577_vm5, %v1241_v15  ;;  %v1236_v26 = vmul.f32 0.2, %v10840_v12  ;;  %vm1228_vm3 = vcmp.gt.f32.partialorder %v10840_v12, 0.0 }
 0x4fa   : > { %8754 = vmatmul.mubr.msk.f32.gmra.mrb[20].mxu0 %vm577_vm5, %v1242_v24  ;;  %vm1227_vm2 = vcmp.gt.f32.partialorder %v10843_v21, 0.0  ;;  %v1235_v27 = vmul.f32 0.2, %v10843_v21 }
 0x4fb   : > { %v1244_v22 = vsel %vm1228_vm3, %v10840_v12, %v1236_v26 }
 0x4fc   : > { %v1243_v17 = vsel %vm1227_vm2, %v10843_v21, %v1235_v27  ;;  %v1597_v27 = vld [vmem:[%s13496_s2 + $0x1e0] sm:$0xff] }
 0x4fd   : > { %8756 = vmatprep.mubr.msk.f32.mxu0 %vm577_vm5, %v1243_v17  ;;  %v1598_v17 = vld [vmem:[%s13496_s2 + $0x1e8] sm:$0xff] }
 0x4fe   : > { %8757 = vmatmul.mubr.msk.f32.gmra.mrb[22].mxu0 %vm577_vm5, %v1244_v22  ;;  %v9829_v22 = vpack.c.bf16 %v1598_v17, %v1597_v27  ;;  %v1773_v27 = vld [vmem:[%s13496_s2 + $0x230] sm:$0xff]  ;;  %v1774_v17 = vld [vmem:[%s13496_s2 + $0x238] sm:$0xff] }
 0x500   : > { %9830 = vmatprep.subr.bf16.mxu0 %v9829_v22 }
 0x501   : > { %9832 = vmatpush3.bf16.msra.mxu0 %v9829_v22  ;;  %v9849_v22 = vpack.c.bf16 %v1774_v17, %v1773_v27  ;;  %v2115_v27 = vld [vmem:[%s13496_s2 + $0x280] sm:$0xff]  ;;  %v2116_v17 = vld [vmem:[%s13496_s2 + $0x288] sm:$0xff] }
 0x502   : > { %9834 = vmatprep.subr.bf16.mxu0 %v9833_v25  ;;  %v9869_v28 = vpack.c.bf16 %v2116_v17, %v2115_v27  ;;  %v2292_v17 = vld [vmem:[%s13496_s2 + $0x2d8] sm:$0xff] }
 0x505   : > { %9836 = vmatpush3.bf16.msra.mxu0 %v9833_v25  ;;  %v1943_v25 = vld [vmem:[%s13496_s2 + $0x250] sm:$0xff] }
 0x506   : > { %v9857_v31 = vpack.c.bf16 %v1944_v30, %v1943_v25  ;;  %9854 = vmatprep.subr.bf16.mxu0 %v9853_v29 }
 0x5c5   : > { %v8749_v39 = vpop.f32.mrb[16].mxu0 }
 0x5c6   : > { %v1354_v40 = vadd.f32 %v8749_v39, %v7602_v38  ;;  %v1348_v41 = vpop.f32.mrb[17].mxu0 }
 0x5c7   : > { %v1349_v42 = vadd.f32 %v7602_v38, %v1348_v41 }
 0x5c8   : > { %v10885_v43 = vadd.f32 %v1354_v40, %v10802_v46 }
 0x5c9   : > { %v10888_v44 = vadd.f32 %v1349_v42, %v10805_v47  ;;  %v8752_v45 = vpop.f32.mrb[18].mxu0 }
 0x5ca   : > { %v1404_v48 = vmul.f32 0.2, %v10885_v43  ;;  %v1364_v51 = vadd.f32 %v8752_v45, %v7602_v38  ;;  %v1358_v54 = vpop.f32.mrb[19].mxu0  ;;  %vm1396_vm4 = vcmp.gt.f32.partialorder %v10885_v43, 0.0 }
 0x5cb   : > { %v1359_v55 = vadd.f32 %v7602_v38, %v1358_v54  ;;  %vm1395_vm6 = vcmp.gt.f32.partialorder %v10888_v44, 0.0  ;;  %v1403_v56 = vmul.f32 0.2, %v10888_v44 }
 0x5cc   : > { %v10895_v57 = vadd.f32 %v1364_v51, %v10812_v60  ;;  %v1412_v3 = vsel %vm1396_vm4, %v10885_v43, %v1404_v48 }
 0x5cd   : > { %v10898_v46 = vadd.f32 %v1359_v55, %v10815_v49  ;;  %v8755_v47 = vpop.f32.mrb[20].mxu0  ;;  %v1411_v50 = vsel %vm1395_vm6, %v10888_v44, %v1403_v56 }
 0x5ce   : > { %v1374_v63 = vadd.f32 %v8755_v47, %v7602_v38  ;;  %v1368_v2 = vpop.f32.mrb[21].mxu0  ;;  %8775 = vmatprep.mubr.msk.f32.mxu1 %vm577_vm5, %v1411_v50  ;;  %v1406_v4 = vmul.f32 0.2, %v10895_v57  ;;  %vm1398_vm8 = vcmp.gt.f32.partialorder %v10895_v57, 0.0 }
 0x5cf   : > { %v1369_v8 = vadd.f32 %v7602_v38, %v1368_v2  ;;  %8776 = vmatmul.mubr.msk.f32.vlgmr.msra.gmra.mrb[24].mxu1 %vm577_vm5, %v1412_v3  ;;  %vm1397_vm7 = vcmp.gt.f32.partialorder %v10898_v46, 0.0  ;;  %v1405_v60 = vmul.f32 0.2, %v10898_v46 }
 0x5d0   : > { %v10909_v49 = vadd.f32 %v1374_v63, %v10826_v61  ;;  %v1414_v16 = vsel %vm1398_vm8, %v10895_v57, %v1406_v4  ;;  %9840 = vmatpush3.bf16.msra.mxu1 %v9837_v32  ;;  %v7620_v32 = vld [vmem:[%s13496_s2 + $0x4e0] ss:$0 sm:$0xff] }
 0x5d1   : > { %v10912_v10 = vadd.f32 %v1369_v8, %v10829_v11  ;;  %v8758_v62 = vpop.f32.mrb[22].mxu0  ;;  %v1413_v5 = vsel %vm1397_vm7, %v10898_v46, %v1405_v60  ;;  %9842 = vmatprep.subr.bf16.mxu1 %v9841_v34 }
 0x5d2   : > { %v1384_v13 = vadd.f32 %v8758_v62, %v7602_v38  ;;  %v1378_v14 = vpop.f32.mrb[23].mxu0  ;;  %8778 = vmatprep.mubr.msk.f32.mxu1 %vm577_vm5, %v1413_v5  ;;  %v1408_v18 = vmul.f32 0.2, %v10909_v49  ;;  %vm1400_vm10 = vcmp.gt.f32.partialorder %v10909_v49, 0.0 }
 0x5d3   : > { %v1379_v19 = vadd.f32 %v7602_v38, %v1378_v14  ;;  %8779 = vmatmul.mubr.msk.f32.gmra.mrb[26].mxu1 %vm577_vm5, %v1414_v16  ;;  %vm1399_vm9 = vcmp.gt.f32.partialorder %v10912_v10, 0.0  ;;  %v1407_v61 = vmul.f32 0.2, %v10912_v10 }
 0x5d4   : > { %v10923_v11 = vadd.f32 %v1384_v13, %v10840_v12  ;;  %v1416_v15 = vsel %vm1400_vm10, %v10909_v49, %v1408_v18  ;;  %9844 = vmatpush3.bf16.msra.mxu1 %v9841_v34 }
 0x5d5   : > { %v10926_v20 = vadd.f32 %v1379_v19, %v10843_v21  ;;  %v1415_v9 = vsel %vm1399_vm9, %v10912_v10, %v1407_v61 }
 0x5d6   : > { %8781 = vmatprep.mubr.msk.f32.mxu1 %vm577_vm5, %v1415_v9  ;;  %v1410_v24 = vmul.f32 0.2, %v10923_v11  ;;  %vm1402_vm13 = vcmp.gt.f32.partialorder %v10923_v11, 0.0 }
 0x5d7   : > { %8782 = vmatmul.mubr.msk.f32.gmra.mrb[28].mxu1 %vm577_vm5, %v1416_v15  ;;  %vm1401_vm12 = vcmp.gt.f32.partialorder %v10926_v20, 0.0  ;;  %v1409_v26 = vmul.f32 0.2, %v10926_v20 }
 0x5d8   : > { %v1418_v21 = vsel %vm1402_vm13, %v10923_v11, %v1410_v24 }
 0x5d9   : > { %v1417_v12 = vsel %vm1401_vm12, %v10926_v20, %v1409_v26  ;;  %v1771_v26 = vld [vmem:[%s13496_s2 + $0x220] sm:$0xff] }
 0x5da   : > { %8784 = vmatprep.mubr.msk.f32.mxu1 %vm577_vm5, %v1417_v12  ;;  %v1772_v12 = vld [vmem:[%s13496_s2 + $0x228] sm:$0xff] }
 0x5db   : > { %8785 = vmatmul.mubr.msk.f32.gmra.mrb[30].mxu1 %vm577_vm5, %v1418_v21  ;;  %v9845_v21 = vpack.c.bf16 %v1772_v12, %v1771_v26  ;;  %v1947_v26 = vld [vmem:[%s13496_s2 + $0x270] sm:$0xff]  ;;  %v1948_v12 = vld [vmem:[%s13496_s2 + $0x278] sm:$0xff] }
 0x5dd   : > { %9846 = vmatprep.subr.bf16.mxu1 %v9845_v21 }
 0x5de   : > { %9848 = vmatpush3.bf16.msra.mxu1 %v9845_v21  ;;  %v9865_v21 = vpack.c.bf16 %v1948_v12, %v1947_v26  ;;  %v2289_v26 = vld [vmem:[%s13496_s2 + $0x2c0] sm:$0xff]  ;;  %v2290_v12 = vld [vmem:[%s13496_s2 + $0x2c8] sm:$0xff] }
 0x5df   : > { %9850 = vmatprep.subr.bf16.mxu1 %v9849_v22  ;;  %v9885_v27 = vpack.c.bf16 %v2290_v12, %v2289_v26  ;;  %v2466_v12 = vld [vmem:[%s13496_s2 + $0x318] sm:$0xff] }
 0x5e2   : > { %9852 = vmatpush3.bf16.msra.mxu1 %v9849_v22  ;;  %v2117_v22 = vld [vmem:[%s13496_s2 + $0x290] sm:$0xff] }
 0x5e3   : > { %v9873_v25 = vpack.c.bf16 %v2118_v23, %v2117_v22  ;;  %9870 = vmatprep.subr.bf16.mxu1 %v9869_v28 }
 0x6a2   : > { %v8777_v36 = vpop.f32.mrb[24].mxu1 }
 0x6a3   : > { %v1528_v37 = vadd.f32 %v8777_v36, %v7611_v35  ;;  %v1522_v38 = vpop.f32.mrb[25].mxu1 }
 0x6a4   : > { %v1523_v39 = vadd.f32 %v7611_v35, %v1522_v38 }
 0x6a5   : > { %v10968_v40 = vadd.f32 %v1528_v37, %v10885_v43 }
 0x6a6   : > { %v10971_v41 = vadd.f32 %v1523_v39, %v10888_v44  ;;  %v8780_v42 = vpop.f32.mrb[26].mxu1 }
 0x6a7   : > { %v1578_v45 = vmul.f32 0.2, %v10968_v40  ;;  %v1538_v48 = vadd.f32 %v8780_v42, %v7611_v35  ;;  %v1532_v51 = vpop.f32.mrb[27].mxu1  ;;  %vm1570_vm14 = vcmp.gt.f32.partialorder %v10968_v40, 0.0 }
 0x6a8   : > { %v1533_v54 = vadd.f32 %v7611_v35, %v1532_v51  ;;  %vm1569_vm15 = vcmp.gt.f32.partialorder %v10971_v41, 0.0  ;;  %v1577_v55 = vmul.f32 0.2, %v10971_v41 }
 0x6a9   : > { %v10978_v56 = vadd.f32 %v1538_v48, %v10895_v57  ;;  %v1586_v2 = vsel %vm1570_vm14, %v10968_v40, %v1578_v45 }
 0x6aa   : > { %v10981_v43 = vadd.f32 %v1533_v54, %v10898_v46  ;;  %v8783_v44 = vpop.f32.mrb[28].mxu1  ;;  %v1585_v47 = vsel %vm1569_vm15, %v10971_v41, %v1577_v55 }
 0x6ab   : > { %v1548_v50 = vadd.f32 %v8783_v44, %v7611_v35  ;;  %v1542_v63 = vpop.f32.mrb[29].mxu1  ;;  %8803 = vmatprep.mubr.msk.f32.mxu0 %vm577_vm5, %v1585_v47  ;;  %v1580_v3 = vmul.f32 0.2, %v10978_v56  ;;  %vm1572_vm2 = vcmp.gt.f32.partialorder %v10978_v56, 0.0 }
 0x6ac   : > { %v1543_v4 = vadd.f32 %v7611_v35, %v1542_v63  ;;  %8804 = vmatmul.mubr.msk.f32.vlgmr.msra.gmra.mrb[24].mxu0 %vm577_vm5, %v1586_v2  ;;  %vm1571_vm1 = vcmp.gt.f32.partialorder %v10981_v43, 0.0  ;;  %v1579_v57 = vmul.f32 0.2, %v10981_v43 }
 0x6ad   : > { %v10992_v46 = vadd.f32 %v1548_v50, %v10909_v49  ;;  %v1588_v14 = vsel %vm1572_vm2, %v10978_v56, %v1580_v3  ;;  %9856 = vmatpush3.bf16.msra.mxu0 %v9853_v29  ;;  %v7629_v29 = vld [vmem:[%s13496_s2 + $0x4e8] ss:$0 sm:$0xff] }
 0x6ae   : > { %v10995_v8 = vadd.f32 %v1543_v4, %v10912_v10  ;;  %v8786_v60 = vpop.f32.mrb[30].mxu1  ;;  %v1587_v62 = vsel %vm1571_vm1, %v10981_v43, %v1579_v57  ;;  %9858 = vmatprep.subr.bf16.mxu0 %v9857_v31 }
 0x6af   : > { %v1558_v5 = vadd.f32 %v8786_v60, %v7611_v35  ;;  %v1552_v13 = vpop.f32.mrb[31].mxu1  ;;  %8806 = vmatprep.mubr.msk.f32.mxu0 %vm577_vm5, %v1587_v62  ;;  %v1582_v16 = vmul.f32 0.2, %v10992_v46  ;;  %vm1574_vm4 = vcmp.gt.f32.partialorder %v10992_v46, 0.0 }
 0x6b0   : > { %v1553_v18 = vadd.f32 %v7611_v35, %v1552_v13  ;;  %8807 = vmatmul.mubr.msk.f32.gmra.mrb[26].mxu0 %vm577_vm5, %v1588_v14  ;;  %vm1573_vm3 = vcmp.gt.f32.partialorder %v10995_v8, 0.0  ;;  %v1581_v49 = vmul.f32 0.2, %v10995_v8 }
 0x6b1   : > { %v11006_v10 = vadd.f32 %v1558_v5, %v10923_v11  ;;  %v1590_v9 = vsel %vm1574_vm4, %v10992_v46, %v1582_v16  ;;  %9860 = vmatpush3.bf16.msra.mxu0 %v9857_v31 }
 0x6b2   : > { %v11009_v19 = vadd.f32 %v1553_v18, %v10926_v20  ;;  %v1589_v61 = vsel %vm1573_vm3, %v10995_v8, %v1581_v49 }
 0x6b3   : > { %8809 = vmatprep.mubr.msk.f32.mxu0 %vm577_vm5, %v1589_v61  ;;  %v1584_v15 = vmul.f32 0.2, %v11006_v10  ;;  %vm1576_vm7 = vcmp.gt.f32.partialorder %v11006_v10, 0.0 }
 0x6b4   : > { %8810 = vmatmul.mubr.msk.f32.gmra.mrb[28].mxu0 %vm577_vm5, %v1590_v9  ;;  %vm1575_vm6 = vcmp.gt.f32.partialorder %v11009_v19, 0.0  ;;  %v1583_v24 = vmul.f32 0.2, %v11009_v19 }
 0x6b5   : > { %v1592_v20 = vsel %vm1576_vm7, %v11006_v10, %v1584_v15 }
 0x6b6   : > { %v1591_v11 = vsel %vm1575_vm6, %v11009_v19, %v1583_v24  ;;  %v1945_v24 = vld [vmem:[%s13496_s2 + $0x260] sm:$0xff] }
 0x6b7   : > { %8812 = vmatprep.mubr.msk.f32.mxu0 %vm577_vm5, %v1591_v11  ;;  %v1946_v11 = vld [vmem:[%s13496_s2 + $0x268] sm:$0xff] }
 0x6b8   : > { %8813 = vmatmul.mubr.msk.f32.gmra.mrb[30].mxu0 %vm577_vm5, %v1592_v20  ;;  %v9861_v20 = vpack.c.bf16 %v1946_v11, %v1945_v24  ;;  %v2121_v24 = vld [vmem:[%s13496_s2 + $0x2b0] sm:$0xff]  ;;  %v2122_v11 = vld [vmem:[%s13496_s2 + $0x2b8] sm:$0xff] }
 0x6ba   : > { %9862 = vmatprep.subr.bf16.mxu0 %v9861_v20 }
 0x6bb   : > { %9864 = vmatpush3.bf16.msra.mxu0 %v9861_v20  ;;  %v9881_v20 = vpack.c.bf16 %v2122_v11, %v2121_v24  ;;  %v2463_v24 = vld [vmem:[%s13496_s2 + $0x300] sm:$0xff]  ;;  %v2464_v11 = vld [vmem:[%s13496_s2 + $0x308] sm:$0xff] }
 0x6bc   : > { %9866 = vmatprep.subr.bf16.mxu0 %v9865_v21  ;;  %v9901_v26 = vpack.c.bf16 %v2464_v11, %v2463_v24  ;;  %v2640_v11 = vld [vmem:[%s13496_s2 + $0x358] sm:$0xff] }
 0x6bf   : > { %9868 = vmatpush3.bf16.msra.mxu0 %v9865_v21  ;;  %v2291_v21 = vld [vmem:[%s13496_s2 + $0x2d0] sm:$0xff] }
 0x6c0   : > { %v9889_v22 = vpack.c.bf16 %v2292_v17, %v2291_v21  ;;  %9886 = vmatprep.subr.bf16.mxu0 %v9885_v27 }
 0x77f   : > { %v8805_v33 = vpop.f32.mrb[24].mxu0 }
 0x780   : > { %v1702_v34 = vadd.f32 %v8805_v33, %v7620_v32  ;;  %v1696_v35 = vpop.f32.mrb[25].mxu0 }
 0x781   : > { %v1697_v36 = vadd.f32 %v7620_v32, %v1696_v35 }
 0x782   : > { %v11051_v37 = vadd.f32 %v1702_v34, %v10968_v40 }
 0x783   : > { %v11054_v38 = vadd.f32 %v1697_v36, %v10971_v41  ;;  %v8808_v39 = vpop.f32.mrb[26].mxu0 }
 0x784   : > { %v1752_v42 = vmul.f32 0.2, %v11051_v37  ;;  %v1712_v45 = vadd.f32 %v8808_v39, %v7620_v32  ;;  %v1706_v48 = vpop.f32.mrb[27].mxu0  ;;  %vm1744_vm8 = vcmp.gt.f32.partialorder %v11051_v37, 0.0 }
 0x785   : > { %v1707_v51 = vadd.f32 %v7620_v32, %v1706_v48  ;;  %vm1743_vm9 = vcmp.gt.f32.partialorder %v11054_v38, 0.0  ;;  %v1751_v54 = vmul.f32 0.2, %v11054_v38 }
 0x786   : > { %v11061_v55 = vadd.f32 %v1712_v45, %v10978_v56  ;;  %v1760_v63 = vsel %vm1744_vm8, %v11051_v37, %v1752_v42 }
 0x787   : > { %v11064_v40 = vadd.f32 %v1707_v51, %v10981_v43  ;;  %v8811_v41 = vpop.f32.mrb[28].mxu0  ;;  %v1759_v44 = vsel %vm1743_vm9, %v11054_v38, %v1751_v54 }
 0x788   : > { %v1722_v47 = vadd.f32 %v8811_v41, %v7620_v32  ;;  %v1716_v50 = vpop.f32.mrb[29].mxu0  ;;  %8831 = vmatprep.mubr.msk.f32.mxu1 %vm577_vm5, %v1759_v44  ;;  %v1754_v2 = vmul.f32 0.2, %v11061_v55  ;;  %vm1746_vm12 = vcmp.gt.f32.partialorder %v11061_v55, 0.0 }
 0x789   : > { %v1717_v3 = vadd.f32 %v7620_v32, %v1716_v50  ;;  %8832 = vmatmul.mubr.msk.f32.vlgmr.msra.gmra.mrb[32].mxu1 %vm577_vm5, %v1760_v63  ;;  %vm1745_vm10 = vcmp.gt.f32.partialorder %v11064_v40, 0.0  ;;  %v1753_v56 = vmul.f32 0.2, %v11064_v40 }
 0x78a   : > { %v11075_v43 = vadd.f32 %v1722_v47, %v10992_v46  ;;  %v1762_v13 = vsel %vm1746_vm12, %v11061_v55, %v1754_v2  ;;  %9872 = vmatpush3.bf16.msra.mxu1 %v9869_v28  ;;  %v7638_v28 = vld [vmem:[%s13496_s2 + $0x4f0] ss:$0 sm:$0xff] }
 0x78b   : > { %v11078_v4 = vadd.f32 %v1717_v3, %v10995_v8  ;;  %v8814_v57 = vpop.f32.mrb[30].mxu0  ;;  %v1761_v60 = vsel %vm1745_vm10, %v11064_v40, %v1753_v56  ;;  %9874 = vmatprep.subr.bf16.mxu1 %v9873_v25 }
 0x78c   : > { %v1732_v62 = vadd.f32 %v8814_v57, %v7620_v32  ;;  %v1726_v5 = vpop.f32.mrb[31].mxu0  ;;  %8834 = vmatprep.mubr.msk.f32.mxu1 %vm577_vm5, %v1761_v60  ;;  %v1756_v14 = vmul.f32 0.2, %v11075_v43  ;;  %vm1748_vm14 = vcmp.gt.f32.partialorder %v11075_v43, 0.0 }
 0x78d   : > { %v1727_v16 = vadd.f32 %v7620_v32, %v1726_v5  ;;  %8835 = vmatmul.mubr.msk.f32.gmra.mrb[34].mxu1 %vm577_vm5, %v1762_v13  ;;  %vm1747_vm13 = vcmp.gt.f32.partialorder %v11078_v4, 0.0  ;;  %v1755_v46 = vmul.f32 0.2, %v11078_v4 }
 0x78e   : > { %v11089_v8 = vadd.f32 %v1732_v62, %v11006_v10  ;;  %v1764_v61 = vsel %vm1748_vm14, %v11075_v43, %v1756_v14  ;;  %9876 = vmatpush3.bf16.msra.mxu1 %v9873_v25 }
 0x78f   : > { %v11092_v18 = vadd.f32 %v1727_v16, %v11009_v19  ;;  %v1763_v49 = vsel %vm1747_vm13, %v11078_v4, %v1755_v46 }
 0x790   : > { %8837 = vmatprep.mubr.msk.f32.mxu1 %vm577_vm5, %v1763_v49  ;;  %v1758_v9 = vmul.f32 0.2, %v11089_v8  ;;  %vm1750_vm1 = vcmp.gt.f32.partialorder %v11089_v8, 0.0 }
 0x791   : > { %8838 = vmatmul.mubr.msk.f32.gmra.mrb[36].mxu1 %vm577_vm5, %v1764_v61  ;;  %vm1749_vm15 = vcmp.gt.f32.partialorder %v11092_v18, 0.0  ;;  %v1757_v15 = vmul.f32 0.2, %v11092_v18 }
 0x792   : > { %v1766_v19 = vsel %vm1750_vm1, %v11089_v8, %v1758_v9 }
 0x793   : > { %v1765_v10 = vsel %vm1749_vm15, %v11092_v18, %v1757_v15  ;;  %v2119_v15 = vld [vmem:[%s13496_s2 + $0x2a0] sm:$0xff] }
 0x794   : > { %8840 = vmatprep.mubr.msk.f32.mxu1 %vm577_vm5, %v1765_v10  ;;  %v2120_v10 = vld [vmem:[%s13496_s2 + $0x2a8] sm:$0xff] }
 0x795   : > { %8841 = vmatmul.mubr.msk.f32.gmra.mrb[38].mxu1 %vm577_vm5, %v1766_v19  ;;  %v9877_v19 = vpack.c.bf16 %v2120_v10, %v2119_v15  ;;  %v2295_v15 = vld [vmem:[%s13496_s2 + $0x2f0] sm:$0xff]  ;;  %v2296_v10 = vld [vmem:[%s13496_s2 + $0x2f8] sm:$0xff] }
 0x797   : > { %9878 = vmatprep.subr.bf16.mxu1 %v9877_v19 }
 0x798   : > { %9880 = vmatpush3.bf16.msra.mxu1 %v9877_v19  ;;  %v9897_v19 = vpack.c.bf16 %v2296_v10, %v2295_v15  ;;  %v2637_v15 = vld [vmem:[%s13496_s2 + $0x340] sm:$0xff]  ;;  %v2638_v10 = vld [vmem:[%s13496_s2 + $0x348] sm:$0xff] }
 0x799   : > { %9882 = vmatprep.subr.bf16.mxu1 %v9881_v20  ;;  %v9917_v24 = vpack.c.bf16 %v2638_v10, %v2637_v15  ;;  %v2814_v10 = vld [vmem:[%s13496_s2 + $0x398] sm:$0xff] }
 0x79c   : > { %9884 = vmatpush3.bf16.msra.mxu1 %v9881_v20  ;;  %v2465_v20 = vld [vmem:[%s13496_s2 + $0x310] sm:$0xff] }
 0x79d   : > { %v9905_v21 = vpack.c.bf16 %v2466_v12, %v2465_v20  ;;  %9902 = vmatprep.subr.bf16.mxu1 %v9901_v26 }
 0x85c   : > { %v8833_v30 = vpop.f32.mrb[32].mxu1 }
 0x85d   : > { %v1876_v31 = vadd.f32 %v8833_v30, %v7629_v29  ;;  %v1870_v32 = vpop.f32.mrb[33].mxu1 }
 0x85e   : > { %v1871_v33 = vadd.f32 %v7629_v29, %v1870_v32 }
 0x85f   : > { %v11134_v34 = vadd.f32 %v1876_v31, %v11051_v37 }
 0x860   : > { %v11137_v35 = vadd.f32 %v1871_v33, %v11054_v38  ;;  %v8836_v36 = vpop.f32.mrb[34].mxu1 }
 0x861   : > { %v1926_v39 = vmul.f32 0.2, %v11134_v34  ;;  %v1886_v42 = vadd.f32 %v8836_v36, %v7629_v29  ;;  %v1880_v45 = vpop.f32.mrb[35].mxu1  ;;  %vm1918_vm2 = vcmp.gt.f32.partialorder %v11134_v34, 0.0 }
 0x862   : > { %v1881_v48 = vadd.f32 %v7629_v29, %v1880_v45  ;;  %vm1917_vm3 = vcmp.gt.f32.partialorder %v11137_v35, 0.0  ;;  %v1925_v51 = vmul.f32 0.2, %v11137_v35 }
 0x863   : > { %v11144_v54 = vadd.f32 %v1886_v42, %v11061_v55  ;;  %v1934_v50 = vsel %vm1918_vm2, %v11134_v34, %v1926_v39 }
 0x864   : > { %v11147_v37 = vadd.f32 %v1881_v48, %v11064_v40  ;;  %v8839_v38 = vpop.f32.mrb[36].mxu1  ;;  %v1933_v41 = vsel %vm1917_vm3, %v11137_v35, %v1925_v51 }
 0x865   : > { %v1896_v44 = vadd.f32 %v8839_v38, %v7629_v29  ;;  %v1890_v47 = vpop.f32.mrb[37].mxu1  ;;  %8859 = vmatprep.mubr.msk.f32.mxu0 %vm577_vm5, %v1933_v41  ;;  %v1928_v63 = vmul.f32 0.2, %v11144_v54  ;;  %vm1920_vm6 = vcmp.gt.f32.partialorder %v11144_v54, 0.0 }
 0x866   : > { %v1891_v2 = vadd.f32 %v7629_v29, %v1890_v47  ;;  %8860 = vmatmul.mubr.msk.f32.vlgmr.msra.gmra.mrb[32].mxu0 %vm577_vm5, %v1934_v50  ;;  %vm1919_vm4 = vcmp.gt.f32.partialorder %v11147_v37, 0.0  ;;  %v1927_v55 = vmul.f32 0.2, %v11147_v37 }
 0x867   : > { %v11158_v40 = vadd.f32 %v1896_v44, %v11075_v43  ;;  %v1936_v5 = vsel %vm1920_vm6, %v11144_v54, %v1928_v63  ;;  %9888 = vmatpush3.bf16.msra.mxu0 %v9885_v27  ;;  %v7647_v27 = vld [vmem:[%s13496_s2 + $0x4f8] ss:$0 sm:$0xff] }
 0x868   : > { %v11161_v3 = vadd.f32 %v1891_v2, %v11078_v4  ;;  %v8842_v56 = vpop.f32.mrb[38].mxu1  ;;  %v1935_v57 = vsel %vm1919_vm4, %v11147_v37, %v1927_v55  ;;  %9890 = vmatprep.subr.bf16.mxu0 %v9889_v22 }
 0x869   : > { %v1906_v60 = vadd.f32 %v8842_v56, %v7629_v29  ;;  %v1900_v62 = vpop.f32.mrb[39].mxu1  ;;  %8862 = vmatprep.mubr.msk.f32.mxu0 %vm577_vm5, %v1935_v57  ;;  %v1930_v13 = vmul.f32 0.2, %v11158_v40  ;;  %vm1922_vm8 = vcmp.gt.f32.partialorder %v11158_v40, 0.0 }
 0x86a   : > { %v1901_v14 = vadd.f32 %v7629_v29, %v1900_v62  ;;  %8863 = vmatmul.mubr.msk.f32.gmra.mrb[34].mxu0 %vm577_vm5, %v1936_v5  ;;  %vm1921_vm7 = vcmp.gt.f32.partialorder %v11161_v3, 0.0  ;;  %v1929_v43 = vmul.f32 0.2, %v11161_v3 }
 0x86b   : > { %v11172_v4 = vadd.f32 %v1906_v60, %v11089_v8  ;;  %v1938_v49 = vsel %vm1922_vm8, %v11158_v40, %v1930_v13  ;;  %9892 = vmatpush3.bf16.msra.mxu0 %v9889_v22 }
 0x86c   : > { %v11175_v16 = vadd.f32 %v1901_v14, %v11092_v18  ;;  %v1937_v46 = vsel %vm1921_vm7, %v11161_v3, %v1929_v43 }
 0x86d   : > { %8865 = vmatprep.mubr.msk.f32.mxu0 %vm577_vm5, %v1937_v46  ;;  %v1932_v61 = vmul.f32 0.2, %v11172_v4  ;;  %vm1924_vm10 = vcmp.gt.f32.partialorder %v11172_v4, 0.0 }
 0x86e   : > { %8866 = vmatmul.mubr.msk.f32.gmra.mrb[36].mxu0 %vm577_vm5, %v1938_v49  ;;  %vm1923_vm9 = vcmp.gt.f32.partialorder %v11175_v16, 0.0  ;;  %v1931_v9 = vmul.f32 0.2, %v11175_v16 }
 0x86f   : > { %v1940_v18 = vsel %vm1924_vm10, %v11172_v4, %v1932_v61 }
 0x870   : > { %v1939_v8 = vsel %vm1923_vm9, %v11175_v16, %v1931_v9  ;;  %v2293_v9 = vld [vmem:[%s13496_s2 + $0x2e0] sm:$0xff] }
 0x871   : > { %8868 = vmatprep.mubr.msk.f32.mxu0 %vm577_vm5, %v1939_v8  ;;  %v2294_v8 = vld [vmem:[%s13496_s2 + $0x2e8] sm:$0xff] }
 0x872   : > { %8869 = vmatmul.mubr.msk.f32.gmra.mrb[38].mxu0 %vm577_vm5, %v1940_v18  ;;  %v9893_v18 = vpack.c.bf16 %v2294_v8, %v2293_v9  ;;  %v2469_v9 = vld [vmem:[%s13496_s2 + $0x330] sm:$0xff]  ;;  %v2470_v8 = vld [vmem:[%s13496_s2 + $0x338] sm:$0xff] }
 0x874   : > { %9894 = vmatprep.subr.bf16.mxu0 %v9893_v18 }
 0x875   : > { %9896 = vmatpush3.bf16.msra.mxu0 %v9893_v18  ;;  %v9913_v18 = vpack.c.bf16 %v2470_v8, %v2469_v9  ;;  %v2811_v9 = vld [vmem:[%s13496_s2 + $0x380] sm:$0xff]  ;;  %v2812_v8 = vld [vmem:[%s13496_s2 + $0x388] sm:$0xff] }
 0x876   : > { %9898 = vmatprep.subr.bf16.mxu0 %v9897_v19  ;;  %v9933_v15 = vpack.c.bf16 %v2812_v8, %v2811_v9  ;;  %v2988_v8 = vld [vmem:[%s13496_s2 + $0x3d8] sm:$0xff] }
 0x879   : > { %9900 = vmatpush3.bf16.msra.mxu0 %v9897_v19  ;;  %v2639_v19 = vld [vmem:[%s13496_s2 + $0x350] sm:$0xff] }
 0x87a   : > { %v9921_v20 = vpack.c.bf16 %v2640_v11, %v2639_v19  ;;  %9918 = vmatprep.subr.bf16.mxu0 %v9917_v24 }
 0x939   : > { %v8861_v23 = vpop.f32.mrb[32].mxu0 }
 0x93a   : > { %v2050_v25 = vadd.f32 %v8861_v23, %v7638_v28  ;;  %v2044_v29 = vpop.f32.mrb[33].mxu0 }
 0x93b   : > { %v2045_v30 = vadd.f32 %v7638_v28, %v2044_v29 }
 0x93c   : > { %v11217_v31 = vadd.f32 %v2050_v25, %v11134_v34 }
 0x93d   : > { %v11220_v32 = vadd.f32 %v2045_v30, %v11137_v35  ;;  %v8864_v33 = vpop.f32.mrb[34].mxu0 }
 0x93e   : > { %v2100_v36 = vmul.f32 0.2, %v11217_v31  ;;  %v2060_v39 = vadd.f32 %v8864_v33, %v7638_v28  ;;  %v2054_v42 = vpop.f32.mrb[35].mxu0  ;;  %vm2092_vm12 = vcmp.gt.f32.partialorder %v11217_v31, 0.0 }
 0x93f   : > { %v2055_v45 = vadd.f32 %v7638_v28, %v2054_v42  ;;  %vm2091_vm13 = vcmp.gt.f32.partialorder %v11220_v32, 0.0  ;;  %v2099_v48 = vmul.f32 0.2, %v11220_v32 }
 0x940   : > { %v11227_v51 = vadd.f32 %v2060_v39, %v11144_v54  ;;  %v2108_v47 = vsel %vm2092_vm12, %v11217_v31, %v2100_v36 }
 0x941   : > { %v11230_v34 = vadd.f32 %v2055_v45, %v11147_v37  ;;  %v8867_v35 = vpop.f32.mrb[36].mxu0  ;;  %v2107_v38 = vsel %vm2091_vm13, %v11220_v32, %v2099_v48 }
 0x942   : > { %v2070_v41 = vadd.f32 %v8867_v35, %v7638_v28  ;;  %v2064_v44 = vpop.f32.mrb[37].mxu0  ;;  %8887 = vmatprep.mubr.msk.f32.mxu1 %vm577_vm5, %v2107_v38  ;;  %v2102_v50 = vmul.f32 0.2, %v11227_v51  ;;  %vm2094_vm15 = vcmp.gt.f32.partialorder %v11227_v51, 0.0 }
 0x943   : > { %v2065_v63 = vadd.f32 %v7638_v28, %v2064_v44  ;;  %8888 = vmatmul.mubr.msk.f32.vlgmr.msra.gmra.mrb[40].mxu1 %vm577_vm5, %v2108_v47  ;;  %vm2093_vm14 = vcmp.gt.f32.partialorder %v11230_v34, 0.0  ;;  %v2101_v54 = vmul.f32 0.2, %v11230_v34 }
 0x944   : > { %v11241_v37 = vadd.f32 %v2070_v41, %v11158_v40  ;;  %v2110_v62 = vsel %vm2094_vm15, %v11227_v51, %v2102_v50  ;;  %9904 = vmatpush3.bf16.msra.mxu1 %v9901_v26  ;;  %v7656_v26 = vld [vmem:[%s13496_s2 + $0x500] ss:$0 sm:$0xff] }
 0x945   : > { %v11244_v2 = vadd.f32 %v2065_v63, %v11161_v3  ;;  %v8870_v55 = vpop.f32.mrb[38].mxu0  ;;  %v2109_v56 = vsel %vm2093_vm14, %v11230_v34, %v2101_v54  ;;  %9906 = vmatprep.subr.bf16.mxu1 %v9905_v21 }
 0x946   : > { %v2080_v57 = vadd.f32 %v8870_v55, %v7638_v28  ;;  %v2074_v60 = vpop.f32.mrb[39].mxu0  ;;  %8890 = vmatprep.mubr.msk.f32.mxu1 %vm577_vm5, %v2109_v56  ;;  %v2104_v5 = vmul.f32 0.2, %v11241_v37  ;;  %vm2096_vm2 = vcmp.gt.f32.partialorder %v11241_v37, 0.0 }
 0x947   : > { %v2075_v13 = vadd.f32 %v7638_v28, %v2074_v60  ;;  %8891 = vmatmul.mubr.msk.f32.gmra.mrb[42].mxu1 %vm577_vm5, %v2110_v62  ;;  %vm2095_vm1 = vcmp.gt.f32.partialorder %v11244_v2, 0.0  ;;  %v2103_v40 = vmul.f32 0.2, %v11244_v2 }
 0x948   : > { %v11255_v3 = vadd.f32 %v2080_v57, %v11172_v4  ;;  %v2112_v46 = vsel %vm2096_vm2, %v11241_v37, %v2104_v5  ;;  %9908 = vmatpush3.bf16.msra.mxu1 %v9905_v21 }
 0x949   : > { %v11258_v14 = vadd.f32 %v2075_v13, %v11175_v16  ;;  %v2111_v43 = vsel %vm2095_vm1, %v11244_v2, %v2103_v40 }
 0x94a   : > { %8893 = vmatprep.mubr.msk.f32.mxu1 %vm577_vm5, %v2111_v43  ;;  %v2106_v49 = vmul.f32 0.2, %v11255_v3  ;;  %vm2098_vm4 = vcmp.gt.f32.partialorder %v11255_v3, 0.0 }
 0x94b   : > { %8894 = vmatmul.mubr.msk.f32.gmra.mrb[44].mxu1 %vm577_vm5, %v2112_v46  ;;  %vm2097_vm3 = vcmp.gt.f32.partialorder %v11258_v14, 0.0  ;;  %v2105_v61 = vmul.f32 0.2, %v11258_v14 }
 0x94c   : > { %v2114_v16 = vsel %vm2098_vm4, %v11255_v3, %v2106_v49 }
 0x94d   : > { %v2113_v4 = vsel %vm2097_vm3, %v11258_v14, %v2105_v61  ;;  %v2467_v61 = vld [vmem:[%s13496_s2 + $0x320] sm:$0xff] }
 0x94e   : > { %8896 = vmatprep.mubr.msk.f32.mxu1 %vm577_vm5, %v2113_v4  ;;  %v2468_v4 = vld [vmem:[%s13496_s2 + $0x328] sm:$0xff] }
 0x94f   : > { %8897 = vmatmul.mubr.msk.f32.gmra.mrb[46].mxu1 %vm577_vm5, %v2114_v16  ;;  %v9909_v16 = vpack.c.bf16 %v2468_v4, %v2467_v61  ;;  %v2643_v61 = vld [vmem:[%s13496_s2 + $0x370] sm:$0xff]  ;;  %v2644_v4 = vld [vmem:[%s13496_s2 + $0x378] sm:$0xff] }
 0x951   : > { %9910 = vmatprep.subr.bf16.mxu1 %v9909_v16 }
 0x952   : > { %9912 = vmatpush3.bf16.msra.mxu1 %v9909_v16  ;;  %v9929_v16 = vpack.c.bf16 %v2644_v4, %v2643_v61  ;;  %v2985_v61 = vld [vmem:[%s13496_s2 + $0x3c0] sm:$0xff]  ;;  %v2986_v4 = vld [vmem:[%s13496_s2 + $0x3c8] sm:$0xff] }
 0x953   : > { %9914 = vmatprep.subr.bf16.mxu1 %v9913_v18  ;;  %v9949_v9 = vpack.c.bf16 %v2986_v4, %v2985_v61  ;;  %v3162_v4 = vld [vmem:[%s13496_s2 + $0x418] sm:$0xff] }
 0x956   : > { %9916 = vmatpush3.bf16.msra.mxu1 %v9913_v18  ;;  %v2813_v18 = vld [vmem:[%s13496_s2 + $0x390] sm:$0xff] }
 0x957   : > { %v9937_v19 = vpack.c.bf16 %v2814_v10, %v2813_v18  ;;  %9934 = vmatprep.subr.bf16.mxu1 %v9933_v15 }
 0xa16   : > { %v8889_v17 = vpop.f32.mrb[40].mxu1 }
 0xa17   : > { %v2224_v22 = vadd.f32 %v8889_v17, %v7647_v27  ;;  %v2218_v28 = vpop.f32.mrb[41].mxu1 }
 0xa18   : > { %v2219_v23 = vadd.f32 %v7647_v27, %v2218_v28 }
 0xa19   : > { %v11300_v25 = vadd.f32 %v2224_v22, %v11217_v31 }
 0xa1a   : > { %v11303_v29 = vadd.f32 %v2219_v23, %v11220_v32  ;;  %v8892_v30 = vpop.f32.mrb[42].mxu1 }
 0xa1b   : > { %v2274_v33 = vmul.f32 0.2, %v11300_v25  ;;  %v2234_v36 = vadd.f32 %v8892_v30, %v7647_v27  ;;  %v2228_v39 = vpop.f32.mrb[43].mxu1  ;;  %vm2266_vm6 = vcmp.gt.f32.partialorder %v11300_v25, 0.0 }
 0xa1c   : > { %v2229_v42 = vadd.f32 %v7647_v27, %v2228_v39  ;;  %vm2265_vm7 = vcmp.gt.f32.partialorder %v11303_v29, 0.0  ;;  %v2273_v45 = vmul.f32 0.2, %v11303_v29 }
 0xa1d   : > { %v11310_v48 = vadd.f32 %v2234_v36, %v11227_v51  ;;  %v2282_v44 = vsel %vm2266_vm6, %v11300_v25, %v2274_v33 }
 0xa1e   : > { %v11313_v31 = vadd.f32 %v2229_v42, %v11230_v34  ;;  %v8895_v32 = vpop.f32.mrb[44].mxu1  ;;  %v2281_v35 = vsel %vm2265_vm7, %v11303_v29, %v2273_v45 }
 0xa1f   : > { %v2244_v38 = vadd.f32 %v8895_v32, %v7647_v27  ;;  %v2238_v41 = vpop.f32.mrb[45].mxu1  ;;  %8915 = vmatprep.mubr.msk.f32.mxu0 %vm577_vm5, %v2281_v35  ;;  %v2276_v47 = vmul.f32 0.2, %v11310_v48  ;;  %vm2268_vm9 = vcmp.gt.f32.partialorder %v11310_v48, 0.0 }
 0xa20   : > { %v2239_v50 = vadd.f32 %v7647_v27, %v2238_v41  ;;  %8916 = vmatmul.mubr.msk.f32.vlgmr.msra.gmra.mrb[40].mxu0 %vm577_vm5, %v2282_v44  ;;  %vm2267_vm8 = vcmp.gt.f32.partialorder %v11313_v31, 0.0  ;;  %v2275_v51 = vmul.f32 0.2, %v11313_v31 }
 0xa21   : > { %v11324_v34 = vadd.f32 %v2244_v38, %v11241_v37  ;;  %v2284_v60 = vsel %vm2268_vm9, %v11310_v48, %v2276_v47  ;;  %9920 = vmatpush3.bf16.msra.mxu0 %v9917_v24  ;;  %v7665_v24 = vld [vmem:[%s13496_s2 + $0x508] ss:$0 sm:$0xff] }
 0xa22   : > { %v11327_v63 = vadd.f32 %v2239_v50, %v11244_v2  ;;  %v8898_v54 = vpop.f32.mrb[46].mxu1  ;;  %v2283_v55 = vsel %vm2267_vm8, %v11313_v31, %v2275_v51  ;;  %9922 = vmatprep.subr.bf16.mxu0 %v9921_v20 }
 0xa23   : > { %v2254_v56 = vadd.f32 %v8898_v54, %v7647_v27  ;;  %v2248_v57 = vpop.f32.mrb[47].mxu1  ;;  %8918 = vmatprep.mubr.msk.f32.mxu0 %vm577_vm5, %v2283_v55  ;;  %v2278_v62 = vmul.f32 0.2, %v11324_v34  ;;  %vm2270_vm12 = vcmp.gt.f32.partialorder %v11324_v34, 0.0 }
 0xa24   : > { %v2249_v5 = vadd.f32 %v7647_v27, %v2248_v57  ;;  %8919 = vmatmul.mubr.msk.f32.gmra.mrb[42].mxu0 %vm577_vm5, %v2284_v60  ;;  %vm2269_vm10 = vcmp.gt.f32.partialorder %v11327_v63, 0.0  ;;  %v2277_v37 = vmul.f32 0.2, %v11327_v63 }
 0xa25   : > { %v11338_v2 = vadd.f32 %v2254_v56, %v11255_v3  ;;  %v2286_v43 = vsel %vm2270_vm12, %v11324_v34, %v2278_v62  ;;  %9924 = vmatpush3.bf16.msra.mxu0 %v9921_v20 }
 0xa26   : > { %v11341_v13 = vadd.f32 %v2249_v5, %v11258_v14  ;;  %v2285_v40 = vsel %vm2269_vm10, %v11327_v63, %v2277_v37 }
 0xa27   : > { %8921 = vmatprep.mubr.msk.f32.mxu0 %vm577_vm5, %v2285_v40  ;;  %v2280_v46 = vmul.f32 0.2, %v11338_v2  ;;  %vm2272_vm14 = vcmp.gt.f32.partialorder %v11338_v2, 0.0 }
 0xa28   : > { %8922 = vmatmul.mubr.msk.f32.gmra.mrb[44].mxu0 %vm577_vm5, %v2286_v43  ;;  %vm2271_vm13 = vcmp.gt.f32.partialorder %v11341_v13, 0.0  ;;  %v2279_v49 = vmul.f32 0.2, %v11341_v13 }
 0xa29   : > { %v2288_v14 = vsel %vm2272_vm14, %v11338_v2, %v2280_v46 }
 0xa2a   : > { %v2287_v3 = vsel %vm2271_vm13, %v11341_v13, %v2279_v49  ;;  %v2641_v49 = vld [vmem:[%s13496_s2 + $0x360] sm:$0xff] }
 0xa2b   : > { %8924 = vmatprep.mubr.msk.f32.mxu0 %vm577_vm5, %v2287_v3  ;;  %v2642_v3 = vld [vmem:[%s13496_s2 + $0x368] sm:$0xff] }
 0xa2c   : > { %8925 = vmatmul.mubr.msk.f32.gmra.mrb[46].mxu0 %vm577_vm5, %v2288_v14  ;;  %v9925_v14 = vpack.c.bf16 %v2642_v3, %v2641_v49  ;;  %v2817_v49 = vld [vmem:[%s13496_s2 + $0x3b0] sm:$0xff]  ;;  %v2818_v3 = vld [vmem:[%s13496_s2 + $0x3b8] sm:$0xff] }
 0xa2e   : > { %9926 = vmatprep.subr.bf16.mxu0 %v9925_v14 }
 0xa2f   : > { %9928 = vmatpush3.bf16.msra.mxu0 %v9925_v14  ;;  %v9945_v14 = vpack.c.bf16 %v2818_v3, %v2817_v49  ;;  %v3159_v49 = vld [vmem:[%s13496_s2 + $0x400] sm:$0xff]  ;;  %v3160_v3 = vld [vmem:[%s13496_s2 + $0x408] sm:$0xff] }
 0xa30   : > { %9930 = vmatprep.subr.bf16.mxu0 %v9929_v16  ;;  %v9965_v61 = vpack.c.bf16 %v3160_v3, %v3159_v49  ;;  %v3336_v3 = vld [vmem:[%s13496_s2 + $0x458] sm:$0xff] }
 0xa33   : > { %9932 = vmatpush3.bf16.msra.mxu0 %v9929_v16  ;;  %v2987_v16 = vld [vmem:[%s13496_s2 + $0x3d0] sm:$0xff] }
 0xa34   : > { %v9953_v18 = vpack.c.bf16 %v2988_v8, %v2987_v16  ;;  %9950 = vmatprep.subr.bf16.mxu0 %v9949_v9 }
 0xaf3   : > { %v8917_v12 = vpop.f32.mrb[40].mxu0 }
 0xaf4   : > { %v2398_v21 = vadd.f32 %v8917_v12, %v7656_v26  ;;  %v2392_v27 = vpop.f32.mrb[41].mxu0 }
 0xaf5   : > { %v2393_v17 = vadd.f32 %v7656_v26, %v2392_v27 }
 0xaf6   : > { %v11383_v22 = vadd.f32 %v2398_v21, %v11300_v25 }
 0xaf7   : > { %v11386_v28 = vadd.f32 %v2393_v17, %v11303_v29  ;;  %v8920_v23 = vpop.f32.mrb[42].mxu0 }
 0xaf8   : > { %v2448_v30 = vmul.f32 0.2, %v11383_v22  ;;  %v2408_v33 = vadd.f32 %v8920_v23, %v7656_v26  ;;  %v2402_v36 = vpop.f32.mrb[43].mxu0  ;;  %vm2440_vm15 = vcmp.gt.f32.partialorder %v11383_v22, 0.0 }
 0xaf9   : > { %v2403_v39 = vadd.f32 %v7656_v26, %v2402_v36  ;;  %vm2439_vm1 = vcmp.gt.f32.partialorder %v11386_v28, 0.0  ;;  %v2447_v42 = vmul.f32 0.2, %v11386_v28 }
 0xafa   : > { %v11393_v45 = vadd.f32 %v2408_v33, %v11310_v48  ;;  %v2456_v41 = vsel %vm2440_vm15, %v11383_v22, %v2448_v30 }
 0xafb   : > { %v11396_v25 = vadd.f32 %v2403_v39, %v11313_v31  ;;  %v8923_v29 = vpop.f32.mrb[44].mxu0  ;;  %v2455_v32 = vsel %vm2439_vm1, %v11386_v28, %v2447_v42 }
 0xafc   : > { %v2418_v35 = vadd.f32 %v8923_v29, %v7656_v26  ;;  %v2412_v38 = vpop.f32.mrb[45].mxu0  ;;  %8943 = vmatprep.mubr.msk.f32.mxu1 %vm577_vm5, %v2455_v32  ;;  %v2450_v44 = vmul.f32 0.2, %v11393_v45  ;;  %vm2442_vm3 = vcmp.gt.f32.partialorder %v11393_v45, 0.0 }
 0xafd   : > { %v2413_v47 = vadd.f32 %v7656_v26, %v2412_v38  ;;  %8944 = vmatmul.mubr.msk.f32.vlgmr.msra.gmra.mrb[48].mxu1 %vm577_vm5, %v2456_v41  ;;  %vm2441_vm2 = vcmp.gt.f32.partialorder %v11396_v25, 0.0  ;;  %v2449_v48 = vmul.f32 0.2, %v11396_v25 }
 0xafe   : > { %v11407_v31 = vadd.f32 %v2418_v35, %v11324_v34  ;;  %v2458_v57 = vsel %vm2442_vm3, %v11393_v45, %v2450_v44  ;;  %9936 = vmatpush3.bf16.msra.mxu1 %v9933_v15  ;;  %v7674_v15 = vld [vmem:[%s13496_s2 + $0x510] ss:$0 sm:$0xff] }
 0xaff   : > { %v11410_v50 = vadd.f32 %v2413_v47, %v11327_v63  ;;  %v8926_v51 = vpop.f32.mrb[46].mxu0  ;;  %v2457_v54 = vsel %vm2441_vm2, %v11396_v25, %v2449_v48  ;;  %9938 = vmatprep.subr.bf16.mxu1 %v9937_v19 }
 0xb00   : > { %v2428_v55 = vadd.f32 %v8926_v51, %v7656_v26  ;;  %v2422_v56 = vpop.f32.mrb[47].mxu0  ;;  %8946 = vmatprep.mubr.msk.f32.mxu1 %vm577_vm5, %v2457_v54  ;;  %v2452_v60 = vmul.f32 0.2, %v11407_v31  ;;  %vm2444_vm6 = vcmp.gt.f32.partialorder %v11407_v31, 0.0 }
 0xb01   : > { %v2423_v62 = vadd.f32 %v7656_v26, %v2422_v56  ;;  %8947 = vmatmul.mubr.msk.f32.gmra.mrb[50].mxu1 %vm577_vm5, %v2458_v57  ;;  %vm2443_vm4 = vcmp.gt.f32.partialorder %v11410_v50, 0.0  ;;  %v2451_v34 = vmul.f32 0.2, %v11410_v50 }
 0xb02   : > { %v11421_v63 = vadd.f32 %v2428_v55, %v11338_v2  ;;  %v2460_v40 = vsel %vm2444_vm6, %v11407_v31, %v2452_v60  ;;  %9940 = vmatpush3.bf16.msra.mxu1 %v9937_v19 }
 0xb03   : > { %v11424_v5 = vadd.f32 %v2423_v62, %v11341_v13  ;;  %v2459_v37 = vsel %vm2443_vm4, %v11410_v50, %v2451_v34 }
 0xb04   : > { %8949 = vmatprep.mubr.msk.f32.mxu1 %vm577_vm5, %v2459_v37  ;;  %v2454_v43 = vmul.f32 0.2, %v11421_v63  ;;  %vm2446_vm8 = vcmp.gt.f32.partialorder %v11421_v63, 0.0 }
 0xb05   : > { %8950 = vmatmul.mubr.msk.f32.gmra.mrb[52].mxu1 %vm577_vm5, %v2460_v40  ;;  %vm2445_vm7 = vcmp.gt.f32.partialorder %v11424_v5, 0.0  ;;  %v2453_v46 = vmul.f32 0.2, %v11424_v5 }
 0xb06   : > { %v2462_v13 = vsel %vm2446_vm8, %v11421_v63, %v2454_v43 }
 0xb07   : > { %v2461_v2 = vsel %vm2445_vm7, %v11424_v5, %v2453_v46  ;;  %v2815_v46 = vld [vmem:[%s13496_s2 + $0x3a0] sm:$0xff] }
 0xb08   : > { %8952 = vmatprep.mubr.msk.f32.mxu1 %vm577_vm5, %v2461_v2  ;;  %v2816_v2 = vld [vmem:[%s13496_s2 + $0x3a8] sm:$0xff] }
 0xb09   : > { %8953 = vmatmul.mubr.msk.f32.gmra.mrb[54].mxu1 %vm577_vm5, %v2462_v13  ;;  %v9941_v13 = vpack.c.bf16 %v2816_v2, %v2815_v46  ;;  %v2991_v46 = vld [vmem:[%s13496_s2 + $0x3f0] sm:$0xff]  ;;  %v2992_v2 = vld [vmem:[%s13496_s2 + $0x3f8] sm:$0xff] }
 0xb0b   : > { %9942 = vmatprep.subr.bf16.mxu1 %v9941_v13 }
 0xb0c   : > { %9944 = vmatpush3.bf16.msra.mxu1 %v9941_v13  ;;  %v9961_v13 = vpack.c.bf16 %v2992_v2, %v2991_v46  ;;  %v3333_v46 = vld [vmem:[%s13496_s2 + $0x440] sm:$0xff]  ;;  %v3334_v2 = vld [vmem:[%s13496_s2 + $0x448] sm:$0xff] }
 0xb0d   : > { %9946 = vmatprep.subr.bf16.mxu1 %v9945_v14  ;;  %v9981_v49 = vpack.c.bf16 %v3334_v2, %v3333_v46  ;;  %v3510_v2 = vld [vmem:[%s13496_s2 + $0x498] sm:$0xff] }
 0xb10   : > { %9948 = vmatpush3.bf16.msra.mxu1 %v9945_v14  ;;  %v3161_v14 = vld [vmem:[%s13496_s2 + $0x410] sm:$0xff] }
 0xb11   : > { %v9969_v16 = vpack.c.bf16 %v3162_v4, %v3161_v14  ;;  %9966 = vmatprep.subr.bf16.mxu1 %v9965_v61 }
 0xbd0   : > { %v8945_v11 = vpop.f32.mrb[48].mxu1 }
 0xbd1   : > { %v2572_v20 = vadd.f32 %v8945_v11, %v7665_v24  ;;  %v2566_v26 = vpop.f32.mrb[49].mxu1 }
 0xbd2   : > { %v2567_v12 = vadd.f32 %v7665_v24, %v2566_v26 }
 0xbd3   : > { %v11466_v21 = vadd.f32 %v2572_v20, %v11383_v22 }
 0xbd4   : > { %v11469_v27 = vadd.f32 %v2567_v12, %v11386_v28  ;;  %v8948_v17 = vpop.f32.mrb[50].mxu1 }
 0xbd5   : > { %v2622_v23 = vmul.f32 0.2, %v11466_v21  ;;  %v2582_v30 = vadd.f32 %v8948_v17, %v7665_v24  ;;  %v2576_v33 = vpop.f32.mrb[51].mxu1  ;;  %vm2614_vm9 = vcmp.gt.f32.partialorder %v11466_v21, 0.0 }
 0xbd6   : > { %v2577_v36 = vadd.f32 %v7665_v24, %v2576_v33  ;;  %vm2613_vm10 = vcmp.gt.f32.partialorder %v11469_v27, 0.0  ;;  %v2621_v39 = vmul.f32 0.2, %v11469_v27 }
 0xbd7   : > { %v11476_v42 = vadd.f32 %v2582_v30, %v11393_v45  ;;  %v2630_v38 = vsel %vm2614_vm9, %v11466_v21, %v2622_v23 }
 0xbd8   : > { %v11479_v22 = vadd.f32 %v2577_v36, %v11396_v25  ;;  %v8951_v28 = vpop.f32.mrb[52].mxu1  ;;  %v2629_v29 = vsel %vm2613_vm10, %v11469_v27, %v2621_v39 }
 0xbd9   : > { %v2592_v32 = vadd.f32 %v8951_v28, %v7665_v24  ;;  %v2586_v35 = vpop.f32.mrb[53].mxu1  ;;  %8971 = vmatprep.mubr.msk.f32.mxu0 %vm577_vm5, %v2629_v29  ;;  %v2624_v41 = vmul.f32 0.2, %v11476_v42  ;;  %vm2616_vm13 = vcmp.gt.f32.partialorder %v11476_v42, 0.0 }
 0xbda   : > { %v2587_v44 = vadd.f32 %v7665_v24, %v2586_v35  ;;  %8972 = vmatmul.mubr.msk.f32.vlgmr.msra.gmra.mrb[48].mxu0 %vm577_vm5, %v2630_v38  ;;  %vm2615_vm12 = vcmp.gt.f32.partialorder %v11479_v22, 0.0  ;;  %v2623_v45 = vmul.f32 0.2, %v11479_v22 }
 0xbdb   : > { %v11490_v25 = vadd.f32 %v2592_v32, %v11407_v31  ;;  %v2632_v56 = vsel %vm2616_vm13, %v11476_v42, %v2624_v41  ;;  %9952 = vmatpush3.bf16.msra.mxu0 %v9949_v9  ;;  %v7683_v9 = vld [vmem:[%s13496_s2 + $0x518] ss:$0 sm:$0xff] }
 0xbdc   : > { %v11493_v47 = vadd.f32 %v2587_v44, %v11410_v50  ;;  %v8954_v48 = vpop.f32.mrb[54].mxu1  ;;  %v2631_v51 = vsel %vm2615_vm12, %v11479_v22, %v2623_v45  ;;  %9954 = vmatprep.subr.bf16.mxu0 %v9953_v18 }
 0xbdd   : > { %v2602_v54 = vadd.f32 %v8954_v48, %v7665_v24  ;;  %v2596_v55 = vpop.f32.mrb[55].mxu1  ;;  %8974 = vmatprep.mubr.msk.f32.mxu0 %vm577_vm5, %v2631_v51  ;;  %v2626_v57 = vmul.f32 0.2, %v11490_v25  ;;  %vm2618_vm15 = vcmp.gt.f32.partialorder %v11490_v25, 0.0 }
 0xbde   : > { %v2597_v60 = vadd.f32 %v7665_v24, %v2596_v55  ;;  %8975 = vmatmul.mubr.msk.f32.gmra.mrb[50].mxu0 %vm577_vm5, %v2632_v56  ;;  %vm2617_vm14 = vcmp.gt.f32.partialorder %v11493_v47, 0.0  ;;  %v2625_v31 = vmul.f32 0.2, %v11493_v47 }
 0xbdf   : > { %v11504_v50 = vadd.f32 %v2602_v54, %v11421_v63  ;;  %v2634_v37 = vsel %vm2618_vm15, %v11490_v25, %v2626_v57  ;;  %9956 = vmatpush3.bf16.msra.mxu0 %v9953_v18 }
 0xbe0   : > { %v11507_v62 = vadd.f32 %v2597_v60, %v11424_v5  ;;  %v2633_v34 = vsel %vm2617_vm14, %v11493_v47, %v2625_v31 }
 0xbe1   : > { %8977 = vmatprep.mubr.msk.f32.mxu0 %vm577_vm5, %v2633_v34  ;;  %v2628_v40 = vmul.f32 0.2, %v11504_v50  ;;  %vm2620_vm2 = vcmp.gt.f32.partialorder %v11504_v50, 0.0 }
 0xbe2   : > { %8978 = vmatmul.mubr.msk.f32.gmra.mrb[52].mxu0 %vm577_vm5, %v2634_v37  ;;  %vm2619_vm1 = vcmp.gt.f32.partialorder %v11507_v62, 0.0  ;;  %v2627_v43 = vmul.f32 0.2, %v11507_v62 }
 0xbe3   : > { %v2636_v5 = vsel %vm2620_vm2, %v11504_v50, %v2628_v40 }
 0xbe4   : > { %v2635_v63 = vsel %vm2619_vm1, %v11507_v62, %v2627_v43  ;;  %v2989_v43 = vld [vmem:[%s13496_s2 + $0x3e0] sm:$0xff] }
 0xbe5   : > { %8980 = vmatprep.mubr.msk.f32.mxu0 %vm577_vm5, %v2635_v63  ;;  %v2990_v63 = vld [vmem:[%s13496_s2 + $0x3e8] sm:$0xff] }
 0xbe6   : > { %8981 = vmatmul.mubr.msk.f32.gmra.mrb[54].mxu0 %vm577_vm5, %v2636_v5  ;;  %v9957_v5 = vpack.c.bf16 %v2990_v63, %v2989_v43  ;;  %v3165_v43 = vld [vmem:[%s13496_s2 + $0x430] sm:$0xff]  ;;  %v3166_v63 = vld [vmem:[%s13496_s2 + $0x438] sm:$0xff] }
 0xbe8   : > { %9958 = vmatprep.subr.bf16.mxu0 %v9957_v5 }
 0xbe9   : > { %9960 = vmatpush3.bf16.msra.mxu0 %v9957_v5  ;;  %v9977_v5 = vpack.c.bf16 %v3166_v63, %v3165_v43  ;;  %v3507_v43 = vld [vmem:[%s13496_s2 + $0x480] sm:$0xff]  ;;  %v3508_v63 = vld [vmem:[%s13496_s2 + $0x488] sm:$0xff] }
 0xbea   : > { %9962 = vmatprep.subr.bf16.mxu0 %v9961_v13  ;;  %v9997_v46 = vpack.c.bf16 %v3508_v63, %v3507_v43  ;;  %v3683_v43 = vld [vmem:[%s13496_s2 + $0x550] sm:$0xff] }
 0xbed   : > { %9964 = vmatpush3.bf16.msra.mxu0 %v9961_v13  ;;  %v3335_v13 = vld [vmem:[%s13496_s2 + $0x450] sm:$0xff] }
 0xbee   : > { %v9985_v14 = vpack.c.bf16 %v3336_v3, %v3335_v13  ;;  %9982 = vmatprep.subr.bf16.mxu0 %v9981_v49 }
 0xcad   : > { %v8973_v10 = vpop.f32.mrb[48].mxu0 }
 0xcae   : > { %v2746_v19 = vadd.f32 %v8973_v10, %v7674_v15  ;;  %v2740_v24 = vpop.f32.mrb[49].mxu0 }
 0xcaf   : > { %v2741_v11 = vadd.f32 %v7674_v15, %v2740_v24 }
 0xcb0   : > { %v11549_v20 = vadd.f32 %v2746_v19, %v11466_v21 }
 0xcb1   : > { %v11552_v26 = vadd.f32 %v2741_v11, %v11469_v27  ;;  %v8976_v12 = vpop.f32.mrb[50].mxu0 }
 0xcb2   : > { %v2796_v17 = vmul.f32 0.2, %v11549_v20  ;;  %v2756_v23 = vadd.f32 %v8976_v12, %v7674_v15  ;;  %v2750_v30 = vpop.f32.mrb[51].mxu0  ;;  %vm2788_vm3 = vcmp.gt.f32.partialorder %v11549_v20, 0.0 }
 0xcb3   : > { %v2751_v33 = vadd.f32 %v7674_v15, %v2750_v30  ;;  %vm2787_vm4 = vcmp.gt.f32.partialorder %v11552_v26, 0.0  ;;  %v2795_v36 = vmul.f32 0.2, %v11552_v26 }
 0xcb4   : > { %v11559_v39 = vadd.f32 %v2756_v23, %v11476_v42  ;;  %v2804_v35 = vsel %vm2788_vm3, %v11549_v20, %v2796_v17 }
 0xcb5   : > { %v11562_v21 = vadd.f32 %v2751_v33, %v11479_v22  ;;  %v8979_v27 = vpop.f32.mrb[52].mxu0  ;;  %v2803_v28 = vsel %vm2787_vm4, %v11552_v26, %v2795_v36 }
 0xcb6   : > { %v2766_v29 = vadd.f32 %v8979_v27, %v7674_v15  ;;  %v2760_v32 = vpop.f32.mrb[53].mxu0  ;;  %8999 = vmatprep.mubr.msk.f32.mxu1 %vm577_vm5, %v2803_v28  ;;  %v2798_v38 = vmul.f32 0.2, %v11559_v39  ;;  %vm2790_vm7 = vcmp.gt.f32.partialorder %v11559_v39, 0.0 }
 0xcb7   : > { %v2761_v41 = vadd.f32 %v7674_v15, %v2760_v32  ;;  %9000 = vmatmul.mubr.msk.f32.vlgmr.msra.gmra.mrb[56].mxu1 %vm577_vm5, %v2804_v35  ;;  %vm2789_vm6 = vcmp.gt.f32.partialorder %v11562_v21, 0.0  ;;  %v2797_v42 = vmul.f32 0.2, %v11562_v21 }
 0xcb8   : > { %v11573_v22 = vadd.f32 %v2766_v29, %v11490_v25  ;;  %v2806_v55 = vsel %vm2790_vm7, %v11559_v39, %v2798_v38  ;;  %9968 = vmatpush3.bf16.msra.mxu1 %v9965_v61  ;;  %v7692_v61 = vld [vmem:[%s13496_s2 + $0x520] ss:$0 sm:$0xff] }
 0xcb9   : > { %v11576_v44 = vadd.f32 %v2761_v41, %v11493_v47  ;;  %v8982_v45 = vpop.f32.mrb[54].mxu0  ;;  %v2805_v48 = vsel %vm2789_vm6, %v11562_v21, %v2797_v42  ;;  %9970 = vmatprep.subr.bf16.mxu1 %v9969_v16 }
 0xcba   : > { %v2776_v51 = vadd.f32 %v8982_v45, %v7674_v15  ;;  %v2770_v54 = vpop.f32.mrb[55].mxu0  ;;  %9002 = vmatprep.mubr.msk.f32.mxu1 %vm577_vm5, %v2805_v48  ;;  %v2800_v56 = vmul.f32 0.2, %v11573_v22  ;;  %vm2792_vm9 = vcmp.gt.f32.partialorder %v11573_v22, 0.0 }
 0xcbb   : > { %v2771_v57 = vadd.f32 %v7674_v15, %v2770_v54  ;;  %9003 = vmatmul.mubr.msk.f32.gmra.mrb[58].mxu1 %vm577_vm5, %v2806_v55  ;;  %vm2791_vm8 = vcmp.gt.f32.partialorder %v11576_v44, 0.0  ;;  %v2799_v25 = vmul.f32 0.2, %v11576_v44 }
 0xcbc   : > { %v11587_v47 = vadd.f32 %v2776_v51, %v11504_v50  ;;  %v2808_v34 = vsel %vm2792_vm9, %v11573_v22, %v2800_v56  ;;  %9972 = vmatpush3.bf16.msra.mxu1 %v9969_v16 }
 0xcbd   : > { %v11590_v60 = vadd.f32 %v2771_v57, %v11507_v62  ;;  %v2807_v31 = vsel %vm2791_vm8, %v11576_v44, %v2799_v25 }
 0xcbe   : > { %9005 = vmatprep.mubr.msk.f32.mxu1 %vm577_vm5, %v2807_v31  ;;  %v2802_v37 = vmul.f32 0.2, %v11587_v47  ;;  %vm2794_vm12 = vcmp.gt.f32.partialorder %v11587_v47, 0.0 }
 0xcbf   : > { %9006 = vmatmul.mubr.msk.f32.gmra.mrb[60].mxu1 %vm577_vm5, %v2808_v34  ;;  %vm2793_vm10 = vcmp.gt.f32.partialorder %v11590_v60, 0.0  ;;  %v2801_v40 = vmul.f32 0.2, %v11590_v60 }
 0xcc0   : > { %v2810_v62 = vsel %vm2794_vm12, %v11587_v47, %v2802_v37 }
 0xcc1   : > { %v2809_v50 = vsel %vm2793_vm10, %v11590_v60, %v2801_v40  ;;  %v3163_v40 = vld [vmem:[%s13496_s2 + $0x420] sm:$0xff] }
 0xcc2   : > { %9008 = vmatprep.mubr.msk.f32.mxu1 %vm577_vm5, %v2809_v50  ;;  %v3164_v50 = vld [vmem:[%s13496_s2 + $0x428] sm:$0xff] }
 0xcc3   : > { %9009 = vmatmul.mubr.msk.f32.gmra.mrb[62].mxu1 %vm577_vm5, %v2810_v62  ;;  %v9973_v62 = vpack.c.bf16 %v3164_v50, %v3163_v40  ;;  %v3339_v40 = vld [vmem:[%s13496_s2 + $0x470] sm:$0xff]  ;;  %v3340_v50 = vld [vmem:[%s13496_s2 + $0x478] sm:$0xff] }
 0xcc5   : > { %9974 = vmatprep.subr.bf16.mxu1 %v9973_v62 }
 0xcc6   : > { %9976 = vmatpush3.bf16.msra.mxu1 %v9973_v62  ;;  %v9993_v62 = vpack.c.bf16 %v3340_v50, %v3339_v40  ;;  %v3900_v40 = vld [vmem:[%s13496_s2 + $0x20] sm:$0xff] }
 0xcc7   : > { %9978 = vmatprep.subr.bf16.mxu1 %v9977_v5  ;;  %v3681_v50 = vld [vmem:[%s13496_s2 + $0x540] sm:$0xff] }
 0xcca   : > { %9980 = vmatpush3.bf16.msra.mxu1 %v9977_v5  ;;  %v3509_v5 = vld [vmem:[%s13496_s2 + $0x490] sm:$0xff] }
 0xccb   : > { %v10001_v13 = vpack.c.bf16 %v3510_v2, %v3509_v5  ;;  %9998 = vmatprep.subr.bf16.mxu1 %v9997_v46  ;;  %v3684_v5 = vld [vmem:[%s13496_s2 + $0x558] sm:$0xff]  ;;  %v7710_v2 = vld [vmem:[%s13496_s2 + $0x530] ss:$0 sm:$0xff] }
 0xd8a   : > { %v9001_v8 = vpop.f32.mrb[56].mxu1 }
 0xd8b   : > { %v2920_v18 = vadd.f32 %v9001_v8, %v7683_v9  ;;  %v2914_v15 = vpop.f32.mrb[57].mxu1 }
 0xd8c   : > { %v2915_v10 = vadd.f32 %v7683_v9, %v2914_v15 }
 0xd8d   : > { %v11632_v19 = vadd.f32 %v2920_v18, %v11549_v20 }
 0xd8e   : > { %v11635_v24 = vadd.f32 %v2915_v10, %v11552_v26  ;;  %v9004_v11 = vpop.f32.mrb[58].mxu1 }
 0xd8f   : > { %v2970_v12 = vmul.f32 0.2, %v11632_v19  ;;  %v2930_v17 = vadd.f32 %v9004_v11, %v7683_v9  ;;  %v2924_v23 = vpop.f32.mrb[59].mxu1  ;;  %vm2962_vm13 = vcmp.gt.f32.partialorder %v11632_v19, 0.0 }
 0xd90   : > { %v2925_v30 = vadd.f32 %v7683_v9, %v2924_v23  ;;  %vm2961_vm14 = vcmp.gt.f32.partialorder %v11635_v24, 0.0  ;;  %v2969_v33 = vmul.f32 0.2, %v11635_v24 }
 0xd91   : > { %v11642_v36 = vadd.f32 %v2930_v17, %v11559_v39  ;;  %v2978_v32 = vsel %vm2962_vm13, %v11632_v19, %v2970_v12 }
 0xd92   : > { %v11645_v20 = vadd.f32 %v2925_v30, %v11562_v21  ;;  %v9007_v26 = vpop.f32.mrb[60].mxu1  ;;  %v2977_v27 = vsel %vm2961_vm14, %v11635_v24, %v2969_v33 }
 0xd93   : > { %v2940_v28 = vadd.f32 %v9007_v26, %v7683_v9  ;;  %v2934_v29 = vpop.f32.mrb[61].mxu1  ;;  %9027 = vmatprep.mubr.msk.f32.mxu0 %vm577_vm5, %v2977_v27  ;;  %v2972_v35 = vmul.f32 0.2, %v11642_v36  ;;  %vm2964_vm1 = vcmp.gt.f32.partialorder %v11642_v36, 0.0 }
 0xd94   : > { %v2935_v38 = vadd.f32 %v7683_v9, %v2934_v29  ;;  %9028 = vmatmul.mubr.msk.f32.vlgmr.msra.gmra.mrb[56].mxu0 %vm577_vm5, %v2978_v32  ;;  %vm2963_vm15 = vcmp.gt.f32.partialorder %v11645_v20, 0.0  ;;  %v2971_v39 = vmul.f32 0.2, %v11645_v20 }
 0xd95   : > { %v11656_v21 = vadd.f32 %v2940_v28, %v11573_v22  ;;  %v2980_v54 = vsel %vm2964_vm1, %v11642_v36, %v2972_v35  ;;  %9984 = vmatpush3.bf16.msra.mxu0 %v9981_v49  ;;  %v7701_v49 = vld [vmem:[%s13496_s2 + $0x528] ss:$0 sm:$0xff] }
 0xd96   : > { %v11659_v41 = vadd.f32 %v2935_v38, %v11576_v44  ;;  %v9010_v42 = vpop.f32.mrb[62].mxu1  ;;  %v2979_v45 = vsel %vm2963_vm15, %v11645_v20, %v2971_v39  ;;  %9986 = vmatprep.subr.bf16.mxu0 %v9985_v14 }
 0xd97   : > { %v2950_v48 = vadd.f32 %v9010_v42, %v7683_v9  ;;  %v2944_v51 = vpop.f32.mrb[63].mxu1  ;;  %9030 = vmatprep.mubr.msk.f32.mxu0 %vm577_vm5, %v2979_v45  ;;  %v2974_v55 = vmul.f32 0.2, %v11656_v21  ;;  %vm2966_vm3 = vcmp.gt.f32.partialorder %v11656_v21, 0.0 }
 0xd98   : > { %v2945_v56 = vadd.f32 %v7683_v9, %v2944_v51  ;;  %9031 = vmatmul.mubr.msk.f32.gmra.mrb[58].mxu0 %vm577_vm5, %v2980_v54  ;;  %vm2965_vm2 = vcmp.gt.f32.partialorder %v11659_v41, 0.0  ;;  %v2973_v22 = vmul.f32 0.2, %v11659_v41 }
 0xd99   : > { %v11670_v44 = vadd.f32 %v2950_v48, %v11587_v47  ;;  %v2982_v31 = vsel %vm2966_vm3, %v11656_v21, %v2974_v55  ;;  %9988 = vmatpush3.bf16.msra.mxu0 %v9985_v14 }
 0xd9a   : > { %v11673_v57 = vadd.f32 %v2945_v56, %v11590_v60  ;;  %v2981_v25 = vsel %vm2965_vm2, %v11659_v41, %v2973_v22 }
 0xd9b   : > { %9033 = vmatprep.mubr.msk.f32.mxu0 %vm577_vm5, %v2981_v25  ;;  %v2976_v34 = vmul.f32 0.2, %v11670_v44  ;;  %vm2968_vm6 = vcmp.gt.f32.partialorder %v11670_v44, 0.0 }
 0xd9c   : > { %9034 = vmatmul.mubr.msk.f32.gmra.mrb[60].mxu0 %vm577_vm5, %v2982_v31  ;;  %vm2967_vm4 = vcmp.gt.f32.partialorder %v11673_v57, 0.0  ;;  %v2975_v37 = vmul.f32 0.2, %v11673_v57 }
 0xd9d   : > { %v2984_v60 = vsel %vm2968_vm6, %v11670_v44, %v2976_v34 }
 0xd9e   : > { %v2983_v47 = vsel %vm2967_vm4, %v11673_v57, %v2975_v37  ;;  %v3337_v37 = vld [vmem:[%s13496_s2 + $0x460] sm:$0xff] }
 0xd9f   : > { %9036 = vmatprep.mubr.msk.f32.mxu0 %vm577_vm5, %v2983_v47  ;;  %v3338_v47 = vld [vmem:[%s13496_s2 + $0x468] sm:$0xff] }
 0xda0   : > { %9037 = vmatmul.mubr.msk.f32.gmra.mrb[62].mxu0 %vm577_vm5, %v2984_v60  ;;  %v9989_v60 = vpack.c.bf16 %v3338_v47, %v3337_v37  ;;  %v3513_v37 = vld [vmem:[%s13496_s2 + $0x4b0] sm:$0xff]  ;;  %v3514_v47 = vld [vmem:[%s13496_s2 + $0x4b8] sm:$0xff] }
 0xda2   : > { %9990 = vmatprep.subr.bf16.mxu0 %v9989_v60 }
 0xda3   : > { %9992 = vmatpush3.bf16.msra.mxu0 %v9989_v60  ;;  %v10009_v60 = vpack.c.bf16 %v3514_v47, %v3513_v37  ;;  %v3685_v47 = vld [vmem:[%s13496_s2 + $0x560] sm:$0xff] }
 0xda4   : > { %9994 = vmatprep.subr.bf16.mxu0 %v9993_v62 }
 0xda7   : > { %9996 = vmatpush3.bf16.msra.mxu0 %v9993_v62  ;;  %v3682_v62 = vld [vmem:[%s13496_s2 + $0x548] sm:$0xff] }
 0xda8   : > { %v10013_v63 = vpack.c.bf16 %v3682_v62, %v3681_v50  ;;  %v3687_v50 = vld [vmem:[%s13496_s2 + $0x570] sm:$0xff]  ;;  %v3688_v62 = vld [vmem:[%s13496_s2 + $0x578] sm:$0xff] }
 0xdaa   : > { %10014 = vmatprep.subr.bf16.mxu0 %v10013_v63 }
 0xe67   : > { %v9029_v4 = vpop.f32.mrb[56].mxu0 }
 0xe68   : > { %v3094_v16 = vadd.f32 %v9029_v4, %v7692_v61  ;;  %v3088_v9 = vpop.f32.mrb[57].mxu0 }
 0xe69   : > { %v3089_v8 = vadd.f32 %v7692_v61, %v3088_v9 }
 0xe6a   : > { %v11715_v18 = vadd.f32 %v3094_v16, %v11632_v19 }
 0xe6b   : > { %v11718_v15 = vadd.f32 %v3089_v8, %v11635_v24  ;;  %v9032_v10 = vpop.f32.mrb[58].mxu0 }
 0xe6c   : > { %v3144_v11 = vmul.f32 0.2, %v11715_v18  ;;  %v3104_v12 = vadd.f32 %v9032_v10, %v7692_v61  ;;  %v3098_v17 = vpop.f32.mrb[59].mxu0  ;;  %vm3136_vm7 = vcmp.gt.f32.partialorder %v11715_v18, 0.0 }
 0xe6d   : > { %v3099_v23 = vadd.f32 %v7692_v61, %v3098_v17  ;;  %vm3135_vm8 = vcmp.gt.f32.partialorder %v11718_v15, 0.0  ;;  %v3143_v30 = vmul.f32 0.2, %v11718_v15 }
 0xe6e   : > { %v11725_v33 = vadd.f32 %v3104_v12, %v11642_v36  ;;  %v3152_v29 = vsel %vm3136_vm7, %v11715_v18, %v3144_v11 }
 0xe6f   : > { %v11728_v19 = vadd.f32 %v3099_v23, %v11645_v20  ;;  %v9035_v24 = vpop.f32.mrb[60].mxu0  ;;  %v3151_v26 = vsel %vm3135_vm8, %v11718_v15, %v3143_v30 }
 0xe70   : > { %v3114_v27 = vadd.f32 %v9035_v24, %v7692_v61  ;;  %v3108_v28 = vpop.f32.mrb[61].mxu0  ;;  %9055 = vmatprep.mubr.msk.f32.mxu1 %vm577_vm5, %v3151_v26  ;;  %v3146_v32 = vmul.f32 0.2, %v11725_v33  ;;  %vm3138_vm10 = vcmp.gt.f32.partialorder %v11725_v33, 0.0 }
 0xe71   : > { %v3109_v35 = vadd.f32 %v7692_v61, %v3108_v28  ;;  %9056 = vmatmul.mubr.msk.f32.vlgmr.msra.gmra.mrb[64].mxu1 %vm577_vm5, %v3152_v29  ;;  %vm3137_vm9 = vcmp.gt.f32.partialorder %v11728_v19, 0.0  ;;  %v3145_v36 = vmul.f32 0.2, %v11728_v19 }
 0xe72   : > { %v11739_v20 = vadd.f32 %v3114_v27, %v11656_v21  ;;  %v3154_v51 = vsel %vm3138_vm10, %v11725_v33, %v3146_v32  ;;  %10000 = vmatpush3.bf16.msra.mxu1 %v9997_v46  ;;  %v10017_v46 = vpack.c.bf16 %v3684_v5, %v3683_v43  ;;  %v10025_v43 = vpack.c.bf16 %v3688_v62, %v3687_v50  ;;  %v4197_v5 = vld [vmem:[%s13496_s2 + $0x38] sm:$0xff] }
 0xe73   : > { %v11742_v38 = vadd.f32 %v3109_v35, %v11659_v41  ;;  %v9038_v39 = vpop.f32.mrb[62].mxu0  ;;  %v3153_v42 = vsel %vm3137_vm9, %v11728_v19, %v3145_v36  ;;  %10002 = vmatprep.subr.bf16.mxu1 %v10001_v13 }
 0xe74   : > { %v3124_v45 = vadd.f32 %v9038_v39, %v7692_v61  ;;  %v3118_v48 = vpop.f32.mrb[63].mxu0  ;;  %9058 = vmatprep.mubr.msk.f32.mxu1 %vm577_vm5, %v3153_v42  ;;  %v3148_v54 = vmul.f32 0.2, %v11739_v20  ;;  %vm3140_vm13 = vcmp.gt.f32.partialorder %v11739_v20, 0.0 }
 0xe75   : > { %v3119_v55 = vadd.f32 %v7692_v61, %v3118_v48  ;;  %9059 = vmatmul.mubr.msk.f32.gmra.mrb[66].mxu1 %vm577_vm5, %v3154_v51  ;;  %vm3139_vm12 = vcmp.gt.f32.partialorder %v11742_v38, 0.0  ;;  %v3147_v21 = vmul.f32 0.2, %v11742_v38 }
 0xe76   : > { %v11753_v41 = vadd.f32 %v3124_v45, %v11670_v44  ;;  %v3156_v25 = vsel %vm3140_vm13, %v11739_v20, %v3148_v54  ;;  %10004 = vmatpush3.bf16.msra.mxu1 %v10001_v13 }
 0xe77   : > { %v11756_v56 = vadd.f32 %v3119_v55, %v11673_v57  ;;  %v3155_v22 = vsel %vm3139_vm12, %v11742_v38, %v3147_v21 }
 0xe78   : > { %9061 = vmatprep.mubr.msk.f32.mxu1 %vm577_vm5, %v3155_v22  ;;  %v3150_v31 = vmul.f32 0.2, %v11753_v41  ;;  %vm3142_vm15 = vcmp.gt.f32.partialorder %v11753_v41, 0.0 }
 0xe79   : > { %9062 = vmatmul.mubr.msk.f32.gmra.mrb[68].mxu1 %vm577_vm5, %v3156_v25  ;;  %vm3141_vm14 = vcmp.gt.f32.partialorder %v11756_v56, 0.0  ;;  %v3149_v34 = vmul.f32 0.2, %v11756_v56 }
 0xe7a   : > { %v3158_v57 = vsel %vm3142_vm15, %v11753_v41, %v3150_v31 }
 0xe7b   : > { %v3157_v44 = vsel %vm3141_vm14, %v11756_v56, %v3149_v34  ;;  %v3511_v34 = vld [vmem:[%s13496_s2 + $0x4a0] sm:$0xff] }
 0xe7c   : > { %9064 = vmatprep.mubr.msk.f32.mxu1 %vm577_vm5, %v3157_v44  ;;  %v3512_v44 = vld [vmem:[%s13496_s2 + $0x4a8] sm:$0xff] }
 0xe7d   : > { %9065 = vmatmul.mubr.msk.f32.gmra.mrb[70].mxu1 %vm577_vm5, %v3158_v57  ;;  %v10005_v57 = vpack.c.bf16 %v3512_v44, %v3511_v34  ;;  %v3898_v44 = vld [vmem:[%s13496_s2 + $0x10] sm:$0xff] }
 0xe7f   : > { %10006 = vmatprep.subr.bf16.mxu1 %v10005_v57 }
 0xe80   : > { %10008 = vmatpush3.bf16.msra.mxu1 %v10005_v57  ;;  %v3899_v57 = vld [vmem:[%s13496_s2 + $0x18] sm:$0xff] }
 0xe81   : > { %10010 = vmatprep.subr.bf16.mxu1 %v10009_v60  ;;  %v10033_v37 = vpack.c.bf16 %v3899_v57, %v3898_v44 }
 0xe84   : > { %10012 = vmatpush3.bf16.msra.mxu1 %v10009_v60  ;;  %v3686_v60 = vld [vmem:[%s13496_s2 + $0x568] sm:$0xff] }
 0xe85   : > { %9151 = vmatprep.subr.mxu1 %v3900_v40 }
 0xf44   : > { %v9057_v3 = vpop.f32.mrb[64].mxu1 }
 0xf45   : > { %v3268_v14 = vadd.f32 %v9057_v3, %v7701_v49  ;;  %v3262_v61 = vpop.f32.mrb[65].mxu1 }
 0xf46   : > { %v3263_v4 = vadd.f32 %v7701_v49, %v3262_v61 }
 0xf47   : > { %v11798_v16 = vadd.f32 %v3268_v14, %v11715_v18 }
 0xf48   : > { %v11801_v9 = vadd.f32 %v3263_v4, %v11718_v15  ;;  %v9060_v8 = vpop.f32.mrb[66].mxu1 }
 0xf49   : > { %v3318_v10 = vmul.f32 0.2, %v11798_v16  ;;  %v3278_v11 = vadd.f32 %v9060_v8, %v7701_v49  ;;  %v3272_v12 = vpop.f32.mrb[67].mxu1  ;;  %vm3310_vm1 = vcmp.gt.f32.partialorder %v11798_v16, 0.0 }
 0xf4a   : > { %v3273_v17 = vadd.f32 %v7701_v49, %v3272_v12  ;;  %vm3309_vm2 = vcmp.gt.f32.partialorder %v11801_v9, 0.0  ;;  %v3317_v23 = vmul.f32 0.2, %v11801_v9 }
 0xf4b   : > { %v11808_v30 = vadd.f32 %v3278_v11, %v11725_v33  ;;  %v3326_v28 = vsel %vm3310_vm1, %v11798_v16, %v3318_v10 }
 0xf4c   : > { %v11811_v18 = vadd.f32 %v3273_v17, %v11728_v19  ;;  %v9063_v15 = vpop.f32.mrb[68].mxu1  ;;  %v3325_v24 = vsel %vm3309_vm2, %v11801_v9, %v3317_v23  ;;  %v3896_v17 = vld [vmem:[%s13496_s2] sm:$0xff]  ;;  %v3897_v23 = vld [vmem:[%s13496_s2 + $0x8] sm:$0xff] }
 0xf4d   : > { %v3288_v26 = vadd.f32 %v9063_v15, %v7701_v49  ;;  %v3282_v27 = vpop.f32.mrb[69].mxu1  ;;  %9083 = vmatprep.mubr.msk.f32.mxu0 %vm577_vm5, %v3325_v24  ;;  %v3320_v29 = vmul.f32 0.2, %v11808_v30  ;;  %vm3312_vm4 = vcmp.gt.f32.partialorder %v11808_v30, 0.0 }
 0xf4e   : > { %v3283_v32 = vadd.f32 %v7701_v49, %v3282_v27  ;;  %9084 = vmatmul.mubr.msk.f32.vlgmr.msra.gmra.mrb[64].mxu0 %vm577_vm5, %v3326_v28  ;;  %vm3311_vm3 = vcmp.gt.f32.partialorder %v11811_v18, 0.0  ;;  %v3319_v33 = vmul.f32 0.2, %v11811_v18  ;;  %v10029_v28 = vpack.c.bf16 %v3897_v23, %v3896_v17 }
 0xf4f   : > { %v11822_v19 = vadd.f32 %v3288_v26, %v11739_v20  ;;  %v3328_v48 = vsel %vm3312_vm4, %v11808_v30, %v3320_v29  ;;  %10016 = vmatpush3.bf16.msra.mxu0 %v10013_v63  ;;  %v4196_v63 = vld [vmem:[%s13496_s2 + $0x30] sm:$0xff] }
 0xf50   : > { %v11825_v35 = vadd.f32 %v3283_v32, %v11742_v38  ;;  %v9066_v36 = vpop.f32.mrb[70].mxu1  ;;  %v3327_v39 = vsel %vm3311_vm3, %v11811_v18, %v3319_v33  ;;  %10018 = vmatprep.subr.bf16.mxu0 %v10017_v46 }
 0xf51   : > { %v3298_v42 = vadd.f32 %v9066_v36, %v7701_v49  ;;  %v3292_v45 = vpop.f32.mrb[71].mxu1  ;;  %9086 = vmatprep.mubr.msk.f32.mxu0 %vm577_vm5, %v3327_v39  ;;  %v3322_v51 = vmul.f32 0.2, %v11822_v19  ;;  %vm3314_vm7 = vcmp.gt.f32.partialorder %v11822_v19, 0.0 }
 0xf52   : > { %v3293_v54 = vadd.f32 %v7701_v49, %v3292_v45  ;;  %9087 = vmatmul.mubr.msk.f32.gmra.mrb[66].mxu0 %vm577_vm5, %v3328_v48  ;;  %vm3313_vm6 = vcmp.gt.f32.partialorder %v11825_v35, 0.0  ;;  %v3321_v20 = vmul.f32 0.2, %v11825_v35 }
 0xf53   : > { %v11836_v38 = vadd.f32 %v3298_v42, %v11753_v41  ;;  %v3330_v22 = vsel %vm3314_vm7, %v11822_v19, %v3322_v51  ;;  %10020 = vmatpush3.bf16.msra.mxu0 %v10017_v46  ;;  %v10037_v46 = vpack.c.bf16 %v4197_v5, %v4196_v63 }
 0xf54   : > { %v11839_v55 = vadd.f32 %v3293_v54, %v11756_v56  ;;  %v3329_v21 = vsel %vm3313_vm6, %v11825_v35, %v3321_v20 }
 0xf55   : > { %9089 = vmatprep.mubr.msk.f32.mxu0 %vm577_vm5, %v3329_v21  ;;  %v3324_v25 = vmul.f32 0.2, %v11836_v38  ;;  %vm3316_vm9 = vcmp.gt.f32.partialorder %v11836_v38, 0.0 }
 0xf56   : > { %9090 = vmatmul.mubr.msk.f32.gmra.mrb[68].mxu0 %vm577_vm5, %v3330_v22  ;;  %vm3315_vm8 = vcmp.gt.f32.partialorder %v11839_v55, 0.0  ;;  %v3323_v31 = vmul.f32 0.2, %v11839_v55 }
 0xf57   : > { %v3332_v56 = vsel %vm3316_vm9, %v11836_v38, %v3324_v25 }
 0xf58   : > { %v3331_v41 = vsel %vm3315_vm8, %v11839_v55, %v3323_v31 }
 0xf59   : > { %9092 = vmatprep.mubr.msk.f32.mxu0 %vm577_vm5, %v3331_v41 }
 0xf5a   : > { %9093 = vmatmul.mubr.msk.f32.gmra.mrb[70].mxu0 %vm577_vm5, %v3332_v56 }
0x1021   : > { %v9085_v13 = vpop.f32.mrb[64].mxu0 }
0x1022   : > { %v3442_v49 = vadd.f32 %v9085_v13, %v7710_v2  ;;  %v3436_v3 = vpop.f32.mrb[65].mxu0 }
0x1023   : > { %v3437_v14 = vadd.f32 %v7710_v2, %v3436_v3 }
0x1024   : > { %v11884_v61 = vadd.f32 %v3442_v49, %v11798_v16 }
0x1025   : > { %v11887_v4 = vadd.f32 %v3437_v14, %v11801_v9  ;;  %v9088_v8 = vpop.f32.mrb[66].mxu0 }
0x1026   : > { %v3492_v10 = vmul.f32 0.2, %v11884_v61  ;;  %v3452_v11 = vadd.f32 %v9088_v8, %v7710_v2  ;;  %v3446_v12 = vpop.f32.mrb[67].mxu0  ;;  %vm3484_vm10 = vcmp.gt.f32.partialorder %v11884_v61, 0.0 }
0x1027   : > { %v3447_v16 = vadd.f32 %v7710_v2, %v3446_v12  ;;  %vm3483_vm12 = vcmp.gt.f32.partialorder %v11887_v4, 0.0  ;;  %v3491_v9 = vmul.f32 0.2, %v11887_v4 }
0x1028   : > { %v11900_v15 = vadd.f32 %v3452_v11, %v11808_v30  ;;  %v3500_v33 = vsel %vm3484_vm10, %v11884_v61, %v3492_v10 }
0x1029   : > { %v11903_v24 = vadd.f32 %v3447_v16, %v11811_v18  ;;  %v9091_v26 = vpop.f32.mrb[68].mxu0  ;;  %v3499_v27 = vsel %vm3483_vm12, %v11887_v4, %v3491_v9  ;;  %v4198_v16 = vld [vmem:[%s13496_s2 + $0x40] sm:$0xff]  ;;  %v4199_v9 = vld [vmem:[%s13496_s2 + $0x48] sm:$0xff] }
0x102a   : > { %v3462_v29 = vadd.f32 %v9091_v26, %v7710_v2  ;;  %v3456_v32 = vpop.f32.mrb[69].mxu0  ;;  %9111 = vmatprep.mubr.msk.f32.mxu1 %vm577_vm5, %v3499_v27  ;;  %v3494_v36 = vmul.f32 0.2, %v11900_v15  ;;  %vm3486_vm14 = vcmp.gt.f32.partialorder %v11900_v15, 0.0 }
0x102b   : > { %v3457_v39 = vadd.f32 %v7710_v2, %v3456_v32  ;;  %9112 = vmatmul.mubr.msk.f32.vlgmr.msra.gmra.mrb[72].mxu1 %vm577_vm5, %v3500_v33  ;;  %vm3485_vm13 = vcmp.gt.f32.partialorder %v11903_v24, 0.0  ;;  %v3493_v30 = vmul.f32 0.2, %v11903_v24  ;;  %v10041_v32 = vpack.c.bf16 %v4199_v9, %v4198_v16 }
0x102c   : > { %v11914_v18 = vadd.f32 %v3462_v29, %v11822_v19  ;;  %9152 = vmatpush3.msra.mxu1 %v3900_v40  ;;  %v3502_v20 = vsel %vm3486_vm14, %v11900_v15, %v3494_v36  ;;  %v10021_v40 = vpack.c.bf16 %v3686_v60, %v3685_v47 }
0x102d   : > { %v11917_v42 = vadd.f32 %v3457_v39, %v11825_v35  ;;  %v9094_v45 = vpop.f32.mrb[70].mxu0  ;;  %v3501_v48 = vsel %vm3485_vm13, %v11903_v24, %v3493_v30  ;;  %10030 = vmatprep.subr.bf16.mxu1 %v10029_v28 }
0x102e   : > { %v3472_v51 = vadd.f32 %v9094_v45, %v7710_v2  ;;  %v3466_v54 = vpop.f32.mrb[71].mxu0  ;;  %9114 = vmatprep.mubr.msk.f32.mxu1 %vm577_vm5, %v3501_v48  ;;  %v3496_v21 = vmul.f32 0.2, %v11914_v18  ;;  %vm3488_vm1 = vcmp.gt.f32.partialorder %v11914_v18, 0.0  ;;  %10022 = vmatprep.subr.bf16.mxu0 %v10021_v40  ;;  %v4200_v45 = vld [vmem:[%s13496_s2 + $0x50] sm:$0xff]  ;;  %v4201_v48 = vld [vmem:[%s13496_s2 + $0x58] sm:$0xff] }
0x102f   : > { %v3467_v22 = vadd.f32 %v7710_v2, %v3466_v54  ;;  %9115 = vmatmul.mubr.msk.f32.gmra.mrb[74].mxu1 %vm577_vm5, %v3502_v20  ;;  %vm3487_vm15 = vcmp.gt.f32.partialorder %v11917_v42, 0.0  ;;  %v3495_v19 = vmul.f32 0.2, %v11917_v42  ;;  %10024 = vmatpush3.bf16.msra.mxu0 %v10021_v40  ;;  %v7719_v2 = vld [vmem:[%s13496_s2 + $0x538] ss:$0 sm:$0xff] }
0x1030   : > { %v11928_v35 = vadd.f32 %v3472_v51, %v11836_v38  ;;  %v3504_v41 = vsel %vm3488_vm1, %v11914_v18, %v3496_v21  ;;  %10026 = vmatprep.subr.bf16.mxu0 %v10025_v43 }
0x1031   : > { %v11931_v25 = vadd.f32 %v3467_v22, %v11839_v55  ;;  %v3503_v31 = vsel %vm3487_vm15, %v11917_v42, %v3495_v19  ;;  %v10045_v22 = vpack.c.bf16 %v4201_v48, %v4200_v45  ;;  %v4366_v48 = vld [vmem:[%s13496_s2 + $0x98] sm:$0xff] }
0x1032   : > { %9117 = vmatprep.mubr.msk.f32.mxu1 %vm577_vm5, %v3503_v31  ;;  %v3498_v56 = vmul.f32 0.2, %v11928_v35  ;;  %vm3490_vm3 = vcmp.gt.f32.partialorder %v11928_v35, 0.0 }
0x1033   : > { %9118 = vmatmul.mubr.msk.f32.gmra.mrb[76].mxu1 %vm577_vm5, %v3504_v41  ;;  %vm3489_vm2 = vcmp.gt.f32.partialorder %v11931_v25, 0.0  ;;  %v3497_v34 = vmul.f32 0.2, %v11931_v25  ;;  %10028 = vmatpush3.bf16.msra.mxu0 %v10025_v43 }
0x1034   : > { %v3506_v55 = vsel %vm3490_vm3, %v11928_v35, %v3498_v56  ;;  %10038 = vmatprep.subr.bf16.mxu0 %v10037_v46 }
0x1035   : > { %v3505_v38 = vsel %vm3489_vm2, %v11931_v25, %v3497_v34  ;;  %v4202_v34 = vld [vmem:[%s13496_s2 + $0x60] sm:$0xff] }
0x1036   : > { %9120 = vmatprep.mubr.msk.f32.mxu1 %vm577_vm5, %v3505_v38 }
0x1037   : > { %9121 = vmatmul.mubr.msk.f32.gmra.mrb[78].mxu1 %vm577_vm5, %v3506_v55 }
0x1038   : > { %9153 = vmatprep.mubr.msk.f32.mxu1 %vm267_vm0, %v10504_v53  ;;  %v3833_v53 = vld [vmem:[%s10491_s13 + $0x48] sm:$0xff] }
0x103b   : > { %9154 = vmatmul.mubr.msk.f32.vlgmr.msra.gmra.mrb[80].mxu1 %vm267_vm0, %v10501_v52  ;;  %v3832_v52 = vld [vmem:[%s10491_s13 + $0x40] sm:$0xff] }
0x103c   : > { %10032 = vmatpush3.bf16.msra.mxu1 %v10029_v28  ;;  %9156 = vmatprep.mubr.msk.f32.mxu1 %vm267_vm0, %v10516_v59  ;;  %v3835_v59 = vld [vmem:[%s10491_s13 + $0x58] sm:$0xff] }
0x103d   : > { %10034 = vmatprep.subr.bf16.mxu1 %v10033_v37 }
0x103f   : > { %9157 = vmatmul.mubr.msk.f32.gmra.mrb[82].mxu1 %vm267_vm0, %v10513_v58  ;;  %v3834_v58 = vld [vmem:[%s10491_s13 + $0x50] sm:$0xff] }
0x1040   : > { %9159 = vmatprep.mubr.msk.f32.mxu1 %vm267_vm0, %v10528_v1  ;;  %10036 = vmatpush3.bf16.msra.mxu1 %v10033_v37  ;;  %v3836_v1 = vld [vmem:[%s10491_s13 + $0x60] sm:$0xff] }
0x1043   : > { %9160 = vmatmul.mubr.msk.f32.gmra.mrb[84].mxu1 %vm267_vm0, %v10525_v0  ;;  %v3837_v0 = vld [vmem:[%s10491_s13 + $0x68] sm:$0xff] }
0x1044   : > { %9162 = vmatprep.mubr.msk.f32.mxu1 %vm267_vm0, %v10540_v7  ;;  %v3838_v7 = vld [vmem:[%s10491_s13 + $0x70] sm:$0xff] }
0x1047   : > { %9163 = vmatmul.mubr.msk.f32.gmra.mrb[86].mxu1 %vm267_vm0, %v10537_v6  ;;  %v3839_v6 = vld [vmem:[%s10491_s13 + $0x78] sm:$0xff] }
0x1048   : > { %9173 = vmatprep.mubr.msk.f32.mxu1 %vm397_vm11, %v3832_v52 }
0x104b   : > { %9174 = vmatmul.mubr.msk.f32.vlgmr.msra.gmra.mrb[80].mxu1 %vm397_vm11, %v3833_v53 }
0x104c   : > { %9176 = vmatprep.mubr.msk.f32.mxu1 %vm397_vm11, %v3834_v58 }
0x104f   : > { %9177 = vmatmul.mubr.msk.f32.gmra.mrb[82].mxu1 %vm397_vm11, %v3835_v59 }
0x1050   : > { %9179 = vmatprep.mubr.msk.f32.mxu1 %vm397_vm11, %v3836_v1 }
0x1053   : > { %9180 = vmatmul.mubr.msk.f32.gmra.mrb[84].mxu1 %vm397_vm11, %v3837_v0 }
0x1054   : > { %9182 = vmatprep.mubr.msk.f32.mxu1 %vm397_vm11, %v3838_v7 }
0x1057   : > { %9183 = vmatmul.mubr.msk.f32.gmra.mrb[86].mxu1 %vm397_vm11, %v3839_v6 }
0x10fe   : > { %v9113_v13 = vpop.f32.mrb[72].mxu1 }
0x10ff   : > { %v3616_v49 = vadd.f32 %v9113_v13, %v7719_v2  ;;  %v3610_v3 = vpop.f32.mrb[73].mxu1 }
0x1100   : > { %v3611_v14 = vadd.f32 %v7719_v2, %v3610_v3 }
0x1101   : > { %v3650_v8 = vadd.f32 %v3616_v49, %v11884_v61 }
0x1102   : > { %v3649_v10 = vadd.f32 %v3611_v14, %v11887_v4  ;;  %v9116_v11 = vpop.f32.mrb[74].mxu1 }
0x1103   : > { %v3666_v12 = vmul.f32 0.2, %v3650_v8  ;;  %v3626_v17 = vadd.f32 %v9116_v11, %v7719_v2  ;;  %v3620_v23 = vpop.f32.mrb[75].mxu1  ;;  %vm3658_vm0 = vcmp.gt.f32.partialorder %v3650_v8, 0.0 }
0x1104   : > { %v3665_v26 = vmul.f32 0.2, %v3649_v10  ;;  %v3621_v27 = vadd.f32 %v7719_v2, %v3620_v23  ;;  %vm3657_vm11 = vcmp.gt.f32.partialorder %v3649_v10, 0.0 }
0x1105   : > { %v3652_v61 = vadd.f32 %v3626_v17, %v11900_v15  ;;  %v3674_v33 = vsel %vm3658_vm0, %v3650_v8, %v3666_v12 }
0x1106   : > { %v3651_v4 = vadd.f32 %v3621_v27, %v11903_v24  ;;  %v9119_v28 = vpop.f32.mrb[76].mxu1  ;;  %v3673_v29 = vsel %vm3657_vm11, %v3649_v10, %v3665_v26  ;;  %vm3823_vm11 = vcmask 7168  }
0x1107   : > { %v3668_v36 = vmul.f32 0.2, %v3652_v61  ;;  %v3636_v39 = vadd.f32 %v9119_v28, %v7719_v2  ;;  %v3630_v30 = vpop.f32.mrb[77].mxu1  ;;  %9139 = vmatprep.mubr.msk.f32.mxu0 %vm577_vm5, %v3673_v29  ;;  %vm3660_vm6 = vcmp.gt.f32.partialorder %v3652_v61, 0.0 }
0x1108   : > { %v3667_v15 = vmul.f32 0.2, %v3651_v4  ;;  %v3631_v51 = vadd.f32 %v7719_v2, %v3630_v30  ;;  %9140 = vmatmul.mubr.msk.f32.vlgmr.msra.gmra.mrb[72].mxu0 %vm577_vm5, %v3674_v33  ;;  %vm3659_vm4 = vcmp.gt.f32.partialorder %v3651_v4, 0.0  ;;  %v4363_v33 = vld [vmem:[%s13496_s2 + $0x80] sm:$0xff]  ;;  %v4365_v30 = vld [vmem:[%s13496_s2 + $0x90] sm:$0xff] }
0x1109   : > { %v3654_v24 = vadd.f32 %v3636_v39, %v11914_v18  ;;  %10040 = vmatpush3.bf16.msra.mxu0 %v10037_v46  ;;  %v3676_v56 = vsel %vm3660_vm6, %v3652_v61, %v3668_v36  ;;  %v4203_v18 = vld [vmem:[%s13496_s2 + $0x68] sm:$0xff] }
0x110a   : > { %v3653_v54 = vadd.f32 %v3631_v51, %v11917_v42  ;;  %v9122_v20 = vpop.f32.mrb[78].mxu1  ;;  %v3675_v21 = vsel %vm3659_vm4, %v3651_v4, %v3667_v15  ;;  %10042 = vmatprep.subr.bf16.mxu0 %v10041_v32  ;;  %v10049_v37 = vpack.c.bf16 %v4203_v18, %v4202_v34  ;;  %v4364_v36 = vld [vmem:[%s13496_s2 + $0x88] sm:$0xff]  ;;  %v4367_v15 = vld [vmem:[%s13496_s2 + $0xa0] sm:$0xff] }
0x110b   : > { %v3670_v19 = vmul.f32 0.2, %v3654_v24  ;;  %v3646_v31 = vadd.f32 %v9122_v20, %v7719_v2  ;;  %v3640_v41 = vpop.f32.mrb[79].mxu1  ;;  %9142 = vmatprep.mubr.msk.f32.mxu0 %vm577_vm5, %v3675_v21  ;;  %vm3662_vm8 = vcmp.gt.f32.partialorder %v3654_v24, 0.0  ;;  %v10057_v45 = vpack.c.bf16 %v4365_v30, %v4364_v36  ;;  %v4528_v21 = vld [vmem:[%s13496_s2 + $0xc0] sm:$0xff]  ;;  %v4533_v18 = vld [vmem:[%s13496_s2 + $0xe8] sm:$0xff] }
0x110c   : > { %v3669_v38 = vmul.f32 0.2, %v3653_v54  ;;  %v3641_v42 = vadd.f32 %v7719_v2, %v3640_v41  ;;  %9143 = vmatmul.mubr.msk.f32.gmra.mrb[74].mxu0 %vm577_vm5, %v3676_v56  ;;  %vm3661_vm7 = vcmp.gt.f32.partialorder %v3653_v54, 0.0  ;;  %v10061_v51 = vpack.c.bf16 %v4367_v15, %v4366_v48  ;;  %v4531_v41 = vld [vmem:[%s13496_s2 + $0xd8] sm:$0xff]  ;;  %v4532_v34 = vld [vmem:[%s13496_s2 + $0xe0] sm:$0xff]  ;;  %v4534_v15 = vld [vmem:[%s13496_s2 + $0xf0] sm:$0xff] }
0x110d   : > { %v3656_v55 = vadd.f32 %v3646_v31, %v11928_v35  ;;  %10044 = vmatpush3.bf16.msra.mxu0 %v10041_v32  ;;  %v3678_v53 = vsel %vm3662_vm8, %v3654_v24, %v3670_v19  ;;  %v4362_v32 = vld [vmem:[%s13496_s2 + $0x78] sm:$0xff]  ;;  %v4368_v24 = vld [vmem:[%s13496_s2 + $0xa8] sm:$0xff]  ;;  %v4530_v19 = vld [vmem:[%s13496_s2 + $0xd0] sm:$0xff] }
0x110e   : > { %v3655_v44 = vadd.f32 %v3641_v42, %v11931_v25  ;;  %v3677_v57 = vsel %vm3661_vm7, %v3653_v54, %v3669_v38  ;;  %10046 = vmatprep.subr.bf16.mxu0 %v10045_v22  ;;  %v7761_v25 = vld [vmem:[%s13496_s2 + $0x28] ss:$0 sm:$0xff]  ;;  %v10053_v39 = vpack.c.bf16 %v4363_v33, %v4362_v32  ;;  %v4369_v54 = vld [vmem:[%s13496_s2 + $0xb0] sm:$0xff]  ;;  %v10073_v56 = vpack.c.bf16 %v4531_v41, %v4530_v19  ;;  %v7728_v42 = vld [vmem:[%s13496_s2 + $0x580] ss:$0 sm:$0xff] }
0x110f   : > { %v3672_v52 = vmul.f32 0.2, %v3656_v55  ;;  %9145 = vmatprep.mubr.msk.f32.mxu0 %vm577_vm5, %v3677_v57  ;;  %vm3664_vm10 = vcmp.gt.f32.partialorder %v3656_v55, 0.0  ;;  %v10065_v20 = vpack.c.bf16 %v4369_v54, %v4368_v24  ;;  %v10077_v38 = vpack.c.bf16 %v4533_v18, %v4532_v34  ;;  %v4702_v54 = vld [vmem:[%s13496_s2 + $0x100] sm:$0xff]  ;;  %v4705_v19 = vld [vmem:[%s13496_s2 + $0x118] sm:$0xff] }
0x1110   : > { %v3671_v58 = vmul.f32 0.2, %v3655_v44  ;;  %9146 = vmatmul.mubr.msk.f32.gmra.mrb[76].mxu0 %vm577_vm5, %v3678_v53  ;;  %vm3663_vm9 = vcmp.gt.f32.partialorder %v3655_v44, 0.0  ;;  %v7771_v41 = vld [vmem:[%s13496_s2 + $0xb8] ss:$0 sm:$0xff] }
0x1111   : > { %10048 = vmatpush3.bf16.msra.mxu0 %v10045_v22  ;;  %v3680_v35 = vsel %vm3664_vm10, %v3656_v55, %v3672_v52  ;;  %v4529_v22 = vld [vmem:[%s13496_s2 + $0xc8] sm:$0xff] }
0x1112   : > { %v3679_v59 = vsel %vm3663_vm9, %v3655_v44, %v3671_v58  ;;  %10050 = vmatprep.subr.bf16.mxu0 %v10049_v37  ;;  %v10069_v31 = vpack.c.bf16 %v4529_v22, %v4528_v21  ;;  %v4704_v21 = vld [vmem:[%s13496_s2 + $0x110] sm:$0xff] }
0x1113   : > { %9148 = vmatprep.mubr.msk.f32.mxu0 %vm577_vm5, %v3679_v59 }
0x1114   : > { %9149 = vmatmul.mubr.msk.f32.gmra.mrb[78].mxu0 %vm577_vm5, %v3680_v35  ;;  %10070 = vmatprep.subr.bf16.mxu1 %v10069_v31 }
0x1115   : > { %10052 = vmatpush3.bf16.msra.mxu0 %v10049_v37  ;;  %10072 = vmatpush3.bf16.msra.mxu1 %v10069_v31  ;;  %v10089_v31 = vpack.c.bf16 %v4705_v19, %v4704_v21 }
0x1116   : > { %10054 = vmatprep.subr.bf16.mxu0 %v10053_v39  ;;  %10074 = vmatprep.subr.bf16.mxu1 %v10073_v56 }
0x1119   : > { %10076 = vmatpush3.bf16.msra.mxu1 %v10073_v56 }
0x111a   : > { %10078 = vmatprep.subr.bf16.mxu1 %v10077_v38 }
0x111d   : > { %10080 = vmatpush3.bf16.msra.mxu1 %v10077_v38 }
0x111e   : > { %v9175_v1 = vpop.f32.mrb[80].mxu1 }
0x111f   : > { %v4165_v0 = vadd.f32 %v9175_v1, %v7761_v25  ;;  %v4120_v7 = vpop.f32.mrb[81].mxu1 }
0x1120   : > { %v4164_v6 = vadd.f32 %v7761_v25, %v4120_v7 }
0x1121   : > { %v4181_v47 = vmul.f32 0.2, %v4165_v0  ;;  %vm4173_vm12 = vcmp.gt.f32.partialorder %v4165_v0, 0.0 }
0x1122   : > { %vm4172_vm13 = vcmp.gt.f32.partialorder %v4164_v6, 0.0  ;;  %v4180_v60 = vmul.f32 0.2, %v4164_v6  ;;  %v9178_v40 = vpop.f32.mrb[82].mxu1 }
0x1123   : > { %v4167_v50 = vadd.f32 %v9178_v40, %v7761_v25  ;;  %v4130_v62 = vpop.f32.mrb[83].mxu1  ;;  %v4189_v5 = vsel %vm4173_vm12, %v4165_v0, %v4181_v47  ;;  %v7762_v40 = vld [vmem:[%s13496_s2 + $0x70] ss:$0 sm:$0xff] }
0x1124   : > { %v4166_v43 = vadd.f32 %v7761_v25, %v4130_v62  ;;  %v4188_v63 = vsel %vm4172_vm13, %v4164_v6, %v4180_v60 }
0x1125   : > { %v4183_v46 = vmul.f32 0.2, %v4167_v50  ;;  %9201 = vmatprep.mubr.msk.f32.mxu0 %vm577_vm5, %v4188_v63  ;;  %vm4175_vm14 = vcmp.gt.f32.partialorder %v4167_v50, 0.0 }
0x1126   : > { %vm4174_vm15 = vcmp.gt.f32.partialorder %v4166_v43, 0.0  ;;  %v4182_v2 = vmul.f32 0.2, %v4166_v43  ;;  %v9181_v13 = vpop.f32.mrb[84].mxu1  ;;  %9202 = vmatmul.mubr.msk.f32.vlgmr.msra.gmra.mrb[80].mxu0 %vm577_vm5, %v4189_v5 }
0x1127   : > { %v4169_v49 = vadd.f32 %v9181_v13, %v7761_v25  ;;  %v4140_v3 = vpop.f32.mrb[85].mxu1  ;;  %v4191_v11 = vsel %vm4175_vm14, %v4167_v50, %v4183_v46  ;;  %10056 = vmatpush3.bf16.msra.mxu0 %v10053_v39 }
0x1128   : > { %v4168_v14 = vadd.f32 %v7761_v25, %v4140_v3  ;;  %v4190_v8 = vsel %vm4174_vm15, %v4166_v43, %v4182_v2  ;;  %10058 = vmatprep.subr.bf16.mxu0 %v10057_v45 }
0x1129   : > { %v4185_v10 = vmul.f32 0.2, %v4169_v49  ;;  %9204 = vmatprep.mubr.msk.f32.mxu0 %vm577_vm5, %v4190_v8  ;;  %vm4177_vm1 = vcmp.gt.f32.partialorder %v4169_v49, 0.0 }
0x112a   : > { %vm4176_vm2 = vcmp.gt.f32.partialorder %v4168_v14, 0.0  ;;  %v4184_v12 = vmul.f32 0.2, %v4168_v14  ;;  %v9184_v17 = vpop.f32.mrb[86].mxu1  ;;  %9205 = vmatmul.mubr.msk.f32.gmra.mrb[82].mxu0 %vm577_vm5, %v4191_v11 }
0x112b   : > { %v4171_v23 = vadd.f32 %v9184_v17, %v7761_v25  ;;  %v4150_v16 = vpop.f32.mrb[87].mxu1  ;;  %v4193_v61 = vsel %vm4177_vm1, %v4169_v49, %v4185_v10  ;;  %10060 = vmatpush3.bf16.msra.mxu0 %v10057_v45 }
0x112c   : > { %v4170_v9 = vadd.f32 %v7761_v25, %v4150_v16  ;;  %v4192_v26 = vsel %vm4176_vm2, %v4168_v14, %v4184_v12  ;;  %10062 = vmatprep.subr.bf16.mxu0 %v10061_v51 }
0x112d   : > { %v4187_v27 = vmul.f32 0.2, %v4171_v23  ;;  %9207 = vmatprep.mubr.msk.f32.mxu0 %vm577_vm5, %v4192_v26  ;;  %vm4179_vm3 = vcmp.gt.f32.partialorder %v4171_v23, 0.0 }
0x112e   : > { %vm4178_vm0 = vcmp.gt.f32.partialorder %v4170_v9, 0.0  ;;  %v4186_v4 = vmul.f32 0.2, %v4170_v9  ;;  %9208 = vmatmul.mubr.msk.f32.gmra.mrb[84].mxu0 %vm577_vm5, %v4193_v61 }
0x112f   : > { %v4195_v29 = vsel %vm4179_vm3, %v4171_v23, %v4187_v27  ;;  %10064 = vmatpush3.bf16.msra.mxu0 %v10061_v51  ;;  %v4535_v51 = vld [vmem:[%s13496_s2 + $0xf8] sm:$0xff] }
0x1130   : > { %v4194_v28 = vsel %vm4178_vm0, %v4170_v9, %v4186_v4  ;;  %10066 = vmatprep.subr.bf16.mxu0 %v10065_v20  ;;  %v10081_v24 = vpack.c.bf16 %v4535_v51, %v4534_v15 }
0x1131   : > { %9210 = vmatprep.mubr.msk.f32.mxu0 %vm577_vm5, %v4194_v28 }
0x1132   : > { %9211 = vmatmul.mubr.msk.f32.gmra.mrb[86].mxu0 %vm577_vm5, %v4195_v29  ;;  %10082 = vmatprep.subr.bf16.mxu1 %v10081_v24 }
0x1133   : > { %10068 = vmatpush3.bf16.msra.mxu0 %v10065_v20  ;;  %10084 = vmatpush3.bf16.msra.mxu1 %v10081_v24  ;;  %v4703_v20 = vld [vmem:[%s13496_s2 + $0x108] sm:$0xff] }
0x1134   : > { %v10085_v22 = vpack.c.bf16 %v4703_v20, %v4702_v54 }
0x1136   : > { %10086 = vmatprep.subr.bf16.mxu0 %v10085_v22 }
0x11db   : > { %v9141_v55 = vpop.f32.mrb[72].mxu0 }
0x11dc   : > { %v3790_v44 = vadd.f32 %v9141_v55, %v7728_v42  ;;  %v3784_v57 = vpop.f32.mrb[73].mxu0 }
0x11dd   : > { %v3785_v37 = vadd.f32 %v7728_v42, %v3784_v57 }
0x11de   : > { %3825 = vst.msk [vmem:[%s12098_s22 + $0x8] sm:$0xff] %vm3823_vm11, %v3790_v44 }
0x11df   : > { %3824 = vst.msk [vmem:[%s12098_s22] sm:$0xff] %vm3823_vm11, %v3785_v37  ;;  %v9144_v52 = vpop.f32.mrb[74].mxu0 }
0x11e0   : > { %v3800_v53 = vadd.f32 %v9144_v52, %v7728_v42  ;;  %v3794_v58 = vpop.f32.mrb[75].mxu0 }
0x11e1   : > { %v3795_v59 = vadd.f32 %v7728_v42, %v3794_v58 }
0x11e2   : > { %3827 = vst.msk [vmem:[%s12098_s22 + $0x18] sm:$0xff] %vm3823_vm11, %v3800_v53 }
0x11e3   : > { %3826 = vst.msk [vmem:[%s12098_s22 + $0x10] sm:$0xff] %vm3823_vm11, %v3795_v59  ;;  %v9147_v35 = vpop.f32.mrb[76].mxu0 }
0x11e4   : > { %v3810_v25 = vadd.f32 %v9147_v35, %v7728_v42  ;;  %v3804_v1 = vpop.f32.mrb[77].mxu0 }
0x11e5   : > { %v3805_v0 = vadd.f32 %v7728_v42, %v3804_v1 }
0x11e6   : > { %3829 = vst.msk [vmem:[%s12098_s22 + $0x28] sm:$0xff] %vm3823_vm11, %v3810_v25 }
0x11e7   : > { %3828 = vst.msk [vmem:[%s12098_s22 + $0x20] sm:$0xff] %vm3823_vm11, %v3805_v0  ;;  %v9150_v7 = vpop.f32.mrb[78].mxu0 }
0x11e8   : > { %v3820_v6 = vadd.f32 %v9150_v7, %v7728_v42  ;;  %v3814_v47 = vpop.f32.mrb[79].mxu0 }
0x11e9   : > { %v3815_v60 = vadd.f32 %v7728_v42, %v3814_v47 }
0x11ea   : > { %3831 = vst.msk [vmem:[%s12098_s22 + $0x38] sm:$0xff] %vm3823_vm11, %v3820_v6 }
0x11eb   : > { %3830 = vst.msk [vmem:[%s12098_s22 + $0x30] sm:$0xff] %vm3823_vm11, %v3815_v60 }
0x11f9   : > { %v9203_v50 = vpop.f32.mrb[80].mxu0 }
0x11fa   : > { %v4305_v62 = vadd.f32 %v9203_v50, %v7762_v40  ;;  %v4299_v43 = vpop.f32.mrb[81].mxu0 }
0x11fb   : > { %v4300_v63 = vadd.f32 %v7762_v40, %v4299_v43 }
0x11fc   : > { %v4347_v5 = vmul.f32 0.2, %v4305_v62  ;;  %vm4339_vm4 = vcmp.gt.f32.partialorder %v4305_v62, 0.0 }
0x11fd   : > { %vm4338_vm6 = vcmp.gt.f32.partialorder %v4300_v63, 0.0  ;;  %v4346_v46 = vmul.f32 0.2, %v4300_v63  ;;  %v9206_v2 = vpop.f32.mrb[82].mxu0 }
0x11fe   : > { %v4315_v13 = vadd.f32 %v9206_v2, %v7762_v40  ;;  %v4309_v49 = vpop.f32.mrb[83].mxu0  ;;  %v4355_v8 = vsel %vm4339_vm4, %v4305_v62, %v4347_v5 }
0x11ff   : > { %v4310_v3 = vadd.f32 %v7762_v40, %v4309_v49  ;;  %v4354_v14 = vsel %vm4338_vm6, %v4300_v63, %v4346_v46 }
0x1200   : > { %v4349_v10 = vmul.f32 0.2, %v4315_v13  ;;  %9229 = vmatprep.mubr.msk.f32.mxu0 %vm577_vm5, %v4354_v14  ;;  %vm4341_vm7 = vcmp.gt.f32.partialorder %v4315_v13, 0.0  ;;  %v4706_v14 = vld [vmem:[%s13496_s2 + $0x120] sm:$0xff] }
0x1201   : > { %vm4340_vm8 = vcmp.gt.f32.partialorder %v4310_v3, 0.0  ;;  %v4348_v11 = vmul.f32 0.2, %v4310_v3  ;;  %v9209_v12 = vpop.f32.mrb[84].mxu0  ;;  %9230 = vmatmul.mubr.msk.f32.vlgmr.msra.gmra.mrb[88].mxu0 %vm577_vm5, %v4355_v8  ;;  %v4707_v8 = vld [vmem:[%s13496_s2 + $0x128] sm:$0xff] }
0x1202   : > { %v4325_v17 = vadd.f32 %v9209_v12, %v7762_v40  ;;  %v4319_v23 = vpop.f32.mrb[85].mxu0  ;;  %v4357_v27 = vsel %vm4341_vm7, %v4315_v13, %v4349_v10  ;;  %10088 = vmatpush3.bf16.msra.mxu0 %v10085_v22  ;;  %v10093_v10 = vpack.c.bf16 %v4707_v8, %v4706_v14  ;;  %v4709_v12 = vld [vmem:[%s13496_s2 + $0x138] sm:$0xff]  ;;  %v7789_v8 = vld [vmem:[%s13496_s2 + $0x4c8] ss:$0 sm:$0xff] }
0x1203   : > { %v4320_v16 = vadd.f32 %v7762_v40, %v4319_v23  ;;  %v4356_v9 = vsel %vm4340_vm8, %v4310_v3, %v4348_v11  ;;  %10090 = vmatprep.subr.bf16.mxu0 %v10089_v31  ;;  %v4708_v11 = vld [vmem:[%s13496_s2 + $0x130] sm:$0xff]  ;;  %v4876_v23 = vld [vmem:[%s13496_s2 + $0x140] sm:$0xff] }
0x1204   : > { %v4351_v26 = vmul.f32 0.2, %v4325_v17  ;;  %9232 = vmatprep.mubr.msk.f32.mxu0 %vm577_vm5, %v4356_v9  ;;  %vm4343_vm9 = vcmp.gt.f32.partialorder %v4325_v17, 0.0  ;;  %v4878_v9 = vld [vmem:[%s13496_s2 + $0x150] sm:$0xff] }
0x1205   : > { %vm4342_vm10 = vcmp.gt.f32.partialorder %v4320_v16, 0.0  ;;  %v4350_v61 = vmul.f32 0.2, %v4320_v16  ;;  %v9212_v4 = vpop.f32.mrb[86].mxu0  ;;  %9233 = vmatmul.mubr.msk.f32.gmra.mrb[90].mxu0 %vm577_vm5, %v4357_v27  ;;  %v4879_v27 = vld [vmem:[%s13496_s2 + $0x158] sm:$0xff] }
0x1206   : > { %v4335_v28 = vadd.f32 %v9212_v4, %v7762_v40  ;;  %v4329_v29 = vpop.f32.mrb[87].mxu0  ;;  %v4359_v39 = vsel %vm4343_vm9, %v4325_v17, %v4351_v26  ;;  %10092 = vmatpush3.bf16.msra.mxu0 %v10089_v31  ;;  %v10097_v17 = vpack.c.bf16 %v4709_v12, %v4708_v11  ;;  %v7780_v4 = vld [vmem:[%s13496_s2 + $0x4c0] ss:$0 sm:$0xff] }
0x1207   : > { %v4330_v32 = vadd.f32 %v7762_v40, %v4329_v29  ;;  %v4358_v33 = vsel %vm4342_vm10, %v4320_v16, %v4350_v61  ;;  %10094 = vmatprep.subr.bf16.mxu0 %v10093_v10  ;;  %v4877_v16 = vld [vmem:[%s13496_s2 + $0x148] sm:$0xff]  ;;  %v10105_v61 = vpack.c.bf16 %v4879_v27, %v4878_v9 }
0x1208   : > { %v4353_v36 = vmul.f32 0.2, %v4335_v28  ;;  %9235 = vmatprep.mubr.msk.f32.mxu0 %vm577_vm5, %v4358_v33  ;;  %vm4345_vm12 = vcmp.gt.f32.partialorder %v4335_v28, 0.0  ;;  %v10101_v26 = vpack.c.bf16 %v4877_v16, %v4876_v23 }
0x1209   : > { %vm4344_vm13 = vcmp.gt.f32.partialorder %v4330_v32, 0.0  ;;  %v4352_v30 = vmul.f32 0.2, %v4330_v32  ;;  %9236 = vmatmul.mubr.msk.f32.gmra.mrb[92].mxu0 %vm577_vm5, %v4359_v39 }
0x120a   : > { %v4361_v48 = vsel %vm4345_vm12, %v4335_v28, %v4353_v36  ;;  %10096 = vmatpush3.bf16.msra.mxu0 %v10093_v10  ;;  %10102 = vmatprep.subr.bf16.mxu1 %v10101_v26 }
0x120b   : > { %v4360_v45 = vsel %vm4344_vm13, %v4330_v32, %v4352_v30  ;;  %10098 = vmatprep.subr.bf16.mxu0 %v10097_v17 }
0x120c   : > { %9238 = vmatprep.mubr.msk.f32.mxu0 %vm577_vm5, %v4360_v45 }
0x120d   : > { %9239 = vmatmul.mubr.msk.f32.gmra.mrb[94].mxu0 %vm577_vm5, %v4361_v48 }
0x120e   : > { %10100 = vmatpush3.bf16.msra.mxu0 %v10097_v17 }
0x12d4   : > { %v9231_v56 = vpop.f32.mrb[88].mxu0 }
0x12d5   : > { %v12148_v34 = vadd.f32 %v9231_v56, %v7771_v41  ;;  %v4465_v18 = vpop.f32.mrb[89].mxu0 }
0x12d6   : > { %v12150_v38 = vadd.f32 %v7771_v41, %v4465_v18 }
0x12d7   : > { %v4513_v42 = vmul.f32 0.2, %v12148_v34  ;;  %vm4505_vm14 = vcmp.gt.f32.partialorder %v12148_v34, 0.0 }
0x12d8   : > { %v9234_v55 = vpop.f32.mrb[90].mxu0  ;;  %vm4504_vm15 = vcmp.gt.f32.partialorder %v12150_v38, 0.0  ;;  %v4512_v44 = vmul.f32 0.2, %v12150_v38 }
0x12d9   : > { %v12156_v57 = vadd.f32 %v9234_v55, %v7771_v41  ;;  %v4475_v37 = vpop.f32.mrb[91].mxu0  ;;  %v4521_v58 = vsel %vm4505_vm14, %v12148_v34, %v4513_v42 }
0x12da   : > { %v12158_v52 = vadd.f32 %v7771_v41, %v4475_v37  ;;  %v4520_v53 = vsel %vm4504_vm15, %v12150_v38, %v4512_v44 }
0x12db   : > { %9257 = vmatprep.mubr.msk.f32.mxu1 %vm577_vm5, %v4520_v53  ;;  %v4515_v59 = vmul.f32 0.2, %v12156_v57  ;;  %vm4507_vm2 = vcmp.gt.f32.partialorder %v12156_v57, 0.0 }
0x12dc   : > { %v9237_v35 = vpop.f32.mrb[92].mxu0  ;;  %9258 = vmatmul.mubr.msk.f32.vlgmr.msra.gmra.mrb[88].mxu1 %vm577_vm5, %v4521_v58  ;;  %vm4506_vm1 = vcmp.gt.f32.partialorder %v12158_v52, 0.0  ;;  %v4514_v25 = vmul.f32 0.2, %v12158_v52 }
0x12dd   : > { %v12168_v1 = vadd.f32 %v9237_v35, %v7771_v41  ;;  %v4485_v0 = vpop.f32.mrb[93].mxu0  ;;  %v4523_v47 = vsel %vm4507_vm2, %v12156_v57, %v4515_v59  ;;  %10104 = vmatpush3.bf16.msra.mxu1 %v10101_v26 }
0x12de   : > { %v12170_v7 = vadd.f32 %v7771_v41, %v4485_v0  ;;  %v4522_v6 = vsel %vm4506_vm1, %v12158_v52, %v4514_v25  ;;  %10106 = vmatprep.subr.bf16.mxu1 %v10105_v61 }
0x12df   : > { %9260 = vmatprep.mubr.msk.f32.mxu1 %vm577_vm5, %v4522_v6  ;;  %v4517_v60 = vmul.f32 0.2, %v12168_v1  ;;  %vm4509_vm0 = vcmp.gt.f32.partialorder %v12168_v1, 0.0 }
0x12e0   : > { %v9240_v40 = vpop.f32.mrb[94].mxu0  ;;  %9261 = vmatmul.mubr.msk.f32.gmra.mrb[90].mxu1 %vm577_vm5, %v4523_v47  ;;  %vm4508_vm3 = vcmp.gt.f32.partialorder %v12170_v7, 0.0  ;;  %v4516_v50 = vmul.f32 0.2, %v12170_v7 }
0x12e1   : > { %v12180_v62 = vadd.f32 %v9240_v40, %v7771_v41  ;;  %v4495_v43 = vpop.f32.mrb[95].mxu0  ;;  %v4525_v46 = vsel %vm4509_vm0, %v12168_v1, %v4517_v60  ;;  %10108 = vmatpush3.bf16.msra.mxu1 %v10105_v61  ;;  %v4880_v40 = vld [vmem:[%s13496_s2 + $0x160] sm:$0xff] }
0x12e2   : > { %v12182_v63 = vadd.f32 %v7771_v41, %v4495_v43  ;;  %v4524_v5 = vsel %vm4508_vm3, %v12170_v7, %v4516_v50  ;;  %v4881_v50 = vld [vmem:[%s13496_s2 + $0x168] sm:$0xff]  ;;  %v4882_v43 = vld [vmem:[%s13496_s2 + $0x170] sm:$0xff] }
0x12e3   : > { %9263 = vmatprep.mubr.msk.f32.mxu1 %vm577_vm5, %v4524_v5  ;;  %v4519_v2 = vmul.f32 0.2, %v12180_v62  ;;  %vm4511_vm6 = vcmp.gt.f32.partialorder %v12180_v62, 0.0 }
0x12e4   : > { %9264 = vmatmul.mubr.msk.f32.gmra.mrb[92].mxu1 %vm577_vm5, %v4525_v46  ;;  %vm4510_vm4 = vcmp.gt.f32.partialorder %v12182_v63, 0.0  ;;  %v4518_v13 = vmul.f32 0.2, %v12182_v63  ;;  %v5050_v46 = vld [vmem:[%s13496_s2 + $0x180] sm:$0xff] }
0x12e5   : > { %v4527_v3 = vsel %vm4511_vm6, %v12180_v62, %v4519_v2  ;;  %v5051_v2 = vld [vmem:[%s13496_s2 + $0x188] sm:$0xff] }
0x12e6   : > { %v4526_v49 = vsel %vm4510_vm4, %v12182_v63, %v4518_v13  ;;  %v5052_v13 = vld [vmem:[%s13496_s2 + $0x190] sm:$0xff] }
0x12e7   : > { %9266 = vmatprep.mubr.msk.f32.mxu1 %vm577_vm5, %v4526_v49  ;;  %v10117_v49 = vpack.c.bf16 %v5051_v2, %v5050_v46 }
0x12e8   : > { %9267 = vmatmul.mubr.msk.f32.gmra.mrb[94].mxu1 %vm577_vm5, %v4527_v3  ;;  %v5053_v3 = vld [vmem:[%s13496_s2 + $0x198] sm:$0xff] }
0x12e9   : > { %v10121_v14 = vpack.c.bf16 %v5053_v3, %v5052_v13  ;;  %10118 = vmatprep.subr.bf16.mxu0 %v10117_v49 }
0x13af   : > { %v9259_v28 = vpop.f32.mrb[88].mxu1 }
0x13b0   : > { %v4637_v29 = vadd.f32 %v9259_v28, %v7780_v4  ;;  %v4631_v32 = vpop.f32.mrb[89].mxu1 }
0x13b1   : > { %v4632_v33 = vadd.f32 %v7780_v4, %v4631_v32 }
0x13b2   : > { %v12224_v36 = vadd.f32 %v4637_v29, %v12148_v34 }
0x13b3   : > { %v12227_v39 = vadd.f32 %v4632_v33, %v12150_v38  ;;  %v9262_v30 = vpop.f32.mrb[90].mxu1 }
0x13b4   : > { %v4687_v45 = vmul.f32 0.2, %v12224_v36  ;;  %v4647_v48 = vadd.f32 %v9262_v30, %v7780_v4  ;;  %v4641_v15 = vpop.f32.mrb[91].mxu1  ;;  %vm4679_vm7 = vcmp.gt.f32.partialorder %v12224_v36, 0.0 }
0x13b5   : > { %v4642_v51 = vadd.f32 %v7780_v4, %v4641_v15  ;;  %vm4678_vm8 = vcmp.gt.f32.partialorder %v12227_v39, 0.0  ;;  %v4686_v24 = vmul.f32 0.2, %v12227_v39 }
0x13b6   : > { %v12234_v54 = vadd.f32 %v4647_v48, %v12156_v57  ;;  %v4695_v41 = vsel %vm4679_vm7, %v12224_v36, %v4687_v45 }
0x13b7   : > { %v12237_v20 = vadd.f32 %v4642_v51, %v12158_v52  ;;  %v9265_v21 = vpop.f32.mrb[92].mxu1  ;;  %v4694_v22 = vsel %vm4678_vm8, %v12227_v39, %v4686_v24 }
0x13b8   : > { %v4657_v19 = vadd.f32 %v9265_v21, %v7780_v4  ;;  %v4651_v31 = vpop.f32.mrb[93].mxu1  ;;  %9285 = vmatprep.mubr.msk.f32.mxu0 %vm577_vm5, %v4694_v22  ;;  %v4689_v56 = vmul.f32 0.2, %v12234_v54  ;;  %vm4681_vm10 = vcmp.gt.f32.partialorder %v12234_v54, 0.0 }
0x13b9   : > { %v4652_v34 = vadd.f32 %v7780_v4, %v4651_v31  ;;  %9286 = vmatmul.mubr.msk.f32.vlgmr.msra.gmra.mrb[96].mxu0 %vm577_vm5, %v4695_v41  ;;  %vm4680_vm9 = vcmp.gt.f32.partialorder %v12237_v20, 0.0  ;;  %v4688_v18 = vmul.f32 0.2, %v12237_v20 }
0x13ba   : > { %v12248_v38 = vadd.f32 %v4657_v19, %v12168_v1  ;;  %v4697_v52 = vsel %vm4681_vm10, %v12234_v54, %v4689_v56  ;;  %10120 = vmatpush3.bf16.msra.mxu0 %v10117_v49 }
0x13bb   : > { %v12251_v42 = vadd.f32 %v4652_v34, %v12170_v7  ;;  %v9268_v55 = vpop.f32.mrb[94].mxu1  ;;  %v4696_v44 = vsel %vm4680_vm9, %v12237_v20, %v4688_v18  ;;  %10122 = vmatprep.subr.bf16.mxu0 %v10121_v14 }
0x13bc   : > { %v4667_v57 = vadd.f32 %v9268_v55, %v7780_v4  ;;  %v4661_v37 = vpop.f32.mrb[95].mxu1  ;;  %9288 = vmatprep.mubr.msk.f32.mxu0 %vm577_vm5, %v4696_v44  ;;  %v4691_v53 = vmul.f32 0.2, %v12248_v38  ;;  %vm4683_vm13 = vcmp.gt.f32.partialorder %v12248_v38, 0.0 }
0x13bd   : > { %v4662_v58 = vadd.f32 %v7780_v4, %v4661_v37  ;;  %9289 = vmatmul.mubr.msk.f32.gmra.mrb[98].mxu0 %vm577_vm5, %v4697_v52  ;;  %vm4682_vm12 = vcmp.gt.f32.partialorder %v12251_v42, 0.0  ;;  %v4690_v59 = vmul.f32 0.2, %v12251_v42 }
0x13be   : > { %v12262_v35 = vadd.f32 %v4667_v57, %v12180_v62  ;;  %v4699_v0 = vsel %vm4683_vm13, %v12248_v38, %v4691_v53  ;;  %v10109_v62 = vpack.c.bf16 %v4881_v50, %v4880_v40  ;;  %10124 = vmatpush3.bf16.msra.mxu0 %v10121_v14  ;;  %v5054_v53 = vld [vmem:[%s13496_s2 + $0x1a0] sm:$0xff]  ;;  %v7798_v50 = vld [vmem:[%s13496_s2 + $0x4d0] ss:$0 sm:$0xff] }
0x13bf   : > { %v12265_v25 = vadd.f32 %v4662_v58, %v12182_v63  ;;  %v4698_v1 = vsel %vm4682_vm12, %v12251_v42, %v4690_v59  ;;  %v4883_v63 = vld [vmem:[%s13496_s2 + $0x178] sm:$0xff]  ;;  %v5055_v58 = vld [vmem:[%s13496_s2 + $0x1a8] sm:$0xff] }
0x13c0   : > { %9291 = vmatprep.mubr.msk.f32.mxu0 %vm577_vm5, %v4698_v1  ;;  %v4693_v7 = vmul.f32 0.2, %v12262_v35  ;;  %vm4685_vm15 = vcmp.gt.f32.partialorder %v12262_v35, 0.0  ;;  %10110 = vmatprep.subr.bf16.mxu1 %v10109_v62  ;;  %v10113_v5 = vpack.c.bf16 %v4883_v63, %v4882_v43  ;;  %v10125_v59 = vpack.c.bf16 %v5055_v58, %v5054_v53  ;;  %v7807_v58 = vld [vmem:[%s13496_s2 + $0x4d8] ss:$0 sm:$0xff] }
0x13c1   : > { %9292 = vmatmul.mubr.msk.f32.gmra.mrb[100].mxu0 %vm577_vm5, %v4699_v0  ;;  %vm4684_vm14 = vcmp.gt.f32.partialorder %v12265_v25, 0.0  ;;  %v4692_v6 = vmul.f32 0.2, %v12265_v25  ;;  %10112 = vmatpush3.bf16.msra.mxu1 %v10109_v62  ;;  %v5224_v0 = vld [vmem:[%s13496_s2 + $0x1c0] sm:$0xff] }
0x13c2   : > { %v4701_v60 = vsel %vm4685_vm15, %v12262_v35, %v4693_v7  ;;  %10114 = vmatprep.subr.bf16.mxu1 %v10113_v5  ;;  %10126 = vmatprep.subr.bf16.mxu0 %v10125_v59  ;;  %v5225_v7 = vld [vmem:[%s13496_s2 + $0x1c8] sm:$0xff] }
0x13c3   : > { %v4700_v47 = vsel %vm4684_vm14, %v12265_v25, %v4692_v6  ;;  %10128 = vmatpush3.bf16.msra.mxu0 %v10125_v59  ;;  %v5226_v6 = vld [vmem:[%s13496_s2 + $0x1d0] sm:$0xff] }
0x13c4   : > { %9294 = vmatprep.mubr.msk.f32.mxu0 %vm577_vm5, %v4700_v47  ;;  %v10133_v47 = vpack.c.bf16 %v5225_v7, %v5224_v0 }
0x13c5   : > { %9295 = vmatmul.mubr.msk.f32.gmra.mrb[102].mxu0 %vm577_vm5, %v4701_v60  ;;  %10116 = vmatpush3.bf16.msra.mxu1 %v10113_v5  ;;  %v5227_v60 = vld [vmem:[%s13496_s2 + $0x1d8] sm:$0xff] }
0x13c6   : > { %v10137_v40 = vpack.c.bf16 %v5227_v60, %v5226_v6  ;;  %10134 = vmatprep.subr.bf16.mxu1 %v10133_v47 }
0x148c   : > { %v9287_v10 = vpop.f32.mrb[96].mxu0 }
0x148d   : > { %v4811_v11 = vadd.f32 %v9287_v10, %v7789_v8  ;;  %v4805_v12 = vpop.f32.mrb[97].mxu0 }
0x148e   : > { %v4806_v17 = vadd.f32 %v7789_v8, %v4805_v12 }
0x148f   : > { %v12307_v23 = vadd.f32 %v4811_v11, %v12224_v36 }
0x1490   : > { %v12310_v16 = vadd.f32 %v4806_v17, %v12227_v39  ;;  %v9290_v9 = vpop.f32.mrb[98].mxu0 }
0x1491   : > { %v4861_v26 = vmul.f32 0.2, %v12307_v23  ;;  %v4821_v27 = vadd.f32 %v9290_v9, %v7789_v8  ;;  %v4815_v61 = vpop.f32.mrb[99].mxu0  ;;  %vm4853_vm1 = vcmp.gt.f32.partialorder %v12307_v23, 0.0 }
0x1492   : > { %v4816_v4 = vadd.f32 %v7789_v8, %v4815_v61  ;;  %vm4852_vm2 = vcmp.gt.f32.partialorder %v12310_v16, 0.0  ;;  %v4860_v28 = vmul.f32 0.2, %v12310_v16 }
0x1493   : > { %v12317_v29 = vadd.f32 %v4821_v27, %v12234_v54  ;;  %v4869_v45 = vsel %vm4853_vm1, %v12307_v23, %v4861_v26 }
0x1494   : > { %v12320_v32 = vadd.f32 %v4816_v4, %v12237_v20  ;;  %v9293_v33 = vpop.f32.mrb[100].mxu0  ;;  %v4868_v36 = vsel %vm4852_vm2, %v12310_v16, %v4860_v28 }
0x1495   : > { %v4831_v39 = vadd.f32 %v9293_v33, %v7789_v8  ;;  %v4825_v30 = vpop.f32.mrb[101].mxu0  ;;  %9313 = vmatprep.mubr.msk.f32.mxu1 %vm577_vm5, %v4868_v36  ;;  %v4863_v48 = vmul.f32 0.2, %v12317_v29  ;;  %vm4855_vm0 = vcmp.gt.f32.partialorder %v12317_v29, 0.0 }
0x1496   : > { %v4826_v15 = vadd.f32 %v7789_v8, %v4825_v30  ;;  %9314 = vmatmul.mubr.msk.f32.vlgmr.msra.gmra.mrb[96].mxu1 %vm577_vm5, %v4869_v45  ;;  %vm4854_vm3 = vcmp.gt.f32.partialorder %v12320_v32, 0.0  ;;  %v4862_v51 = vmul.f32 0.2, %v12320_v32 }
0x1497   : > { %v12331_v24 = vadd.f32 %v4831_v39, %v12248_v38  ;;  %v4871_v31 = vsel %vm4855_vm0, %v12317_v29, %v4863_v48  ;;  %10136 = vmatpush3.bf16.msra.mxu1 %v10133_v47 }
0x1498   : > { %v12334_v54 = vadd.f32 %v4826_v15, %v12251_v42  ;;  %v9296_v20 = vpop.f32.mrb[102].mxu0  ;;  %v4870_v21 = vsel %vm4854_vm3, %v12320_v32, %v4862_v51  ;;  %10138 = vmatprep.subr.bf16.mxu1 %v10137_v40 }
0x1499   : > { %v4841_v22 = vadd.f32 %v9296_v20, %v7789_v8  ;;  %v4835_v19 = vpop.f32.mrb[103].mxu0  ;;  %9316 = vmatprep.mubr.msk.f32.mxu1 %vm577_vm5, %v4870_v21  ;;  %v4865_v41 = vmul.f32 0.2, %v12331_v24  ;;  %vm4857_vm6 = vcmp.gt.f32.partialorder %v12331_v24, 0.0 }
0x149a   : > { %v4836_v56 = vadd.f32 %v7789_v8, %v4835_v19  ;;  %9317 = vmatmul.mubr.msk.f32.gmra.mrb[98].mxu1 %vm577_vm5, %v4871_v31  ;;  %vm4856_vm4 = vcmp.gt.f32.partialorder %v12334_v54, 0.0  ;;  %v4864_v34 = vmul.f32 0.2, %v12334_v54 }
0x149b   : > { %v12345_v18 = vadd.f32 %v4841_v22, %v12262_v35  ;;  %v4873_v55 = vsel %vm4857_vm6, %v12331_v24, %v4865_v41  ;;  %v5056_v35 = vld [vmem:[%s13496_s2 + $0x1b0] sm:$0xff]  ;;  %10140 = vmatpush3.bf16.msra.mxu1 %v10137_v40  ;;  %v5228_v41 = vld [vmem:[%s13496_s2 + $0x1e0] sm:$0xff] }
0x149c   : > { %v12348_v38 = vadd.f32 %v4836_v56, %v12265_v25  ;;  %v4872_v42 = vsel %vm4856_vm4, %v12334_v54, %v4864_v34  ;;  %v5057_v25 = vld [vmem:[%s13496_s2 + $0x1b8] sm:$0xff]  ;;  %v5229_v56 = vld [vmem:[%s13496_s2 + $0x1e8] sm:$0xff] }
0x149d   : > { %9319 = vmatprep.mubr.msk.f32.mxu1 %vm577_vm5, %v4872_v42  ;;  %v4867_v44 = vmul.f32 0.2, %v12345_v18  ;;  %vm4859_vm8 = vcmp.gt.f32.partialorder %v12345_v18, 0.0  ;;  %v10129_v1 = vpack.c.bf16 %v5057_v25, %v5056_v35  ;;  %v10141_v34 = vpack.c.bf16 %v5229_v56, %v5228_v41  ;;  %v7816_v56 = vld [vmem:[%s13496_s2 + $0x4e0] ss:$0 sm:$0xff] }
0x149e   : > { %9320 = vmatmul.mubr.msk.f32.gmra.mrb[100].mxu1 %vm577_vm5, %v4873_v55  ;;  %vm4858_vm7 = vcmp.gt.f32.partialorder %v12348_v38, 0.0  ;;  %v4866_v57 = vmul.f32 0.2, %v12348_v38  ;;  %v5398_v55 = vld [vmem:[%s13496_s2 + $0x200] sm:$0xff] }
0x149f   : > { %v4875_v52 = vsel %vm4859_vm8, %v12345_v18, %v4867_v44  ;;  %10130 = vmatprep.subr.bf16.mxu0 %v10129_v1  ;;  %10142 = vmatprep.subr.bf16.mxu1 %v10141_v34  ;;  %v5399_v44 = vld [vmem:[%s13496_s2 + $0x208] sm:$0xff] }
0x14a0   : > { %v4874_v37 = vsel %vm4858_vm7, %v12348_v38, %v4866_v57  ;;  %10132 = vmatpush3.bf16.msra.mxu0 %v10129_v1  ;;  %10144 = vmatpush3.bf16.msra.mxu1 %v10141_v34  ;;  %v5400_v57 = vld [vmem:[%s13496_s2 + $0x210] sm:$0xff] }
0x14a1   : > { %9322 = vmatprep.mubr.msk.f32.mxu1 %vm577_vm5, %v4874_v37  ;;  %v10149_v37 = vpack.c.bf16 %v5399_v44, %v5398_v55 }
0x14a2   : > { %9323 = vmatmul.mubr.msk.f32.gmra.mrb[102].mxu1 %vm577_vm5, %v4875_v52  ;;  %v5401_v52 = vld [vmem:[%s13496_s2 + $0x218] sm:$0xff] }
0x14a3   : > { %v10153_v53 = vpack.c.bf16 %v5401_v52, %v5400_v57  ;;  %10150 = vmatprep.subr.bf16.mxu0 %v10149_v37 }
0x1569   : > { %v9315_v62 = vpop.f32.mrb[96].mxu1 }
0x156a   : > { %v4985_v43 = vadd.f32 %v9315_v62, %v7798_v50  ;;  %v4979_v63 = vpop.f32.mrb[97].mxu1 }
0x156b   : > { %v4980_v5 = vadd.f32 %v7798_v50, %v4979_v63 }
0x156c   : > { %v12390_v46 = vadd.f32 %v4985_v43, %v12307_v23 }
0x156d   : > { %v12393_v2 = vadd.f32 %v4980_v5, %v12310_v16  ;;  %v9318_v13 = vpop.f32.mrb[98].mxu1 }
0x156e   : > { %v5035_v49 = vmul.f32 0.2, %v12390_v46  ;;  %v4995_v3 = vadd.f32 %v9318_v13, %v7798_v50  ;;  %v4989_v14 = vpop.f32.mrb[99].mxu1  ;;  %vm5027_vm9 = vcmp.gt.f32.partialorder %v12390_v46, 0.0 }
0x156f   : > { %v4990_v8 = vadd.f32 %v7798_v50, %v4989_v14  ;;  %vm5026_vm10 = vcmp.gt.f32.partialorder %v12393_v2, 0.0  ;;  %v5034_v10 = vmul.f32 0.2, %v12393_v2 }
0x1570   : > { %v12400_v11 = vadd.f32 %v4995_v3, %v12317_v29  ;;  %v5043_v26 = vsel %vm5027_vm9, %v12390_v46, %v5035_v49 }
0x1571   : > { %v12403_v12 = vadd.f32 %v4990_v8, %v12320_v32  ;;  %v9321_v17 = vpop.f32.mrb[100].mxu1  ;;  %v5042_v23 = vsel %vm5026_vm10, %v12393_v2, %v5034_v10 }
0x1572   : > { %v5005_v16 = vadd.f32 %v9321_v17, %v7798_v50  ;;  %v4999_v9 = vpop.f32.mrb[101].mxu1  ;;  %9341 = vmatprep.mubr.msk.f32.mxu0 %vm577_vm5, %v5042_v23  ;;  %v5037_v27 = vmul.f32 0.2, %v12400_v11  ;;  %vm5029_vm13 = vcmp.gt.f32.partialorder %v12400_v11, 0.0 }
0x1573   : > { %v5000_v61 = vadd.f32 %v7798_v50, %v4999_v9  ;;  %9342 = vmatmul.mubr.msk.f32.vlgmr.msra.gmra.mrb[104].mxu0 %vm577_vm5, %v5043_v26  ;;  %vm5028_vm12 = vcmp.gt.f32.partialorder %v12403_v12, 0.0  ;;  %v5036_v4 = vmul.f32 0.2, %v12403_v12 }
0x1574   : > { %v12414_v28 = vadd.f32 %v5005_v16, %v12331_v24  ;;  %v5045_v30 = vsel %vm5029_vm13, %v12400_v11, %v5037_v27  ;;  %10152 = vmatpush3.bf16.msra.mxu0 %v10149_v37 }
0x1575   : > { %v12417_v29 = vadd.f32 %v5000_v61, %v12334_v54  ;;  %v9324_v32 = vpop.f32.mrb[102].mxu1  ;;  %v5044_v33 = vsel %vm5028_vm12, %v12403_v12, %v5036_v4  ;;  %10154 = vmatprep.subr.bf16.mxu0 %v10153_v53 }
0x1576   : > { %v5015_v36 = vadd.f32 %v9324_v32, %v7798_v50  ;;  %v5009_v39 = vpop.f32.mrb[103].mxu1  ;;  %9344 = vmatprep.mubr.msk.f32.mxu0 %vm577_vm5, %v5044_v33  ;;  %v5039_v45 = vmul.f32 0.2, %v12414_v28  ;;  %vm5031_vm15 = vcmp.gt.f32.partialorder %v12414_v28, 0.0 }
0x1577   : > { %v5010_v48 = vadd.f32 %v7798_v50, %v5009_v39  ;;  %9345 = vmatmul.mubr.msk.f32.gmra.mrb[106].mxu0 %vm577_vm5, %v5045_v30  ;;  %vm5030_vm14 = vcmp.gt.f32.partialorder %v12417_v29, 0.0  ;;  %v5038_v15 = vmul.f32 0.2, %v12417_v29 }
0x1578   : > { %v12428_v51 = vadd.f32 %v5015_v36, %v12345_v18  ;;  %v5047_v20 = vsel %vm5031_vm15, %v12414_v28, %v5039_v45  ;;  %v5230_v18 = vld [vmem:[%s13496_s2 + $0x1f0] sm:$0xff]  ;;  %10156 = vmatpush3.bf16.msra.mxu0 %v10153_v53  ;;  %v5402_v45 = vld [vmem:[%s13496_s2 + $0x220] sm:$0xff] }
0x1579   : > { %v12431_v24 = vadd.f32 %v5010_v48, %v12348_v38  ;;  %v5046_v54 = vsel %vm5030_vm14, %v12417_v29, %v5038_v15  ;;  %v5231_v38 = vld [vmem:[%s13496_s2 + $0x1f8] sm:$0xff]  ;;  %v5403_v48 = vld [vmem:[%s13496_s2 + $0x228] sm:$0xff] }
0x157a   : > { %9347 = vmatprep.mubr.msk.f32.mxu0 %vm577_vm5, %v5046_v54  ;;  %v5041_v21 = vmul.f32 0.2, %v12428_v51  ;;  %vm5033_vm2 = vcmp.gt.f32.partialorder %v12428_v51, 0.0  ;;  %v10145_v42 = vpack.c.bf16 %v5231_v38, %v5230_v18  ;;  %v10157_v15 = vpack.c.bf16 %v5403_v48, %v5402_v45  ;;  %v7825_v48 = vld [vmem:[%s13496_s2 + $0x4e8] ss:$0 sm:$0xff] }
0x157b   : > { %9348 = vmatmul.mubr.msk.f32.gmra.mrb[108].mxu0 %vm577_vm5, %v5047_v20  ;;  %vm5032_vm1 = vcmp.gt.f32.partialorder %v12431_v24, 0.0  ;;  %v5040_v22 = vmul.f32 0.2, %v12431_v24  ;;  %v5572_v20 = vld [vmem:[%s13496_s2 + $0x240] sm:$0xff] }
0x157c   : > { %v5049_v31 = vsel %vm5033_vm2, %v12428_v51, %v5041_v21  ;;  %10146 = vmatprep.subr.bf16.mxu1 %v10145_v42  ;;  %10158 = vmatprep.subr.bf16.mxu0 %v10157_v15  ;;  %v5573_v21 = vld [vmem:[%s13496_s2 + $0x248] sm:$0xff] }
0x157d   : > { %v5048_v19 = vsel %vm5032_vm1, %v12431_v24, %v5040_v22  ;;  %10148 = vmatpush3.bf16.msra.mxu1 %v10145_v42  ;;  %10160 = vmatpush3.bf16.msra.mxu0 %v10157_v15  ;;  %v5574_v22 = vld [vmem:[%s13496_s2 + $0x250] sm:$0xff] }
0x157e   : > { %9350 = vmatprep.mubr.msk.f32.mxu0 %vm577_vm5, %v5048_v19  ;;  %v10165_v19 = vpack.c.bf16 %v5573_v21, %v5572_v20 }
0x157f   : > { %9351 = vmatmul.mubr.msk.f32.gmra.mrb[110].mxu0 %vm577_vm5, %v5049_v31  ;;  %v5575_v31 = vld [vmem:[%s13496_s2 + $0x258] sm:$0xff] }
0x1580   : > { %v10169_v41 = vpack.c.bf16 %v5575_v31, %v5574_v22  ;;  %10166 = vmatprep.subr.bf16.mxu1 %v10165_v19 }
0x1646   : > { %v9343_v59 = vpop.f32.mrb[104].mxu0 }
0x1647   : > { %v5159_v35 = vadd.f32 %v9343_v59, %v7807_v58  ;;  %v5153_v25 = vpop.f32.mrb[105].mxu0 }
0x1648   : > { %v5154_v1 = vadd.f32 %v7807_v58, %v5153_v25 }
0x1649   : > { %v12473_v0 = vadd.f32 %v5159_v35, %v12390_v46 }
0x164a   : > { %v12476_v7 = vadd.f32 %v5154_v1, %v12393_v2  ;;  %v9346_v6 = vpop.f32.mrb[106].mxu0 }
0x164b   : > { %v5209_v47 = vmul.f32 0.2, %v12473_v0  ;;  %v5169_v60 = vadd.f32 %v9346_v6, %v7807_v58  ;;  %v5163_v40 = vpop.f32.mrb[107].mxu0  ;;  %vm5201_vm3 = vcmp.gt.f32.partialorder %v12473_v0, 0.0 }
0x164c   : > { %v5164_v50 = vadd.f32 %v7807_v58, %v5163_v40  ;;  %vm5200_vm0 = vcmp.gt.f32.partialorder %v12476_v7, 0.0  ;;  %v5208_v62 = vmul.f32 0.2, %v12476_v7 }
0x164d   : > { %v12483_v43 = vadd.f32 %v5169_v60, %v12400_v11  ;;  %v5217_v49 = vsel %vm5201_vm3, %v12473_v0, %v5209_v47 }
0x164e   : > { %v12486_v63 = vadd.f32 %v5164_v50, %v12403_v12  ;;  %v9349_v5 = vpop.f32.mrb[108].mxu0  ;;  %v5216_v46 = vsel %vm5200_vm0, %v12476_v7, %v5208_v62 }
0x164f   : > { %v5179_v2 = vadd.f32 %v9349_v5, %v7807_v58  ;;  %v5173_v13 = vpop.f32.mrb[109].mxu0  ;;  %9369 = vmatprep.mubr.msk.f32.mxu1 %vm577_vm5, %v5216_v46  ;;  %v5211_v3 = vmul.f32 0.2, %v12483_v43  ;;  %vm5203_vm6 = vcmp.gt.f32.partialorder %v12483_v43, 0.0 }
0x1650   : > { %v5174_v14 = vadd.f32 %v7807_v58, %v5173_v13  ;;  %9370 = vmatmul.mubr.msk.f32.vlgmr.msra.gmra.mrb[104].mxu1 %vm577_vm5, %v5217_v49  ;;  %vm5202_vm4 = vcmp.gt.f32.partialorder %v12486_v63, 0.0  ;;  %v5210_v8 = vmul.f32 0.2, %v12486_v63 }
0x1651   : > { %v12497_v10 = vadd.f32 %v5179_v2, %v12414_v28  ;;  %v5219_v9 = vsel %vm5203_vm6, %v12483_v43, %v5211_v3  ;;  %10168 = vmatpush3.bf16.msra.mxu1 %v10165_v19 }
0x1652   : > { %v12500_v11 = vadd.f32 %v5174_v14, %v12417_v29  ;;  %v9352_v12 = vpop.f32.mrb[110].mxu0  ;;  %v5218_v17 = vsel %vm5202_vm4, %v12486_v63, %v5210_v8  ;;  %10170 = vmatprep.subr.bf16.mxu1 %v10169_v41 }
0x1653   : > { %v5189_v23 = vadd.f32 %v9352_v12, %v7807_v58  ;;  %v5183_v16 = vpop.f32.mrb[111].mxu0  ;;  %9372 = vmatprep.mubr.msk.f32.mxu1 %vm577_vm5, %v5218_v17  ;;  %v5213_v26 = vmul.f32 0.2, %v12497_v10  ;;  %vm5205_vm8 = vcmp.gt.f32.partialorder %v12497_v10, 0.0 }
0x1654   : > { %v5184_v27 = vadd.f32 %v7807_v58, %v5183_v16  ;;  %9373 = vmatmul.mubr.msk.f32.gmra.mrb[106].mxu1 %vm577_vm5, %v5219_v9  ;;  %vm5204_vm7 = vcmp.gt.f32.partialorder %v12500_v11, 0.0  ;;  %v5212_v61 = vmul.f32 0.2, %v12500_v11 }
0x1655   : > { %v12511_v4 = vadd.f32 %v5189_v23, %v12428_v51  ;;  %v5221_v32 = vsel %vm5205_vm8, %v12497_v10, %v5213_v26  ;;  %v5404_v51 = vld [vmem:[%s13496_s2 + $0x230] sm:$0xff]  ;;  %10172 = vmatpush3.bf16.msra.mxu1 %v10169_v41  ;;  %v5576_v26 = vld [vmem:[%s13496_s2 + $0x260] sm:$0xff] }
0x1656   : > { %v12514_v28 = vadd.f32 %v5184_v27, %v12431_v24  ;;  %v5220_v29 = vsel %vm5204_vm7, %v12500_v11, %v5212_v61  ;;  %v5405_v24 = vld [vmem:[%s13496_s2 + $0x238] sm:$0xff]  ;;  %v5577_v27 = vld [vmem:[%s13496_s2 + $0x268] sm:$0xff] }
0x1657   : > { %9375 = vmatprep.mubr.msk.f32.mxu1 %vm577_vm5, %v5220_v29  ;;  %v5215_v33 = vmul.f32 0.2, %v12511_v4  ;;  %vm5207_vm10 = vcmp.gt.f32.partialorder %v12511_v4, 0.0  ;;  %v10161_v54 = vpack.c.bf16 %v5405_v24, %v5404_v51  ;;  %v10173_v61 = vpack.c.bf16 %v5577_v27, %v5576_v26  ;;  %v7834_v27 = vld [vmem:[%s13496_s2 + $0x4f0] ss:$0 sm:$0xff] }
0x1658   : > { %9376 = vmatmul.mubr.msk.f32.gmra.mrb[108].mxu1 %vm577_vm5, %v5221_v32  ;;  %vm5206_vm9 = vcmp.gt.f32.partialorder %v12514_v28, 0.0  ;;  %v5214_v36 = vmul.f32 0.2, %v12514_v28  ;;  %v5746_v32 = vld [vmem:[%s13496_s2 + $0x280] sm:$0xff] }
0x1659   : > { %v5223_v30 = vsel %vm5207_vm10, %v12511_v4, %v5215_v33  ;;  %10162 = vmatprep.subr.bf16.mxu0 %v10161_v54  ;;  %10174 = vmatprep.subr.bf16.mxu1 %v10173_v61  ;;  %v5747_v33 = vld [vmem:[%s13496_s2 + $0x288] sm:$0xff] }
0x165a   : > { %v5222_v39 = vsel %vm5206_vm9, %v12514_v28, %v5214_v36  ;;  %10164 = vmatpush3.bf16.msra.mxu0 %v10161_v54  ;;  %10176 = vmatpush3.bf16.msra.mxu1 %v10173_v61  ;;  %v5748_v36 = vld [vmem:[%s13496_s2 + $0x290] sm:$0xff] }
0x165b   : > { %9378 = vmatprep.mubr.msk.f32.mxu1 %vm577_vm5, %v5222_v39  ;;  %v10181_v39 = vpack.c.bf16 %v5747_v33, %v5746_v32 }
0x165c   : > { %9379 = vmatmul.mubr.msk.f32.gmra.mrb[110].mxu1 %vm577_vm5, %v5223_v30  ;;  %v5749_v30 = vld [vmem:[%s13496_s2 + $0x298] sm:$0xff] }
0x165d   : > { %v10185_v45 = vpack.c.bf16 %v5749_v30, %v5748_v36  ;;  %10182 = vmatprep.subr.bf16.mxu0 %v10181_v39 }
0x1723   : > { %v9371_v34 = vpop.f32.mrb[104].mxu1 }
0x1724   : > { %v5333_v18 = vadd.f32 %v9371_v34, %v7816_v56  ;;  %v5327_v38 = vpop.f32.mrb[105].mxu1 }
0x1725   : > { %v5328_v42 = vadd.f32 %v7816_v56, %v5327_v38 }
0x1726   : > { %v12556_v55 = vadd.f32 %v5333_v18, %v12473_v0 }
0x1727   : > { %v12559_v44 = vadd.f32 %v5328_v42, %v12476_v7  ;;  %v9374_v57 = vpop.f32.mrb[106].mxu1 }
0x1728   : > { %v5383_v37 = vmul.f32 0.2, %v12556_v55  ;;  %v5343_v52 = vadd.f32 %v9374_v57, %v7816_v56  ;;  %v5337_v53 = vpop.f32.mrb[107].mxu1  ;;  %vm5375_vm12 = vcmp.gt.f32.partialorder %v12556_v55, 0.0 }
0x1729   : > { %v5338_v58 = vadd.f32 %v7816_v56, %v5337_v53  ;;  %vm5374_vm13 = vcmp.gt.f32.partialorder %v12559_v44, 0.0  ;;  %v5382_v59 = vmul.f32 0.2, %v12559_v44 }
0x172a   : > { %v12566_v35 = vadd.f32 %v5343_v52, %v12483_v43  ;;  %v5391_v47 = vsel %vm5375_vm12, %v12556_v55, %v5383_v37 }
0x172b   : > { %v12569_v25 = vadd.f32 %v5338_v58, %v12486_v63  ;;  %v9377_v1 = vpop.f32.mrb[108].mxu1  ;;  %v5390_v0 = vsel %vm5374_vm13, %v12559_v44, %v5382_v59 }
0x172c   : > { %v5353_v7 = vadd.f32 %v9377_v1, %v7816_v56  ;;  %v5347_v6 = vpop.f32.mrb[109].mxu1  ;;  %9397 = vmatprep.mubr.msk.f32.mxu0 %vm577_vm5, %v5390_v0  ;;  %v5385_v60 = vmul.f32 0.2, %v12566_v35  ;;  %vm5377_vm15 = vcmp.gt.f32.partialorder %v12566_v35, 0.0 }
0x172d   : > { %v5348_v40 = vadd.f32 %v7816_v56, %v5347_v6  ;;  %9398 = vmatmul.mubr.msk.f32.vlgmr.msra.gmra.mrb[112].mxu0 %vm577_vm5, %v5391_v47  ;;  %vm5376_vm14 = vcmp.gt.f32.partialorder %v12569_v25, 0.0  ;;  %v5384_v50 = vmul.f32 0.2, %v12569_v25 }
0x172e   : > { %v12580_v62 = vadd.f32 %v5353_v7, %v12497_v10  ;;  %v5393_v13 = vsel %vm5377_vm15, %v12566_v35, %v5385_v60  ;;  %10184 = vmatpush3.bf16.msra.mxu0 %v10181_v39 }
0x172f   : > { %v12583_v43 = vadd.f32 %v5348_v40, %v12500_v11  ;;  %v9380_v63 = vpop.f32.mrb[110].mxu1  ;;  %v5392_v5 = vsel %vm5376_vm14, %v12569_v25, %v5384_v50  ;;  %10186 = vmatprep.subr.bf16.mxu0 %v10185_v45 }
0x1730   : > { %v5363_v46 = vadd.f32 %v9380_v63, %v7816_v56  ;;  %v5357_v2 = vpop.f32.mrb[111].mxu1  ;;  %9400 = vmatprep.mubr.msk.f32.mxu0 %vm577_vm5, %v5392_v5  ;;  %v5387_v49 = vmul.f32 0.2, %v12580_v62  ;;  %vm5379_vm2 = vcmp.gt.f32.partialorder %v12580_v62, 0.0 }
0x1731   : > { %v5358_v3 = vadd.f32 %v7816_v56, %v5357_v2  ;;  %9401 = vmatmul.mubr.msk.f32.gmra.mrb[114].mxu0 %vm577_vm5, %v5393_v13  ;;  %vm5378_vm1 = vcmp.gt.f32.partialorder %v12583_v43, 0.0  ;;  %v5386_v14 = vmul.f32 0.2, %v12583_v43 }
0x1732   : > { %v12594_v8 = vadd.f32 %v5363_v46, %v12511_v4  ;;  %v5395_v12 = vsel %vm5379_vm2, %v12580_v62, %v5387_v49  ;;  %v5578_v4 = vld [vmem:[%s13496_s2 + $0x270] sm:$0xff]  ;;  %10188 = vmatpush3.bf16.msra.mxu0 %v10185_v45  ;;  %v5750_v49 = vld [vmem:[%s13496_s2 + $0x2a0] sm:$0xff] }
0x1733   : > { %v12597_v10 = vadd.f32 %v5358_v3, %v12514_v28  ;;  %v5394_v11 = vsel %vm5378_vm1, %v12583_v43, %v5386_v14  ;;  %v5579_v28 = vld [vmem:[%s13496_s2 + $0x278] sm:$0xff]  ;;  %v5751_v3 = vld [vmem:[%s13496_s2 + $0x2a8] sm:$0xff] }
0x1734   : > { %9403 = vmatprep.mubr.msk.f32.mxu0 %vm577_vm5, %v5394_v11  ;;  %v5389_v17 = vmul.f32 0.2, %v12594_v8  ;;  %vm5381_vm0 = vcmp.gt.f32.partialorder %v12594_v8, 0.0  ;;  %v10177_v29 = vpack.c.bf16 %v5579_v28, %v5578_v4  ;;  %v10189_v14 = vpack.c.bf16 %v5751_v3, %v5750_v49  ;;  %v7843_v3 = vld [vmem:[%s13496_s2 + $0x4f8] ss:$0 sm:$0xff] }
0x1735   : > { %9404 = vmatmul.mubr.msk.f32.gmra.mrb[116].mxu0 %vm577_vm5, %v5395_v12  ;;  %vm5380_vm3 = vcmp.gt.f32.partialorder %v12597_v10, 0.0  ;;  %v5388_v23 = vmul.f32 0.2, %v12597_v10  ;;  %v5920_v12 = vld [vmem:[%s13496_s2 + $0x2c0] sm:$0xff] }
0x1736   : > { %v5397_v9 = vsel %vm5381_vm0, %v12594_v8, %v5389_v17  ;;  %10178 = vmatprep.subr.bf16.mxu1 %v10177_v29  ;;  %10190 = vmatprep.subr.bf16.mxu0 %v10189_v14  ;;  %v5921_v17 = vld [vmem:[%s13496_s2 + $0x2c8] sm:$0xff] }
0x1737   : > { %v5396_v16 = vsel %vm5380_vm3, %v12597_v10, %v5388_v23  ;;  %10180 = vmatpush3.bf16.msra.mxu1 %v10177_v29  ;;  %10192 = vmatpush3.bf16.msra.mxu0 %v10189_v14  ;;  %v5922_v23 = vld [vmem:[%s13496_s2 + $0x2d0] sm:$0xff] }
0x1738   : > { %9406 = vmatprep.mubr.msk.f32.mxu0 %vm577_vm5, %v5396_v16  ;;  %v10197_v16 = vpack.c.bf16 %v5921_v17, %v5920_v12 }
0x1739   : > { %9407 = vmatmul.mubr.msk.f32.gmra.mrb[118].mxu0 %vm577_vm5, %v5397_v9  ;;  %v5923_v9 = vld [vmem:[%s13496_s2 + $0x2d8] sm:$0xff] }
0x173a   : > { %v10201_v26 = vpack.c.bf16 %v5923_v9, %v5922_v23  ;;  %10198 = vmatprep.subr.bf16.mxu1 %v10197_v16 }
0x1800   : > { %v9399_v15 = vpop.f32.mrb[112].mxu0 }
0x1801   : > { %v5507_v51 = vadd.f32 %v9399_v15, %v7825_v48  ;;  %v5501_v24 = vpop.f32.mrb[113].mxu0 }
0x1802   : > { %v5502_v54 = vadd.f32 %v7825_v48, %v5501_v24 }
0x1803   : > { %v12639_v20 = vadd.f32 %v5507_v51, %v12556_v55 }
0x1804   : > { %v12642_v21 = vadd.f32 %v5502_v54, %v12559_v44  ;;  %v9402_v22 = vpop.f32.mrb[114].mxu0 }
0x1805   : > { %v5557_v19 = vmul.f32 0.2, %v12639_v20  ;;  %v5517_v31 = vadd.f32 %v9402_v22, %v7825_v48  ;;  %v5511_v41 = vpop.f32.mrb[115].mxu0  ;;  %vm5549_vm4 = vcmp.gt.f32.partialorder %v12639_v20, 0.0 }
0x1806   : > { %v5512_v56 = vadd.f32 %v7825_v48, %v5511_v41  ;;  %vm5548_vm6 = vcmp.gt.f32.partialorder %v12642_v21, 0.0  ;;  %v5556_v34 = vmul.f32 0.2, %v12642_v21 }
0x1807   : > { %v12649_v18 = vadd.f32 %v5517_v31, %v12566_v35  ;;  %v5565_v37 = vsel %vm5549_vm4, %v12639_v20, %v5557_v19 }
0x1808   : > { %v12652_v38 = vadd.f32 %v5512_v56, %v12569_v25  ;;  %v9405_v42 = vpop.f32.mrb[116].mxu0  ;;  %v5564_v55 = vsel %vm5548_vm6, %v12642_v21, %v5556_v34 }
0x1809   : > { %v5527_v44 = vadd.f32 %v9405_v42, %v7825_v48  ;;  %v5521_v57 = vpop.f32.mrb[117].mxu0  ;;  %9425 = vmatprep.mubr.msk.f32.mxu1 %vm577_vm5, %v5564_v55  ;;  %v5559_v52 = vmul.f32 0.2, %v12649_v18  ;;  %vm5551_vm8 = vcmp.gt.f32.partialorder %v12649_v18, 0.0 }
0x180a   : > { %v5522_v53 = vadd.f32 %v7825_v48, %v5521_v57  ;;  %9426 = vmatmul.mubr.msk.f32.vlgmr.msra.gmra.mrb[112].mxu1 %vm577_vm5, %v5565_v37  ;;  %vm5550_vm7 = vcmp.gt.f32.partialorder %v12652_v38, 0.0  ;;  %v5558_v58 = vmul.f32 0.2, %v12652_v38 }
0x180b   : > { %v12663_v59 = vadd.f32 %v5527_v44, %v12580_v62  ;;  %v5567_v6 = vsel %vm5551_vm8, %v12649_v18, %v5559_v52  ;;  %10200 = vmatpush3.bf16.msra.mxu1 %v10197_v16 }
0x180c   : > { %v12666_v35 = vadd.f32 %v5522_v53, %v12583_v43  ;;  %v9408_v25 = vpop.f32.mrb[118].mxu0  ;;  %v5566_v1 = vsel %vm5550_vm7, %v12652_v38, %v5558_v58  ;;  %10202 = vmatprep.subr.bf16.mxu1 %v10201_v26 }
0x180d   : > { %v5537_v0 = vadd.f32 %v9408_v25, %v7825_v48  ;;  %v5531_v7 = vpop.f32.mrb[119].mxu0  ;;  %9428 = vmatprep.mubr.msk.f32.mxu1 %vm577_vm5, %v5566_v1  ;;  %v5561_v47 = vmul.f32 0.2, %v12663_v59  ;;  %vm5553_vm10 = vcmp.gt.f32.partialorder %v12663_v59, 0.0 }
0x180e   : > { %v5532_v60 = vadd.f32 %v7825_v48, %v5531_v7  ;;  %9429 = vmatmul.mubr.msk.f32.gmra.mrb[114].mxu1 %vm577_vm5, %v5567_v6  ;;  %vm5552_vm9 = vcmp.gt.f32.partialorder %v12666_v35, 0.0  ;;  %v5560_v40 = vmul.f32 0.2, %v12666_v35 }
0x180f   : > { %v12677_v50 = vadd.f32 %v5537_v0, %v12594_v8  ;;  %v5569_v63 = vsel %vm5553_vm10, %v12663_v59, %v5561_v47  ;;  %v5752_v8 = vld [vmem:[%s13496_s2 + $0x2b0] sm:$0xff]  ;;  %10204 = vmatpush3.bf16.msra.mxu1 %v10201_v26  ;;  %v5924_v47 = vld [vmem:[%s13496_s2 + $0x2e0] sm:$0xff] }
0x1810   : > { %v12680_v62 = vadd.f32 %v5532_v60, %v12597_v10  ;;  %v5568_v43 = vsel %vm5552_vm9, %v12666_v35, %v5560_v40  ;;  %v5753_v10 = vld [vmem:[%s13496_s2 + $0x2b8] sm:$0xff]  ;;  %v5925_v60 = vld [vmem:[%s13496_s2 + $0x2e8] sm:$0xff] }
0x1811   : > { %9431 = vmatprep.mubr.msk.f32.mxu1 %vm577_vm5, %v5568_v43  ;;  %v5563_v5 = vmul.f32 0.2, %v12677_v50  ;;  %vm5555_vm13 = vcmp.gt.f32.partialorder %v12677_v50, 0.0  ;;  %v10193_v11 = vpack.c.bf16 %v5753_v10, %v5752_v8  ;;  %v10205_v40 = vpack.c.bf16 %v5925_v60, %v5924_v47  ;;  %v7852_v60 = vld [vmem:[%s13496_s2 + $0x500] ss:$0 sm:$0xff] }
0x1812   : > { %9432 = vmatmul.mubr.msk.f32.gmra.mrb[116].mxu1 %vm577_vm5, %v5569_v63  ;;  %vm5554_vm12 = vcmp.gt.f32.partialorder %v12680_v62, 0.0  ;;  %v5562_v46 = vmul.f32 0.2, %v12680_v62  ;;  %v6094_v63 = vld [vmem:[%s13496_s2 + $0x300] sm:$0xff] }
0x1813   : > { %v5571_v13 = vsel %vm5555_vm13, %v12677_v50, %v5563_v5  ;;  %10194 = vmatprep.subr.bf16.mxu0 %v10193_v11  ;;  %10206 = vmatprep.subr.bf16.mxu1 %v10205_v40  ;;  %v6095_v5 = vld [vmem:[%s13496_s2 + $0x308] sm:$0xff] }
0x1814   : > { %v5570_v2 = vsel %vm5554_vm12, %v12680_v62, %v5562_v46  ;;  %10196 = vmatpush3.bf16.msra.mxu0 %v10193_v11  ;;  %10208 = vmatpush3.bf16.msra.mxu1 %v10205_v40  ;;  %v6096_v46 = vld [vmem:[%s13496_s2 + $0x310] sm:$0xff] }
0x1815   : > { %9434 = vmatprep.mubr.msk.f32.mxu1 %vm577_vm5, %v5570_v2  ;;  %v10213_v2 = vpack.c.bf16 %v6095_v5, %v6094_v63 }
0x1816   : > { %9435 = vmatmul.mubr.msk.f32.gmra.mrb[118].mxu1 %vm577_vm5, %v5571_v13  ;;  %v6097_v13 = vld [vmem:[%s13496_s2 + $0x318] sm:$0xff] }
0x1817   : > { %v10217_v49 = vpack.c.bf16 %v6097_v13, %v6096_v46  ;;  %10214 = vmatprep.subr.bf16.mxu0 %v10213_v2 }
0x18dd   : > { %v9427_v61 = vpop.f32.mrb[112].mxu1 }
0x18de   : > { %v5681_v4 = vadd.f32 %v9427_v61, %v7834_v27  ;;  %v5675_v28 = vpop.f32.mrb[113].mxu1 }
0x18df   : > { %v5676_v29 = vadd.f32 %v7834_v27, %v5675_v28 }
0x18e0   : > { %v12722_v32 = vadd.f32 %v5681_v4, %v12639_v20 }
0x18e1   : > { %v12725_v33 = vadd.f32 %v5676_v29, %v12642_v21  ;;  %v9430_v36 = vpop.f32.mrb[114].mxu1 }
0x18e2   : > { %v5731_v39 = vmul.f32 0.2, %v12722_v32  ;;  %v5691_v30 = vadd.f32 %v9430_v36, %v7834_v27  ;;  %v5685_v45 = vpop.f32.mrb[115].mxu1  ;;  %vm5723_vm14 = vcmp.gt.f32.partialorder %v12722_v32, 0.0 }
0x18e3   : > { %v5686_v48 = vadd.f32 %v7834_v27, %v5685_v45  ;;  %vm5722_vm15 = vcmp.gt.f32.partialorder %v12725_v33, 0.0  ;;  %v5730_v15 = vmul.f32 0.2, %v12725_v33 }
0x18e4   : > { %v12732_v51 = vadd.f32 %v5691_v30, %v12649_v18  ;;  %v5739_v19 = vsel %vm5723_vm14, %v12722_v32, %v5731_v39 }
0x18e5   : > { %v12735_v24 = vadd.f32 %v5686_v48, %v12652_v38  ;;  %v9433_v54 = vpop.f32.mrb[116].mxu1  ;;  %v5738_v20 = vsel %vm5722_vm15, %v12725_v33, %v5730_v15 }
0x18e6   : > { %v5701_v21 = vadd.f32 %v9433_v54, %v7834_v27  ;;  %v5695_v22 = vpop.f32.mrb[117].mxu1  ;;  %9453 = vmatprep.mubr.msk.f32.mxu0 %vm577_vm5, %v5738_v20  ;;  %v5733_v31 = vmul.f32 0.2, %v12732_v51  ;;  %vm5725_vm2 = vcmp.gt.f32.partialorder %v12732_v51, 0.0 }
0x18e7   : > { %v5696_v41 = vadd.f32 %v7834_v27, %v5695_v22  ;;  %9454 = vmatmul.mubr.msk.f32.vlgmr.msra.gmra.mrb[120].mxu0 %vm577_vm5, %v5739_v19  ;;  %vm5724_vm1 = vcmp.gt.f32.partialorder %v12735_v24, 0.0  ;;  %v5732_v56 = vmul.f32 0.2, %v12735_v24 }
0x18e8   : > { %v12746_v34 = vadd.f32 %v5701_v21, %v12663_v59  ;;  %v5741_v57 = vsel %vm5725_vm2, %v12732_v51, %v5733_v31  ;;  %10216 = vmatpush3.bf16.msra.mxu0 %v10213_v2 }
0x18e9   : > { %v12749_v18 = vadd.f32 %v5696_v41, %v12666_v35  ;;  %v9436_v38 = vpop.f32.mrb[118].mxu1  ;;  %v5740_v42 = vsel %vm5724_vm1, %v12735_v24, %v5732_v56  ;;  %10218 = vmatprep.subr.bf16.mxu0 %v10217_v49 }
0x18ea   : > { %v5711_v55 = vadd.f32 %v9436_v38, %v7834_v27  ;;  %v5705_v44 = vpop.f32.mrb[119].mxu1  ;;  %9456 = vmatprep.mubr.msk.f32.mxu0 %vm577_vm5, %v5740_v42  ;;  %v5735_v37 = vmul.f32 0.2, %v12746_v34  ;;  %vm5727_vm0 = vcmp.gt.f32.partialorder %v12746_v34, 0.0 }
0x18eb   : > { %v5706_v52 = vadd.f32 %v7834_v27, %v5705_v44  ;;  %9457 = vmatmul.mubr.msk.f32.gmra.mrb[122].mxu0 %vm577_vm5, %v5741_v57  ;;  %vm5726_vm3 = vcmp.gt.f32.partialorder %v12749_v18, 0.0  ;;  %v5734_v53 = vmul.f32 0.2, %v12749_v18 }
0x18ec   : > { %v12760_v58 = vadd.f32 %v5711_v55, %v12677_v50  ;;  %v5743_v25 = vsel %vm5727_vm0, %v12746_v34, %v5735_v37  ;;  %v5926_v50 = vld [vmem:[%s13496_s2 + $0x2f0] sm:$0xff]  ;;  %10220 = vmatpush3.bf16.msra.mxu0 %v10217_v49  ;;  %v6098_v37 = vld [vmem:[%s13496_s2 + $0x320] sm:$0xff] }
0x18ed   : > { %v12763_v59 = vadd.f32 %v5706_v52, %v12680_v62  ;;  %v5742_v35 = vsel %vm5726_vm3, %v12749_v18, %v5734_v53  ;;  %v5927_v62 = vld [vmem:[%s13496_s2 + $0x2f8] sm:$0xff]  ;;  %v6099_v52 = vld [vmem:[%s13496_s2 + $0x328] sm:$0xff] }
0x18ee   : > { %9459 = vmatprep.mubr.msk.f32.mxu0 %vm577_vm5, %v5742_v35  ;;  %v5737_v1 = vmul.f32 0.2, %v12760_v58  ;;  %vm5729_vm6 = vcmp.gt.f32.partialorder %v12760_v58, 0.0  ;;  %v10209_v43 = vpack.c.bf16 %v5927_v62, %v5926_v50  ;;  %v10221_v53 = vpack.c.bf16 %v6099_v52, %v6098_v37  ;;  %v7861_v52 = vld [vmem:[%s13496_s2 + $0x508] ss:$0 sm:$0xff] }
0x18ef   : > { %9460 = vmatmul.mubr.msk.f32.gmra.mrb[124].mxu0 %vm577_vm5, %v5743_v25  ;;  %vm5728_vm4 = vcmp.gt.f32.partialorder %v12763_v59, 0.0  ;;  %v5736_v0 = vmul.f32 0.2, %v12763_v59  ;;  %v6268_v25 = vld [vmem:[%s13496_s2 + $0x340] sm:$0xff] }
0x18f0   : > { %v5745_v6 = vsel %vm5729_vm6, %v12760_v58, %v5737_v1  ;;  %10210 = vmatprep.subr.bf16.mxu1 %v10209_v43  ;;  %10222 = vmatprep.subr.bf16.mxu0 %v10221_v53  ;;  %v6269_v1 = vld [vmem:[%s13496_s2 + $0x348] sm:$0xff] }
0x18f1   : > { %v5744_v7 = vsel %vm5728_vm4, %v12763_v59, %v5736_v0  ;;  %10212 = vmatpush3.bf16.msra.mxu1 %v10209_v43  ;;  %10224 = vmatpush3.bf16.msra.mxu0 %v10221_v53  ;;  %v6270_v0 = vld [vmem:[%s13496_s2 + $0x350] sm:$0xff] }
0x18f2   : > { %9462 = vmatprep.mubr.msk.f32.mxu0 %vm577_vm5, %v5744_v7  ;;  %v10229_v7 = vpack.c.bf16 %v6269_v1, %v6268_v25 }
0x18f3   : > { %9463 = vmatmul.mubr.msk.f32.gmra.mrb[126].mxu0 %vm577_vm5, %v5745_v6  ;;  %v6271_v6 = vld [vmem:[%s13496_s2 + $0x358] sm:$0xff] }
0x18f4   : > { %v10233_v47 = vpack.c.bf16 %v6271_v6, %v6270_v0  ;;  %10230 = vmatprep.subr.bf16.mxu1 %v10229_v7 }
0x19ba   : > { %v9455_v14 = vpop.f32.mrb[120].mxu0 }
0x19bb   : > { %v5855_v8 = vadd.f32 %v9455_v14, %v7843_v3  ;;  %v5849_v10 = vpop.f32.mrb[121].mxu0 }
0x19bc   : > { %v5850_v11 = vadd.f32 %v7843_v3, %v5849_v10 }
0x19bd   : > { %v12805_v12 = vadd.f32 %v5855_v8, %v12722_v32 }
0x19be   : > { %v12808_v17 = vadd.f32 %v5850_v11, %v12725_v33  ;;  %v9458_v23 = vpop.f32.mrb[122].mxu0 }
0x19bf   : > { %v5905_v16 = vmul.f32 0.2, %v12805_v12  ;;  %v5865_v9 = vadd.f32 %v9458_v23, %v7843_v3  ;;  %v5859_v26 = vpop.f32.mrb[123].mxu0  ;;  %vm5897_vm7 = vcmp.gt.f32.partialorder %v12805_v12, 0.0 }
0x19c0   : > { %v5860_v27 = vadd.f32 %v7843_v3, %v5859_v26  ;;  %vm5896_vm8 = vcmp.gt.f32.partialorder %v12808_v17, 0.0  ;;  %v5904_v61 = vmul.f32 0.2, %v12808_v17 }
0x19c1   : > { %v12815_v4 = vadd.f32 %v5865_v9, %v12732_v51  ;;  %v5913_v39 = vsel %vm5897_vm7, %v12805_v12, %v5905_v16 }
0x19c2   : > { %v12818_v28 = vadd.f32 %v5860_v27, %v12735_v24  ;;  %v9461_v29 = vpop.f32.mrb[124].mxu0  ;;  %v5912_v32 = vsel %vm5896_vm8, %v12808_v17, %v5904_v61 }
0x19c3   : > { %v5875_v33 = vadd.f32 %v9461_v29, %v7843_v3  ;;  %v5869_v36 = vpop.f32.mrb[125].mxu0  ;;  %9481 = vmatprep.mubr.msk.f32.mxu1 %vm577_vm5, %v5912_v32  ;;  %v5907_v30 = vmul.f32 0.2, %v12815_v4  ;;  %vm5899_vm10 = vcmp.gt.f32.partialorder %v12815_v4, 0.0 }
0x19c4   : > { %v5870_v45 = vadd.f32 %v7843_v3, %v5869_v36  ;;  %9482 = vmatmul.mubr.msk.f32.vlgmr.msra.gmra.mrb[120].mxu1 %vm577_vm5, %v5913_v39  ;;  %vm5898_vm9 = vcmp.gt.f32.partialorder %v12818_v28, 0.0  ;;  %v5906_v48 = vmul.f32 0.2, %v12818_v28 }
0x19c5   : > { %v12829_v15 = vadd.f32 %v5875_v33, %v12746_v34  ;;  %v5915_v22 = vsel %vm5899_vm10, %v12815_v4, %v5907_v30  ;;  %10232 = vmatpush3.bf16.msra.mxu1 %v10229_v7 }
0x19c6   : > { %v12832_v51 = vadd.f32 %v5870_v45, %v12749_v18  ;;  %v9464_v24 = vpop.f32.mrb[126].mxu0  ;;  %v5914_v54 = vsel %vm5898_vm9, %v12818_v28, %v5906_v48  ;;  %10234 = vmatprep.subr.bf16.mxu1 %v10233_v47 }
0x19c7   : > { %v5885_v20 = vadd.f32 %v9464_v24, %v7843_v3  ;;  %v5879_v21 = vpop.f32.mrb[127].mxu0  ;;  %9484 = vmatprep.mubr.msk.f32.mxu1 %vm577_vm5, %v5914_v54  ;;  %v5909_v19 = vmul.f32 0.2, %v12829_v15  ;;  %vm5901_vm13 = vcmp.gt.f32.partialorder %v12829_v15, 0.0 }
0x19c8   : > { %v5880_v31 = vadd.f32 %v7843_v3, %v5879_v21  ;;  %9485 = vmatmul.mubr.msk.f32.gmra.mrb[122].mxu1 %vm577_vm5, %v5915_v22  ;;  %vm5900_vm12 = vcmp.gt.f32.partialorder %v12832_v51, 0.0  ;;  %v5908_v41 = vmul.f32 0.2, %v12832_v51 }
0x19c9   : > { %v12843_v56 = vadd.f32 %v5885_v20, %v12760_v58  ;;  %v5917_v38 = vsel %vm5901_vm13, %v12829_v15, %v5909_v19  ;;  %v6100_v58 = vld [vmem:[%s13496_s2 + $0x330] sm:$0xff]  ;;  %10236 = vmatpush3.bf16.msra.mxu1 %v10233_v47  ;;  %v6272_v19 = vld [vmem:[%s13496_s2 + $0x360] sm:$0xff] }
0x19ca   : > { %v12846_v34 = vadd.f32 %v5880_v31, %v12763_v59  ;;  %v5916_v18 = vsel %vm5900_vm12, %v12832_v51, %v5908_v41  ;;  %v6101_v59 = vld [vmem:[%s13496_s2 + $0x338] sm:$0xff]  ;;  %v6273_v31 = vld [vmem:[%s13496_s2 + $0x368] sm:$0xff] }
0x19cb   : > { %9487 = vmatprep.mubr.msk.f32.mxu1 %vm577_vm5, %v5916_v18  ;;  %v5911_v42 = vmul.f32 0.2, %v12843_v56  ;;  %vm5903_vm15 = vcmp.gt.f32.partialorder %v12843_v56, 0.0  ;;  %v10225_v35 = vpack.c.bf16 %v6101_v59, %v6100_v58  ;;  %v10237_v41 = vpack.c.bf16 %v6273_v31, %v6272_v19  ;;  %v7870_v31 = vld [vmem:[%s13496_s2 + $0x510] ss:$0 sm:$0xff] }
0x19cc   : > { %9488 = vmatmul.mubr.msk.f32.gmra.mrb[124].mxu1 %vm577_vm5, %v5917_v38  ;;  %vm5902_vm14 = vcmp.gt.f32.partialorder %v12846_v34, 0.0  ;;  %v5910_v55 = vmul.f32 0.2, %v12846_v34  ;;  %v6442_v38 = vld [vmem:[%s13496_s2 + $0x380] sm:$0xff] }
0x19cd   : > { %v5919_v57 = vsel %vm5903_vm15, %v12843_v56, %v5911_v42  ;;  %10226 = vmatprep.subr.bf16.mxu0 %v10225_v35  ;;  %10238 = vmatprep.subr.bf16.mxu1 %v10237_v41  ;;  %v6443_v42 = vld [vmem:[%s13496_s2 + $0x388] sm:$0xff] }
0x19ce   : > { %v5918_v44 = vsel %vm5902_vm14, %v12846_v34, %v5910_v55  ;;  %10228 = vmatpush3.bf16.msra.mxu0 %v10225_v35  ;;  %10240 = vmatpush3.bf16.msra.mxu1 %v10237_v41  ;;  %v6444_v55 = vld [vmem:[%s13496_s2 + $0x390] sm:$0xff] }
0x19cf   : > { %9490 = vmatprep.mubr.msk.f32.mxu1 %vm577_vm5, %v5918_v44  ;;  %v10245_v44 = vpack.c.bf16 %v6443_v42, %v6442_v38 }
0x19d0   : > { %9491 = vmatmul.mubr.msk.f32.gmra.mrb[126].mxu1 %vm577_vm5, %v5919_v57  ;;  %v6445_v57 = vld [vmem:[%s13496_s2 + $0x398] sm:$0xff] }
0x19d1   : > { %v10249_v37 = vpack.c.bf16 %v6445_v57, %v6444_v55  ;;  %10246 = vmatprep.subr.bf16.mxu0 %v10245_v44 }
0x1a97   : > { %v9483_v40 = vpop.f32.mrb[120].mxu1 }
0x1a98   : > { %v6029_v50 = vadd.f32 %v9483_v40, %v7852_v60  ;;  %v6023_v62 = vpop.f32.mrb[121].mxu1 }
0x1a99   : > { %v6024_v43 = vadd.f32 %v7852_v60, %v6023_v62 }
0x1a9a   : > { %v12888_v63 = vadd.f32 %v6029_v50, %v12805_v12 }
0x1a9b   : > { %v12891_v5 = vadd.f32 %v6024_v43, %v12808_v17  ;;  %v9486_v46 = vpop.f32.mrb[122].mxu1 }
0x1a9c   : > { %v6079_v2 = vmul.f32 0.2, %v12888_v63  ;;  %v6039_v13 = vadd.f32 %v9486_v46, %v7852_v60  ;;  %v6033_v49 = vpop.f32.mrb[123].mxu1  ;;  %vm6071_vm1 = vcmp.gt.f32.partialorder %v12888_v63, 0.0 }
0x1a9d   : > { %v6034_v3 = vadd.f32 %v7852_v60, %v6033_v49  ;;  %vm6070_vm2 = vcmp.gt.f32.partialorder %v12891_v5, 0.0  ;;  %v6078_v14 = vmul.f32 0.2, %v12891_v5 }
0x1a9e   : > { %v12898_v8 = vadd.f32 %v6039_v13, %v12815_v4  ;;  %v6087_v16 = vsel %vm6071_vm1, %v12888_v63, %v6079_v2 }
0x1a9f   : > { %v12901_v10 = vadd.f32 %v6034_v3, %v12818_v28  ;;  %v9489_v11 = vpop.f32.mrb[124].mxu1  ;;  %v6086_v12 = vsel %vm6070_vm2, %v12891_v5, %v6078_v14 }
0x1aa0   : > { %v6049_v17 = vadd.f32 %v9489_v11, %v7852_v60  ;;  %v6043_v23 = vpop.f32.mrb[125].mxu1  ;;  %9509 = vmatprep.mubr.msk.f32.mxu0 %vm577_vm5, %v6086_v12  ;;  %v6081_v9 = vmul.f32 0.2, %v12898_v8  ;;  %vm6073_vm0 = vcmp.gt.f32.partialorder %v12898_v8, 0.0 }
0x1aa1   : > { %v6044_v26 = vadd.f32 %v7852_v60, %v6043_v23  ;;  %9510 = vmatmul.mubr.msk.f32.vlgmr.msra.gmra.mrb[128].mxu0 %vm577_vm5, %v6087_v16  ;;  %vm6072_vm3 = vcmp.gt.f32.partialorder %v12901_v10, 0.0  ;;  %v6080_v27 = vmul.f32 0.2, %v12901_v10 }
0x1aa2   : > { %v12912_v61 = vadd.f32 %v6049_v17, %v12829_v15  ;;  %v6089_v36 = vsel %vm6073_vm0, %v12898_v8, %v6081_v9  ;;  %10248 = vmatpush3.bf16.msra.mxu0 %v10245_v44 }
0x1aa3   : > { %v12915_v4 = vadd.f32 %v6044_v26, %v12832_v51  ;;  %v9492_v28 = vpop.f32.mrb[126].mxu1  ;;  %v6088_v29 = vsel %vm6072_vm3, %v12901_v10, %v6080_v27  ;;  %10250 = vmatprep.subr.bf16.mxu0 %v10249_v37 }
0x1aa4   : > { %v6059_v32 = vadd.f32 %v9492_v28, %v7852_v60  ;;  %v6053_v33 = vpop.f32.mrb[127].mxu1  ;;  %9512 = vmatprep.mubr.msk.f32.mxu0 %vm577_vm5, %v6088_v29  ;;  %v6083_v39 = vmul.f32 0.2, %v12912_v61  ;;  %vm6075_vm6 = vcmp.gt.f32.partialorder %v12912_v61, 0.0 }
0x1aa5   : > { %v6054_v30 = vadd.f32 %v7852_v60, %v6053_v33  ;;  %9513 = vmatmul.mubr.msk.f32.gmra.mrb[130].mxu0 %vm577_vm5, %v6089_v36  ;;  %vm6074_vm4 = vcmp.gt.f32.partialorder %v12915_v4, 0.0  ;;  %v6082_v45 = vmul.f32 0.2, %v12915_v4 }
0x1aa6   : > { %v12926_v48 = vadd.f32 %v6059_v32, %v12843_v56  ;;  %v6091_v24 = vsel %vm6075_vm6, %v12912_v61, %v6083_v39  ;;  %v6274_v56 = vld [vmem:[%s13496_s2 + $0x370] sm:$0xff]  ;;  %10252 = vmatpush3.bf16.msra.mxu0 %v10249_v37  ;;  %v6446_v39 = vld [vmem:[%s13496_s2 + $0x3a0] sm:$0xff] }
0x1aa7   : > { %v12929_v15 = vadd.f32 %v6054_v30, %v12846_v34  ;;  %v6090_v51 = vsel %vm6074_vm4, %v12915_v4, %v6082_v45  ;;  %v6275_v34 = vld [vmem:[%s13496_s2 + $0x378] sm:$0xff]  ;;  %v6447_v30 = vld [vmem:[%s13496_s2 + $0x3a8] sm:$0xff] }
0x1aa8   : > { %9515 = vmatprep.mubr.msk.f32.mxu0 %vm577_vm5, %v6090_v51  ;;  %v6085_v54 = vmul.f32 0.2, %v12926_v48  ;;  %vm6077_vm8 = vcmp.gt.f32.partialorder %v12926_v48, 0.0  ;;  %v10241_v18 = vpack.c.bf16 %v6275_v34, %v6274_v56  ;;  %v10253_v45 = vpack.c.bf16 %v6447_v30, %v6446_v39  ;;  %v7879_v30 = vld [vmem:[%s13496_s2 + $0x518] ss:$0 sm:$0xff] }
0x1aa9   : > { %9516 = vmatmul.mubr.msk.f32.gmra.mrb[132].mxu0 %vm577_vm5, %v6091_v24  ;;  %vm6076_vm7 = vcmp.gt.f32.partialorder %v12929_v15, 0.0  ;;  %v6084_v20 = vmul.f32 0.2, %v12929_v15  ;;  %v6616_v24 = vld [vmem:[%s13496_s2 + $0x3c0] sm:$0xff] }
0x1aaa   : > { %v6093_v22 = vsel %vm6077_vm8, %v12926_v48, %v6085_v54  ;;  %10242 = vmatprep.subr.bf16.mxu1 %v10241_v18  ;;  %10254 = vmatprep.subr.bf16.mxu0 %v10253_v45  ;;  %v6617_v54 = vld [vmem:[%s13496_s2 + $0x3c8] sm:$0xff] }
0x1aab   : > { %v6092_v21 = vsel %vm6076_vm7, %v12929_v15, %v6084_v20  ;;  %10244 = vmatpush3.bf16.msra.mxu1 %v10241_v18  ;;  %10256 = vmatpush3.bf16.msra.mxu0 %v10253_v45  ;;  %v6618_v20 = vld [vmem:[%s13496_s2 + $0x3d0] sm:$0xff] }
0x1aac   : > { %9518 = vmatprep.mubr.msk.f32.mxu0 %vm577_vm5, %v6092_v21  ;;  %v10261_v21 = vpack.c.bf16 %v6617_v54, %v6616_v24 }
0x1aad   : > { %9519 = vmatmul.mubr.msk.f32.gmra.mrb[134].mxu0 %vm577_vm5, %v6093_v22  ;;  %v6619_v22 = vld [vmem:[%s13496_s2 + $0x3d8] sm:$0xff] }
0x1aae   : > { %v10265_v19 = vpack.c.bf16 %v6619_v22, %v6618_v20  ;;  %10262 = vmatprep.subr.bf16.mxu1 %v10261_v21 }
0x1b74   : > { %v9511_v53 = vpop.f32.mrb[128].mxu0 }
0x1b75   : > { %v6203_v58 = vadd.f32 %v9511_v53, %v7861_v52  ;;  %v6197_v59 = vpop.f32.mrb[129].mxu0 }
0x1b76   : > { %v6198_v35 = vadd.f32 %v7861_v52, %v6197_v59 }
0x1b77   : > { %v12971_v25 = vadd.f32 %v6203_v58, %v12888_v63 }
0x1b78   : > { %v12974_v1 = vadd.f32 %v6198_v35, %v12891_v5  ;;  %v9514_v0 = vpop.f32.mrb[130].mxu0 }
0x1b79   : > { %v6253_v7 = vmul.f32 0.2, %v12971_v25  ;;  %v6213_v6 = vadd.f32 %v9514_v0, %v7861_v52  ;;  %v6207_v47 = vpop.f32.mrb[131].mxu0  ;;  %vm6245_vm9 = vcmp.gt.f32.partialorder %v12971_v25, 0.0 }
0x1b7a   : > { %v6208_v60 = vadd.f32 %v7861_v52, %v6207_v47  ;;  %vm6244_vm10 = vcmp.gt.f32.partialorder %v12974_v1, 0.0  ;;  %v6252_v40 = vmul.f32 0.2, %v12974_v1 }
0x1b7b   : > { %v12981_v50 = vadd.f32 %v6213_v6, %v12898_v8  ;;  %v6261_v2 = vsel %vm6245_vm9, %v12971_v25, %v6253_v7 }
0x1b7c   : > { %v12984_v62 = vadd.f32 %v6208_v60, %v12901_v10  ;;  %v9517_v43 = vpop.f32.mrb[132].mxu0  ;;  %v6260_v63 = vsel %vm6244_vm10, %v12974_v1, %v6252_v40 }
0x1b7d   : > { %v6223_v5 = vadd.f32 %v9517_v43, %v7861_v52  ;;  %v6217_v46 = vpop.f32.mrb[133].mxu0  ;;  %9537 = vmatprep.mubr.msk.f32.mxu1 %vm577_vm5, %v6260_v63  ;;  %v6255_v13 = vmul.f32 0.2, %v12981_v50  ;;  %vm6247_vm13 = vcmp.gt.f32.partialorder %v12981_v50, 0.0 }
0x1b7e   : > { %v6218_v49 = vadd.f32 %v7861_v52, %v6217_v46  ;;  %9538 = vmatmul.mubr.msk.f32.vlgmr.msra.gmra.mrb[128].mxu1 %vm577_vm5, %v6261_v2  ;;  %vm6246_vm12 = vcmp.gt.f32.partialorder %v12984_v62, 0.0  ;;  %v6254_v3 = vmul.f32 0.2, %v12984_v62 }
0x1b7f   : > { %v12995_v14 = vadd.f32 %v6223_v5, %v12912_v61  ;;  %v6263_v23 = vsel %vm6247_vm13, %v12981_v50, %v6255_v13  ;;  %10264 = vmatpush3.bf16.msra.mxu1 %v10261_v21 }
0x1b80   : > { %v12998_v8 = vadd.f32 %v6218_v49, %v12915_v4  ;;  %v9520_v10 = vpop.f32.mrb[134].mxu0  ;;  %v6262_v11 = vsel %vm6246_vm12, %v12984_v62, %v6254_v3  ;;  %10266 = vmatprep.subr.bf16.mxu1 %v10265_v19 }
0x1b81   : > { %v6233_v12 = vadd.f32 %v9520_v10, %v7861_v52  ;;  %v6227_v17 = vpop.f32.mrb[135].mxu0  ;;  %9540 = vmatprep.mubr.msk.f32.mxu1 %vm577_vm5, %v6262_v11  ;;  %v6257_v16 = vmul.f32 0.2, %v12995_v14  ;;  %vm6249_vm15 = vcmp.gt.f32.partialorder %v12995_v14, 0.0 }
0x1b82   : > { %v6228_v9 = vadd.f32 %v7861_v52, %v6227_v17  ;;  %9541 = vmatmul.mubr.msk.f32.gmra.mrb[130].mxu1 %vm577_vm5, %v6263_v23  ;;  %vm6248_vm14 = vcmp.gt.f32.partialorder %v12998_v8, 0.0  ;;  %v6256_v26 = vmul.f32 0.2, %v12998_v8 }
0x1b83   : > { %v13009_v27 = vadd.f32 %v6233_v12, %v12926_v48  ;;  %v6265_v28 = vsel %vm6249_vm15, %v12995_v14, %v6257_v16  ;;  %v6448_v48 = vld [vmem:[%s13496_s2 + $0x3b0] sm:$0xff]  ;;  %10268 = vmatpush3.bf16.msra.mxu1 %v10265_v19  ;;  %v6620_v16 = vld [vmem:[%s13496_s2 + $0x3e0] sm:$0xff] }
0x1b84   : > { %v13012_v61 = vadd.f32 %v6228_v9, %v12929_v15  ;;  %v6264_v4 = vsel %vm6248_vm14, %v12998_v8, %v6256_v26  ;;  %v6449_v15 = vld [vmem:[%s13496_s2 + $0x3b8] sm:$0xff]  ;;  %v6621_v9 = vld [vmem:[%s13496_s2 + $0x3e8] sm:$0xff] }
0x1b85   : > { %9543 = vmatprep.mubr.msk.f32.mxu1 %vm577_vm5, %v6264_v4  ;;  %v6259_v29 = vmul.f32 0.2, %v13009_v27  ;;  %vm6251_vm2 = vcmp.gt.f32.partialorder %v13009_v27, 0.0  ;;  %v10257_v51 = vpack.c.bf16 %v6449_v15, %v6448_v48  ;;  %v10269_v26 = vpack.c.bf16 %v6621_v9, %v6620_v16  ;;  %v7888_v9 = vld [vmem:[%s13496_s2 + $0x520] ss:$0 sm:$0xff] }
0x1b86   : > { %9544 = vmatmul.mubr.msk.f32.gmra.mrb[132].mxu1 %vm577_vm5, %v6265_v28  ;;  %vm6250_vm1 = vcmp.gt.f32.partialorder %v13012_v61, 0.0  ;;  %v6258_v32 = vmul.f32 0.2, %v13012_v61  ;;  %v6790_v28 = vld [vmem:[%s13496_s2 + $0x400] sm:$0xff] }
0x1b87   : > { %v6267_v36 = vsel %vm6251_vm2, %v13009_v27, %v6259_v29  ;;  %10258 = vmatprep.subr.bf16.mxu0 %v10257_v51  ;;  %10270 = vmatprep.subr.bf16.mxu1 %v10269_v26  ;;  %v6791_v29 = vld [vmem:[%s13496_s2 + $0x408] sm:$0xff] }
0x1b88   : > { %v6266_v33 = vsel %vm6250_vm1, %v13012_v61, %v6258_v32  ;;  %10260 = vmatpush3.bf16.msra.mxu0 %v10257_v51  ;;  %10272 = vmatpush3.bf16.msra.mxu1 %v10269_v26  ;;  %v6792_v32 = vld [vmem:[%s13496_s2 + $0x410] sm:$0xff] }
0x1b89   : > { %9546 = vmatprep.mubr.msk.f32.mxu1 %vm577_vm5, %v6266_v33  ;;  %v10277_v33 = vpack.c.bf16 %v6791_v29, %v6790_v28 }
0x1b8a   : > { %9547 = vmatmul.mubr.msk.f32.gmra.mrb[134].mxu1 %vm577_vm5, %v6267_v36  ;;  %v6793_v36 = vld [vmem:[%s13496_s2 + $0x418] sm:$0xff] }
0x1b8b   : > { %v10281_v39 = vpack.c.bf16 %v6793_v36, %v6792_v32  ;;  %10278 = vmatprep.subr.bf16.mxu0 %v10277_v33 }
0x1c51   : > { %v9539_v41 = vpop.f32.mrb[128].mxu1 }
0x1c52   : > { %v6377_v56 = vadd.f32 %v9539_v41, %v7870_v31  ;;  %v6371_v34 = vpop.f32.mrb[129].mxu1 }
0x1c53   : > { %v6372_v18 = vadd.f32 %v7870_v31, %v6371_v34 }
0x1c54   : > { %v13054_v38 = vadd.f32 %v6377_v56, %v12971_v25 }
0x1c55   : > { %v13057_v42 = vadd.f32 %v6372_v18, %v12974_v1  ;;  %v9542_v55 = vpop.f32.mrb[130].mxu1 }
0x1c56   : > { %v6427_v44 = vmul.f32 0.2, %v13054_v38  ;;  %v6387_v57 = vadd.f32 %v9542_v55, %v7870_v31  ;;  %v6381_v37 = vpop.f32.mrb[131].mxu1  ;;  %vm6419_vm3 = vcmp.gt.f32.partialorder %v13054_v38, 0.0 }
0x1c57   : > { %v6382_v52 = vadd.f32 %v7870_v31, %v6381_v37  ;;  %vm6418_vm0 = vcmp.gt.f32.partialorder %v13057_v42, 0.0  ;;  %v6426_v53 = vmul.f32 0.2, %v13057_v42 }
0x1c58   : > { %v13064_v58 = vadd.f32 %v6387_v57, %v12981_v50  ;;  %v6435_v7 = vsel %vm6419_vm3, %v13054_v38, %v6427_v44 }
0x1c59   : > { %v13067_v59 = vadd.f32 %v6382_v52, %v12984_v62  ;;  %v9545_v35 = vpop.f32.mrb[132].mxu1  ;;  %v6434_v25 = vsel %vm6418_vm0, %v13057_v42, %v6426_v53 }
0x1c5a   : > { %v6397_v1 = vadd.f32 %v9545_v35, %v7870_v31  ;;  %v6391_v0 = vpop.f32.mrb[133].mxu1  ;;  %9565 = vmatprep.mubr.msk.f32.mxu0 %vm577_vm5, %v6434_v25  ;;  %v6429_v6 = vmul.f32 0.2, %v13064_v58  ;;  %vm6421_vm6 = vcmp.gt.f32.partialorder %v13064_v58, 0.0 }
0x1c5b   : > { %v6392_v47 = vadd.f32 %v7870_v31, %v6391_v0  ;;  %9566 = vmatmul.mubr.msk.f32.vlgmr.msra.gmra.mrb[136].mxu0 %vm577_vm5, %v6435_v7  ;;  %vm6420_vm4 = vcmp.gt.f32.partialorder %v13067_v59, 0.0  ;;  %v6428_v60 = vmul.f32 0.2, %v13067_v59 }
0x1c5c   : > { %v13078_v40 = vadd.f32 %v6397_v1, %v12995_v14  ;;  %v6437_v46 = vsel %vm6421_vm6, %v13064_v58, %v6429_v6  ;;  %10280 = vmatpush3.bf16.msra.mxu0 %v10277_v33 }
0x1c5d   : > { %v13081_v50 = vadd.f32 %v6392_v47, %v12998_v8  ;;  %v9548_v62 = vpop.f32.mrb[134].mxu1  ;;  %v6436_v43 = vsel %vm6420_vm4, %v13067_v59, %v6428_v60  ;;  %10282 = vmatprep.subr.bf16.mxu0 %v10281_v39 }
0x1c5e   : > { %v6407_v63 = vadd.f32 %v9548_v62, %v7870_v31  ;;  %v6401_v5 = vpop.f32.mrb[135].mxu1  ;;  %9568 = vmatprep.mubr.msk.f32.mxu0 %vm577_vm5, %v6436_v43  ;;  %v6431_v2 = vmul.f32 0.2, %v13078_v40  ;;  %vm6423_vm8 = vcmp.gt.f32.partialorder %v13078_v40, 0.0 }
0x1c5f   : > { %v6402_v13 = vadd.f32 %v7870_v31, %v6401_v5  ;;  %9569 = vmatmul.mubr.msk.f32.gmra.mrb[138].mxu0 %vm577_vm5, %v6437_v46  ;;  %vm6422_vm7 = vcmp.gt.f32.partialorder %v13081_v50, 0.0  ;;  %v6430_v49 = vmul.f32 0.2, %v13081_v50 }
0x1c60   : > { %v13092_v3 = vadd.f32 %v6407_v63, %v13009_v27  ;;  %v6439_v10 = vsel %vm6423_vm8, %v13078_v40, %v6431_v2  ;;  %v6622_v27 = vld [vmem:[%s13496_s2 + $0x3f0] sm:$0xff]  ;;  %10284 = vmatpush3.bf16.msra.mxu0 %v10281_v39  ;;  %v6794_v2 = vld [vmem:[%s13496_s2 + $0x420] sm:$0xff] }
0x1c61   : > { %v13095_v14 = vadd.f32 %v6402_v13, %v13012_v61  ;;  %v6438_v8 = vsel %vm6422_vm7, %v13081_v50, %v6430_v49  ;;  %v6623_v61 = vld [vmem:[%s13496_s2 + $0x3f8] sm:$0xff]  ;;  %v6795_v13 = vld [vmem:[%s13496_s2 + $0x428] sm:$0xff] }
0x1c62   : > { %9571 = vmatprep.mubr.msk.f32.mxu0 %vm577_vm5, %v6438_v8  ;;  %v6433_v11 = vmul.f32 0.2, %v13092_v3  ;;  %vm6425_vm10 = vcmp.gt.f32.partialorder %v13092_v3, 0.0  ;;  %v10273_v4 = vpack.c.bf16 %v6623_v61, %v6622_v27  ;;  %v10285_v49 = vpack.c.bf16 %v6795_v13, %v6794_v2  ;;  %v7897_v13 = vld [vmem:[%s13496_s2 + $0x528] ss:$0 sm:$0xff] }
0x1c63   : > { %9572 = vmatmul.mubr.msk.f32.gmra.mrb[140].mxu0 %vm577_vm5, %v6439_v10  ;;  %vm6424_vm9 = vcmp.gt.f32.partialorder %v13095_v14, 0.0  ;;  %v6432_v12 = vmul.f32 0.2, %v13095_v14  ;;  %v6964_v10 = vld [vmem:[%s13496_s2 + $0x440] sm:$0xff] }
0x1c64   : > { %v6441_v23 = vsel %vm6425_vm10, %v13092_v3, %v6433_v11  ;;  %10274 = vmatprep.subr.bf16.mxu1 %v10273_v4  ;;  %10286 = vmatprep.subr.bf16.mxu0 %v10285_v49  ;;  %v6965_v11 = vld [vmem:[%s13496_s2 + $0x448] sm:$0xff] }
0x1c65   : > { %v6440_v17 = vsel %vm6424_vm9, %v13095_v14, %v6432_v12  ;;  %10276 = vmatpush3.bf16.msra.mxu1 %v10273_v4  ;;  %10288 = vmatpush3.bf16.msra.mxu0 %v10285_v49  ;;  %v6966_v12 = vld [vmem:[%s13496_s2 + $0x450] sm:$0xff] }
0x1c66   : > { %9574 = vmatprep.mubr.msk.f32.mxu0 %vm577_vm5, %v6440_v17  ;;  %v10293_v17 = vpack.c.bf16 %v6965_v11, %v6964_v10 }
0x1c67   : > { %9575 = vmatmul.mubr.msk.f32.gmra.mrb[142].mxu0 %vm577_vm5, %v6441_v23  ;;  %v6967_v23 = vld [vmem:[%s13496_s2 + $0x458] sm:$0xff] }
0x1c68   : > { %v10297_v16 = vpack.c.bf16 %v6967_v23, %v6966_v12  ;;  %10294 = vmatprep.subr.bf16.mxu1 %v10293_v17 }
0x1d2e   : > { %v9567_v45 = vpop.f32.mrb[136].mxu0 }
0x1d2f   : > { %v6551_v48 = vadd.f32 %v9567_v45, %v7879_v30  ;;  %v6545_v15 = vpop.f32.mrb[137].mxu0 }
0x1d30   : > { %v6546_v51 = vadd.f32 %v7879_v30, %v6545_v15 }
0x1d31   : > { %v13137_v24 = vadd.f32 %v6551_v48, %v13054_v38 }
0x1d32   : > { %v13140_v54 = vadd.f32 %v6546_v51, %v13057_v42  ;;  %v9570_v20 = vpop.f32.mrb[138].mxu0 }
0x1d33   : > { %v6601_v21 = vmul.f32 0.2, %v13137_v24  ;;  %v6561_v22 = vadd.f32 %v9570_v20, %v7879_v30  ;;  %v6555_v19 = vpop.f32.mrb[139].mxu0  ;;  %vm6593_vm12 = vcmp.gt.f32.partialorder %v13137_v24, 0.0 }
0x1d34   : > { %v6556_v31 = vadd.f32 %v7879_v30, %v6555_v19  ;;  %vm6592_vm13 = vcmp.gt.f32.partialorder %v13140_v54, 0.0  ;;  %v6600_v41 = vmul.f32 0.2, %v13140_v54 }
0x1d35   : > { %v13147_v56 = vadd.f32 %v6561_v22, %v13064_v58  ;;  %v6609_v44 = vsel %vm6593_vm12, %v13137_v24, %v6601_v21 }
0x1d36   : > { %v13150_v34 = vadd.f32 %v6556_v31, %v13067_v59  ;;  %v9573_v18 = vpop.f32.mrb[140].mxu0  ;;  %v6608_v38 = vsel %vm6592_vm13, %v13140_v54, %v6600_v41 }
0x1d37   : > { %v6571_v42 = vadd.f32 %v9573_v18, %v7879_v30  ;;  %v6565_v55 = vpop.f32.mrb[141].mxu0  ;;  %9593 = vmatprep.mubr.msk.f32.mxu1 %vm577_vm5, %v6608_v38  ;;  %v6603_v57 = vmul.f32 0.2, %v13147_v56  ;;  %vm6595_vm15 = vcmp.gt.f32.partialorder %v13147_v56, 0.0 }
0x1d38   : > { %v6566_v37 = vadd.f32 %v7879_v30, %v6565_v55  ;;  %9594 = vmatmul.mubr.msk.f32.vlgmr.msra.gmra.mrb[136].mxu1 %vm577_vm5, %v6609_v44  ;;  %vm6594_vm14 = vcmp.gt.f32.partialorder %v13150_v34, 0.0  ;;  %v6602_v52 = vmul.f32 0.2, %v13150_v34 }
0x1d39   : > { %v13161_v53 = vadd.f32 %v6571_v42, %v13078_v40  ;;  %v6611_v0 = vsel %vm6595_vm15, %v13147_v56, %v6603_v57  ;;  %10296 = vmatpush3.bf16.msra.mxu1 %v10293_v17 }
0x1d3a   : > { %v13164_v58 = vadd.f32 %v6566_v37, %v13081_v50  ;;  %v9576_v59 = vpop.f32.mrb[142].mxu0  ;;  %v6610_v35 = vsel %vm6594_vm14, %v13150_v34, %v6602_v52  ;;  %10298 = vmatprep.subr.bf16.mxu1 %v10297_v16 }
0x1d3b   : > { %v6581_v25 = vadd.f32 %v9576_v59, %v7879_v30  ;;  %v6575_v1 = vpop.f32.mrb[143].mxu0  ;;  %9596 = vmatprep.mubr.msk.f32.mxu1 %vm577_vm5, %v6610_v35  ;;  %v6605_v7 = vmul.f32 0.2, %v13161_v53  ;;  %vm6597_vm2 = vcmp.gt.f32.partialorder %v13161_v53, 0.0 }
0x1d3c   : > { %v6576_v6 = vadd.f32 %v7879_v30, %v6575_v1  ;;  %9597 = vmatmul.mubr.msk.f32.gmra.mrb[138].mxu1 %vm577_vm5, %v6611_v0  ;;  %vm6596_vm1 = vcmp.gt.f32.partialorder %v13164_v58, 0.0  ;;  %v6604_v47 = vmul.f32 0.2, %v13164_v58 }
0x1d3d   : > { %v13175_v60 = vadd.f32 %v6581_v25, %v13092_v3  ;;  %v6613_v62 = vsel %vm6597_vm2, %v13161_v53, %v6605_v7  ;;  %v6796_v3 = vld [vmem:[%s13496_s2 + $0x430] sm:$0xff]  ;;  %10300 = vmatpush3.bf16.msra.mxu1 %v10297_v16  ;;  %v6968_v7 = vld [vmem:[%s13496_s2 + $0x460] sm:$0xff] }
0x1d3e   : > { %v13178_v40 = vadd.f32 %v6576_v6, %v13095_v14  ;;  %v6612_v50 = vsel %vm6596_vm1, %v13164_v58, %v6604_v47  ;;  %v6797_v14 = vld [vmem:[%s13496_s2 + $0x438] sm:$0xff]  ;;  %v6969_v6 = vld [vmem:[%s13496_s2 + $0x468] sm:$0xff] }
0x1d3f   : > { %9599 = vmatprep.mubr.msk.f32.mxu1 %vm577_vm5, %v6612_v50  ;;  %v6607_v43 = vmul.f32 0.2, %v13175_v60  ;;  %vm6599_vm0 = vcmp.gt.f32.partialorder %v13175_v60, 0.0  ;;  %v10289_v8 = vpack.c.bf16 %v6797_v14, %v6796_v3  ;;  %v10301_v47 = vpack.c.bf16 %v6969_v6, %v6968_v7  ;;  %v7906_v6 = vld [vmem:[%s13496_s2 + $0x530] ss:$0 sm:$0xff] }
0x1d40   : > { %9600 = vmatmul.mubr.msk.f32.gmra.mrb[140].mxu1 %vm577_vm5, %v6613_v62  ;;  %vm6598_vm3 = vcmp.gt.f32.partialorder %v13178_v40, 0.0  ;;  %v6606_v63 = vmul.f32 0.2, %v13178_v40  ;;  %v7138_v62 = vld [vmem:[%s13496_s2 + $0x480] sm:$0xff] }
0x1d41   : > { %v6615_v46 = vsel %vm6599_vm0, %v13175_v60, %v6607_v43  ;;  %10290 = vmatprep.subr.bf16.mxu0 %v10289_v8  ;;  %10302 = vmatprep.subr.bf16.mxu1 %v10301_v47  ;;  %v7139_v43 = vld [vmem:[%s13496_s2 + $0x488] sm:$0xff] }
0x1d42   : > { %v6614_v5 = vsel %vm6598_vm3, %v13178_v40, %v6606_v63  ;;  %10292 = vmatpush3.bf16.msra.mxu0 %v10289_v8  ;;  %10304 = vmatpush3.bf16.msra.mxu1 %v10301_v47  ;;  %v7140_v63 = vld [vmem:[%s13496_s2 + $0x490] sm:$0xff] }
0x1d43   : > { %9602 = vmatprep.mubr.msk.f32.mxu1 %vm577_vm5, %v6614_v5  ;;  %v10309_v5 = vpack.c.bf16 %v7139_v43, %v7138_v62 }
0x1d44   : > { %9603 = vmatmul.mubr.msk.f32.gmra.mrb[142].mxu1 %vm577_vm5, %v6615_v46  ;;  %v7141_v46 = vld [vmem:[%s13496_s2 + $0x498] sm:$0xff] }
0x1d45   : > { %v10313_v2 = vpack.c.bf16 %v7141_v46, %v7140_v63  ;;  %10310 = vmatprep.subr.bf16.mxu0 %v10309_v5 }
0x1e0b   : > { %v9595_v26 = vpop.f32.mrb[136].mxu1 }
0x1e0c   : > { %v6725_v27 = vadd.f32 %v9595_v26, %v7888_v9  ;;  %v6719_v61 = vpop.f32.mrb[137].mxu1 }
0x1e0d   : > { %v6720_v4 = vadd.f32 %v7888_v9, %v6719_v61 }
0x1e0e   : > { %v13220_v28 = vadd.f32 %v6725_v27, %v13137_v24 }
0x1e0f   : > { %v13223_v29 = vadd.f32 %v6720_v4, %v13140_v54  ;;  %v9598_v32 = vpop.f32.mrb[138].mxu1 }
0x1e10   : > { %v6775_v33 = vmul.f32 0.2, %v13220_v28  ;;  %v6735_v36 = vadd.f32 %v9598_v32, %v7888_v9  ;;  %v6729_v39 = vpop.f32.mrb[139].mxu1  ;;  %vm6767_vm4 = vcmp.gt.f32.partialorder %v13220_v28, 0.0 }
0x1e11   : > { %v6730_v30 = vadd.f32 %v7888_v9, %v6729_v39  ;;  %vm6766_vm6 = vcmp.gt.f32.partialorder %v13223_v29, 0.0  ;;  %v6774_v45 = vmul.f32 0.2, %v13223_v29 }
0x1e12   : > { %v13230_v48 = vadd.f32 %v6735_v36, %v13147_v56  ;;  %v6783_v21 = vsel %vm6767_vm4, %v13220_v28, %v6775_v33 }
0x1e13   : > { %v13233_v15 = vadd.f32 %v6730_v30, %v13150_v34  ;;  %v9601_v51 = vpop.f32.mrb[140].mxu1  ;;  %v6782_v24 = vsel %vm6766_vm6, %v13223_v29, %v6774_v45 }
0x1e14   : > { %v6745_v54 = vadd.f32 %v9601_v51, %v7888_v9  ;;  %v6739_v20 = vpop.f32.mrb[141].mxu1  ;;  %9621 = vmatprep.mubr.msk.f32.mxu0 %vm577_vm5, %v6782_v24  ;;  %v6777_v22 = vmul.f32 0.2, %v13230_v48  ;;  %vm6769_vm8 = vcmp.gt.f32.partialorder %v13230_v48, 0.0 }
0x1e15   : > { %v6740_v19 = vadd.f32 %v7888_v9, %v6739_v20  ;;  %9622 = vmatmul.mubr.msk.f32.vlgmr.msra.gmra.mrb[144].mxu0 %vm577_vm5, %v6783_v21  ;;  %vm6768_vm7 = vcmp.gt.f32.partialorder %v13233_v15, 0.0  ;;  %v6776_v31 = vmul.f32 0.2, %v13233_v15 }
0x1e16   : > { %v13244_v41 = vadd.f32 %v6745_v54, %v13161_v53  ;;  %v6785_v55 = vsel %vm6769_vm8, %v13230_v48, %v6777_v22  ;;  %10312 = vmatpush3.bf16.msra.mxu0 %v10309_v5 }
0x1e17   : > { %v13247_v56 = vadd.f32 %v6740_v19, %v13164_v58  ;;  %v9604_v34 = vpop.f32.mrb[142].mxu1  ;;  %v6784_v18 = vsel %vm6768_vm7, %v13233_v15, %v6776_v31  ;;  %10314 = vmatprep.subr.bf16.mxu0 %v10313_v2 }
0x1e18   : > { %v6755_v38 = vadd.f32 %v9604_v34, %v7888_v9  ;;  %v6749_v42 = vpop.f32.mrb[143].mxu1  ;;  %9624 = vmatprep.mubr.msk.f32.mxu0 %vm577_vm5, %v6784_v18  ;;  %v6779_v44 = vmul.f32 0.2, %v13244_v41  ;;  %vm6771_vm10 = vcmp.gt.f32.partialorder %v13244_v41, 0.0 }
0x1e19   : > { %v6750_v57 = vadd.f32 %v7888_v9, %v6749_v42  ;;  %9625 = vmatmul.mubr.msk.f32.gmra.mrb[146].mxu0 %vm577_vm5, %v6785_v55  ;;  %vm6770_vm9 = vcmp.gt.f32.partialorder %v13247_v56, 0.0  ;;  %v6778_v37 = vmul.f32 0.2, %v13247_v56 }
0x1e1a   : > { %v13258_v52 = vadd.f32 %v6755_v38, %v13175_v60  ;;  %v6787_v59 = vsel %vm6771_vm10, %v13244_v41, %v6779_v44  ;;  %v6970_v60 = vld [vmem:[%s13496_s2 + $0x470] sm:$0xff]  ;;  %10316 = vmatpush3.bf16.msra.mxu0 %v10313_v2  ;;  %v7142_v44 = vld [vmem:[%s13496_s2 + $0x4a0] sm:$0xff] }
0x1e1b   : > { %v13261_v53 = vadd.f32 %v6750_v57, %v13178_v40  ;;  %v6786_v58 = vsel %vm6770_vm9, %v13247_v56, %v6778_v37  ;;  %v6971_v40 = vld [vmem:[%s13496_s2 + $0x478] sm:$0xff]  ;;  %v7143_v57 = vld [vmem:[%s13496_s2 + $0x4a8] sm:$0xff] }
0x1e1c   : > { %9627 = vmatprep.mubr.msk.f32.mxu0 %vm577_vm5, %v6786_v58  ;;  %v6781_v35 = vmul.f32 0.2, %v13258_v52  ;;  %vm6773_vm13 = vcmp.gt.f32.partialorder %v13258_v52, 0.0  ;;  %v10305_v50 = vpack.c.bf16 %v6971_v40, %v6970_v60  ;;  %v10317_v37 = vpack.c.bf16 %v7143_v57, %v7142_v44 }
0x1e1d   : > { %9628 = vmatmul.mubr.msk.f32.gmra.mrb[148].mxu0 %vm577_vm5, %v6787_v59  ;;  %vm6772_vm12 = vcmp.gt.f32.partialorder %v13261_v53, 0.0  ;;  %v6780_v25 = vmul.f32 0.2, %v13261_v53  ;;  %v7312_v59 = vld [vmem:[%s13496_s2 + $0x540] sm:$0xff] }
0x1e1e   : > { %v6789_v0 = vsel %vm6773_vm13, %v13258_v52, %v6781_v35  ;;  %10306 = vmatprep.subr.bf16.mxu1 %v10305_v50  ;;  %10318 = vmatprep.subr.bf16.mxu0 %v10317_v37  ;;  %v7313_v35 = vld [vmem:[%s13496_s2 + $0x548] sm:$0xff] }
0x1e1f   : > { %v6788_v1 = vsel %vm6772_vm12, %v13261_v53, %v6780_v25  ;;  %10308 = vmatpush3.bf16.msra.mxu1 %v10305_v50  ;;  %10320 = vmatpush3.bf16.msra.mxu0 %v10317_v37  ;;  %v7314_v25 = vld [vmem:[%s13496_s2 + $0x550] sm:$0xff] }
0x1e20   : > { %9630 = vmatprep.mubr.msk.f32.mxu0 %vm577_vm5, %v6788_v1  ;;  %v10325_v1 = vpack.c.bf16 %v7313_v35, %v7312_v59 }
0x1e21   : > { %9631 = vmatmul.mubr.msk.f32.gmra.mrb[150].mxu0 %vm577_vm5, %v6789_v0  ;;  %v7315_v0 = vld [vmem:[%s13496_s2 + $0x558] sm:$0xff] }
0x1e22   : > { %10341 = vmatprep.subr.bf16.mxu1 %v10325_v1  ;;  %v10329_v7 = vpack.c.bf16 %v7315_v0, %v7314_v25 }
0x1ee8   : > { %v9623_v49 = vpop.f32.mrb[144].mxu0 }
0x1ee9   : > { %v6899_v3 = vadd.f32 %v9623_v49, %v7897_v13  ;;  %v6893_v14 = vpop.f32.mrb[145].mxu0 }
0x1eea   : > { %v6894_v8 = vadd.f32 %v7897_v13, %v6893_v14 }
0x1eeb   : > { %v13303_v10 = vadd.f32 %v6899_v3, %v13220_v28 }
0x1eec   : > { %v13306_v11 = vadd.f32 %v6894_v8, %v13223_v29  ;;  %v9626_v12 = vpop.f32.mrb[146].mxu0 }
0x1eed   : > { %v6949_v17 = vmul.f32 0.2, %v13303_v10  ;;  %v6909_v23 = vadd.f32 %v9626_v12, %v7897_v13  ;;  %v6903_v16 = vpop.f32.mrb[147].mxu0  ;;  %vm6941_vm14 = vcmp.gt.f32.partialorder %v13303_v10, 0.0 }
0x1eee   : > { %v6904_v9 = vadd.f32 %v7897_v13, %v6903_v16  ;;  %vm6940_vm15 = vcmp.gt.f32.partialorder %v13306_v11, 0.0  ;;  %v6948_v26 = vmul.f32 0.2, %v13306_v11 }
0x1eef   : > { %v13313_v27 = vadd.f32 %v6909_v23, %v13230_v48  ;;  %v6957_v33 = vsel %vm6941_vm14, %v13303_v10, %v6949_v17 }
0x1ef0   : > { %v13316_v61 = vadd.f32 %v6904_v9, %v13233_v15  ;;  %v9629_v4 = vpop.f32.mrb[148].mxu0  ;;  %v6956_v28 = vsel %vm6940_vm15, %v13306_v11, %v6948_v26 }
0x1ef1   : > { %v6919_v29 = vadd.f32 %v9629_v4, %v7897_v13  ;;  %v6913_v32 = vpop.f32.mrb[149].mxu0  ;;  %9649 = vmatprep.mubr.msk.f32.mxu1 %vm577_vm5, %v6956_v28  ;;  %v6951_v36 = vmul.f32 0.2, %v13313_v27  ;;  %vm6943_vm2 = vcmp.gt.f32.partialorder %v13313_v27, 0.0 }
0x1ef2   : > { %v6914_v39 = vadd.f32 %v7897_v13, %v6913_v32  ;;  %9650 = vmatmul.mubr.msk.f32.vlgmr.msra.gmra.mrb[144].mxu1 %vm577_vm5, %v6957_v33  ;;  %vm6942_vm1 = vcmp.gt.f32.partialorder %v13316_v61, 0.0  ;;  %v6950_v30 = vmul.f32 0.2, %v13316_v61 }
0x1ef3   : > { %v13327_v45 = vadd.f32 %v6919_v29, %v13244_v41  ;;  %v6959_v20 = vsel %vm6943_vm2, %v13313_v27, %v6951_v36  ;;  %10345 = vmatpush3.bf16.msra.mxu1 %v10325_v1 }
0x1ef4   : > { %v13330_v48 = vadd.f32 %v6914_v39, %v13247_v56  ;;  %v9632_v15 = vpop.f32.mrb[150].mxu0  ;;  %v6958_v51 = vsel %vm6942_vm1, %v13316_v61, %v6950_v30  ;;  %10342 = vmatprep.subr.bf16.mxu1 %v10329_v7 }
0x1ef5   : > { %v6929_v24 = vadd.f32 %v9632_v15, %v7897_v13  ;;  %v6923_v54 = vpop.f32.mrb[151].mxu0  ;;  %9652 = vmatprep.mubr.msk.f32.mxu1 %vm577_vm5, %v6958_v51  ;;  %v6953_v21 = vmul.f32 0.2, %v13327_v45  ;;  %vm6945_vm0 = vcmp.gt.f32.partialorder %v13327_v45, 0.0 }
0x1ef6   : > { %v6924_v22 = vadd.f32 %v7897_v13, %v6923_v54  ;;  %9653 = vmatmul.mubr.msk.f32.gmra.mrb[146].mxu1 %vm577_vm5, %v6959_v20  ;;  %vm6944_vm3 = vcmp.gt.f32.partialorder %v13330_v48, 0.0  ;;  %v6952_v19 = vmul.f32 0.2, %v13330_v48 }
0x1ef7   : > { %v13341_v31 = vadd.f32 %v6929_v24, %v13258_v52  ;;  %v6961_v34 = vsel %vm6945_vm0, %v13327_v45, %v6953_v21  ;;  %v7144_v52 = vld [vmem:[%s13496_s2 + $0x4b0] sm:$0xff]  ;;  %10346 = vmatpush3.bf16.msra.mxu1 %v10329_v7  ;;  %v7316_v21 = vld [vmem:[%s13496_s2 + $0x560] sm:$0xff] }
0x1ef8   : > { %v13344_v41 = vadd.f32 %v6924_v22, %v13261_v53  ;;  %v6960_v56 = vsel %vm6944_vm3, %v13330_v48, %v6952_v19  ;;  %v7145_v53 = vld [vmem:[%s13496_s2 + $0x4b8] sm:$0xff]  ;;  %v7317_v22 = vld [vmem:[%s13496_s2 + $0x568] sm:$0xff] }
0x1ef9   : > { %9655 = vmatprep.mubr.msk.f32.mxu1 %vm577_vm5, %v6960_v56  ;;  %v6955_v18 = vmul.f32 0.2, %v13341_v31  ;;  %vm6947_vm6 = vcmp.gt.f32.partialorder %v13341_v31, 0.0  ;;  %v10321_v58 = vpack.c.bf16 %v7145_v53, %v7144_v52  ;;  %v10333_v19 = vpack.c.bf16 %v7317_v22, %v7316_v21 }
0x1efa   : > { %9656 = vmatmul.mubr.msk.f32.gmra.mrb[148].mxu1 %vm577_vm5, %v6961_v34  ;;  %vm6946_vm4 = vcmp.gt.f32.partialorder %v13344_v41, 0.0  ;;  %v6954_v38 = vmul.f32 0.2, %v13344_v41  ;;  %v7915_v34 = vld [vmem:[%s13496_s2 + $0x538] ss:$0 sm:$0xff] }
0x1efb   : > { %v6963_v55 = vsel %vm6947_vm6, %v13341_v31, %v6955_v18  ;;  %10322 = vmatprep.subr.bf16.mxu0 %v10321_v58  ;;  %10343 = vmatprep.subr.bf16.mxu1 %v10333_v19 }
0x1efc   : > { %v6962_v42 = vsel %vm6946_vm4, %v13344_v41, %v6954_v38  ;;  %10324 = vmatpush3.bf16.msra.mxu0 %v10321_v58  ;;  %10347 = vmatpush3.bf16.msra.mxu1 %v10333_v19 }
0x1efd   : > { %9658 = vmatprep.mubr.msk.f32.mxu1 %vm577_vm5, %v6962_v42  ;;  %10326 = vmatprep.subr.bf16.mxu0 %v10325_v1 }
0x1efe   : > { %9659 = vmatmul.mubr.msk.f32.gmra.mrb[150].mxu1 %vm577_vm5, %v6963_v55 }
0x1fc5   : > { %v9651_v47 = vpop.f32.mrb[144].mxu1 }
0x1fc6   : > { %v7073_v60 = vadd.f32 %v9651_v47, %v7906_v6  ;;  %v7067_v40 = vpop.f32.mrb[145].mxu1 }
0x1fc7   : > { %v7068_v50 = vadd.f32 %v7906_v6, %v7067_v40 }
0x1fc8   : > { %v13386_v62 = vadd.f32 %v7073_v60, %v13303_v10 }
0x1fc9   : > { %v13389_v43 = vadd.f32 %v7068_v50, %v13306_v11  ;;  %v9654_v63 = vpop.f32.mrb[146].mxu1 }
0x1fca   : > { %v7123_v5 = vmul.f32 0.2, %v13386_v62  ;;  %v7083_v46 = vadd.f32 %v9654_v63, %v7906_v6  ;;  %v7077_v2 = vpop.f32.mrb[147].mxu1  ;;  %vm7115_vm7 = vcmp.gt.f32.partialorder %v13386_v62, 0.0 }
0x1fcb   : > { %v7078_v13 = vadd.f32 %v7906_v6, %v7077_v2  ;;  %vm7114_vm8 = vcmp.gt.f32.partialorder %v13389_v43, 0.0  ;;  %v7122_v49 = vmul.f32 0.2, %v13389_v43 }
0x1fcc   : > { %v13396_v3 = vadd.f32 %v7083_v46, %v13313_v27  ;;  %v7131_v17 = vsel %vm7115_vm7, %v13386_v62, %v7123_v5 }
0x1fcd   : > { %v13399_v14 = vadd.f32 %v7078_v13, %v13316_v61  ;;  %v9657_v8 = vpop.f32.mrb[148].mxu1  ;;  %v7130_v10 = vsel %vm7114_vm8, %v13389_v43, %v7122_v49 }
0x1fce   : > { %v7093_v11 = vadd.f32 %v9657_v8, %v7906_v6  ;;  %v7087_v12 = vpop.f32.mrb[149].mxu1  ;;  %9677 = vmatprep.mubr.msk.f32.mxu0 %vm577_vm5, %v7130_v10  ;;  %v7125_v23 = vmul.f32 0.2, %v13396_v3  ;;  %vm7117_vm10 = vcmp.gt.f32.partialorder %v13396_v3, 0.0 }
0x1fcf   : > { %v7088_v16 = vadd.f32 %v7906_v6, %v7087_v12  ;;  %9678 = vmatmul.mubr.msk.f32.vlgmr.msra.gmra.mrb[152].mxu0 %vm577_vm5, %v7131_v17  ;;  %vm7116_vm9 = vcmp.gt.f32.partialorder %v13399_v14, 0.0  ;;  %v7124_v9 = vmul.f32 0.2, %v13399_v14 }
0x1fd0   : > { %v13410_v26 = vadd.f32 %v7093_v11, %v13327_v45  ;;  %10328 = vmatpush3.bf16.msra.mxu0 %v10325_v1  ;;  %v7133_v32 = vsel %vm7117_vm10, %v13396_v3, %v7125_v23 }
0x1fd1   : > { %v13413_v27 = vadd.f32 %v7088_v16, %v13330_v48  ;;  %v9660_v61 = vpop.f32.mrb[150].mxu1  ;;  %v7132_v4 = vsel %vm7116_vm9, %v13399_v14, %v7124_v9  ;;  %10330 = vmatprep.subr.bf16.mxu0 %v10329_v7 }
0x1fd2   : > { %v7103_v28 = vadd.f32 %v9660_v61, %v7906_v6  ;;  %v7097_v29 = vpop.f32.mrb[151].mxu1  ;;  %9680 = vmatprep.mubr.msk.f32.mxu0 %vm577_vm5, %v7132_v4  ;;  %v7127_v33 = vmul.f32 0.2, %v13410_v26  ;;  %vm7119_vm13 = vcmp.gt.f32.partialorder %v13410_v26, 0.0 }
0x1fd3   : > { %v7098_v36 = vadd.f32 %v7906_v6, %v7097_v29  ;;  %9681 = vmatmul.mubr.msk.f32.gmra.mrb[154].mxu0 %vm577_vm5, %v7133_v32  ;;  %vm7118_vm12 = vcmp.gt.f32.partialorder %v13413_v27, 0.0  ;;  %v7126_v39 = vmul.f32 0.2, %v13413_v27 }
0x1fd4   : > { %v13424_v30 = vadd.f32 %v7103_v28, %v13341_v31  ;;  %10332 = vmatpush3.bf16.msra.mxu0 %v10329_v7  ;;  %v7135_v15 = vsel %vm7119_vm13, %v13410_v26, %v7127_v33  ;;  %v7318_v31 = vld [vmem:[%s13496_s2 + $0x570] sm:$0xff] }
0x1fd5   : > { %v13427_v45 = vadd.f32 %v7098_v36, %v13344_v41  ;;  %v7134_v48 = vsel %vm7118_vm12, %v13413_v27, %v7126_v39  ;;  %10334 = vmatprep.subr.bf16.mxu0 %v10333_v19  ;;  %v7319_v41 = vld [vmem:[%s13496_s2 + $0x578] sm:$0xff] }
0x1fd6   : > { %9683 = vmatprep.mubr.msk.f32.mxu0 %vm577_vm5, %v7134_v48  ;;  %v7129_v51 = vmul.f32 0.2, %v13424_v30  ;;  %vm7121_vm15 = vcmp.gt.f32.partialorder %v13424_v30, 0.0  ;;  %v10337_v56 = vpack.c.bf16 %v7319_v41, %v7318_v31 }
0x1fd7   : > { %9684 = vmatmul.mubr.msk.f32.gmra.mrb[156].mxu0 %vm577_vm5, %v7135_v15  ;;  %vm7120_vm14 = vcmp.gt.f32.partialorder %v13427_v45, 0.0  ;;  %v7128_v24 = vmul.f32 0.2, %v13427_v45 }
0x1fd8   : > { %v7137_v20 = vsel %vm7121_vm15, %v13424_v30, %v7129_v51  ;;  %10336 = vmatpush3.bf16.msra.mxu0 %v10333_v19  ;;  %10344 = vmatprep.subr.bf16.mxu1 %v10337_v56 }
0x1fd9   : > { %v7136_v54 = vsel %vm7120_vm14, %v13427_v45, %v7128_v24  ;;  %10338 = vmatprep.subr.bf16.mxu0 %v10337_v56  ;;  %10348 = vmatpush3.bf16.msra.mxu1 %v10337_v56 }
0x1fda   : > { %9686 = vmatprep.mubr.msk.f32.mxu0 %vm577_vm5, %v7136_v54 }
0x1fdb   : > { %9687 = vmatmul.mubr.msk.f32.gmra.mrb[158].mxu0 %vm577_vm5, %v7137_v20 }
0x1fdc   : > { %10340 = vmatpush3.bf16.msra.mxu0 %v10337_v56 }
0x20a2   : > { %v9679_v18 = vpop.f32.mrb[152].mxu0 }
0x20a3   : > { %v7247_v38 = vadd.f32 %v9679_v18, %v7915_v34  ;;  %v7241_v42 = vpop.f32.mrb[153].mxu0 }
0x20a4   : > { %v7242_v55 = vadd.f32 %v7915_v34, %v7241_v42 }
0x20a5   : > { %v7281_v44 = vadd.f32 %v7247_v38, %v13386_v62 }
0x20a6   : > { %v7280_v57 = vadd.f32 %v7242_v55, %v13389_v43  ;;  %v9682_v37 = vpop.f32.mrb[154].mxu0 }
0x20a7   : > { %v7297_v52 = vmul.f32 0.2, %v7281_v44  ;;  %v7257_v53 = vadd.f32 %v9682_v37, %v7915_v34  ;;  %v7251_v58 = vpop.f32.mrb[155].mxu0  ;;  %vm7289_vm1 = vcmp.gt.f32.partialorder %v7281_v44, 0.0 }
0x20a8   : > { %v7296_v59 = vmul.f32 0.2, %v7280_v57  ;;  %v7252_v35 = vadd.f32 %v7915_v34, %v7251_v58  ;;  %vm7288_vm2 = vcmp.gt.f32.partialorder %v7280_v57, 0.0 }
0x20a9   : > { %v7283_v25 = vadd.f32 %v7257_v53, %v13396_v3  ;;  %v7305_v6 = vsel %vm7289_vm1, %v7281_v44, %v7297_v52 }
0x20aa   : > { %v7282_v1 = vadd.f32 %v7252_v35, %v13399_v14  ;;  %v9685_v0 = vpop.f32.mrb[156].mxu0  ;;  %v7304_v7 = vsel %vm7288_vm2, %v7280_v57, %v7296_v59 }
0x20ab   : > { %v7299_v47 = vmul.f32 0.2, %v7283_v25  ;;  %v7267_v60 = vadd.f32 %v9685_v0, %v7915_v34  ;;  %v7261_v40 = vpop.f32.mrb[157].mxu0  ;;  %9705 = vmatprep.mubr.msk.f32.mxu0 %vm577_vm5, %v7304_v7  ;;  %vm7291_vm3 = vcmp.gt.f32.partialorder %v7283_v25, 0.0 }
0x20ac   : > { %v7298_v50 = vmul.f32 0.2, %v7282_v1  ;;  %v7262_v62 = vadd.f32 %v7915_v34, %v7261_v40  ;;  %9706 = vmatmul.mubr.msk.f32.vlgmr.msra.gmra.mrb[160].mxu0 %vm577_vm5, %v7305_v6  ;;  %vm7290_vm0 = vcmp.gt.f32.partialorder %v7282_v1, 0.0 }
0x20ad   : > { %v7285_v43 = vadd.f32 %v7267_v60, %v13410_v26  ;;  %v7307_v2 = vsel %vm7291_vm3, %v7283_v25, %v7299_v47 }
0x20ae   : > { %v7284_v63 = vadd.f32 %v7262_v62, %v13413_v27  ;;  %v9688_v5 = vpop.f32.mrb[158].mxu0  ;;  %v7306_v46 = vsel %vm7290_vm0, %v7282_v1, %v7298_v50  ;;  %v7924_v27 = vld [vmem:[%s13496_s2 + $0x580] ss:$0 sm:$0xff] }
0x20af   : > { %v7301_v13 = vmul.f32 0.2, %v7285_v43  ;;  %v7277_v49 = vadd.f32 %v9688_v5, %v7915_v34  ;;  %v7271_v3 = vpop.f32.mrb[159].mxu0  ;;  %9708 = vmatprep.mubr.msk.f32.mxu1 %vm577_vm5, %v7306_v46  ;;  %vm7293_vm6 = vcmp.gt.f32.partialorder %v7285_v43, 0.0 }
0x20b0   : > { %v7300_v14 = vmul.f32 0.2, %v7284_v63  ;;  %v7272_v8 = vadd.f32 %v7915_v34, %v7271_v3  ;;  %9709 = vmatmul.mubr.msk.f32.vlgmr.msra.gmra.mrb[152].mxu1 %vm577_vm5, %v7307_v2  ;;  %vm7292_vm4 = vcmp.gt.f32.partialorder %v7284_v63, 0.0 }
0x20b1   : > { %v7287_v10 = vadd.f32 %v7277_v49, %v13424_v30  ;;  %v7309_v23 = vsel %vm7293_vm6, %v7285_v43, %v7301_v13 }
0x20b2   : > { %v7286_v11 = vadd.f32 %v7272_v8, %v13427_v45  ;;  %v7308_v12 = vsel %vm7292_vm4, %v7284_v63, %v7300_v14 }
0x20b3   : > { %v7303_v17 = vmul.f32 0.2, %v7287_v10  ;;  %9711 = vmatprep.mubr.msk.f32.mxu1 %vm577_vm5, %v7308_v12  ;;  %vm7295_vm8 = vcmp.gt.f32.partialorder %v7287_v10, 0.0 }
0x20b4   : > { %v7302_v16 = vmul.f32 0.2, %v7286_v11  ;;  %9712 = vmatmul.mubr.msk.f32.gmra.mrb[154].mxu1 %vm577_vm5, %v7309_v23  ;;  %vm7294_vm7 = vcmp.gt.f32.partialorder %v7286_v11, 0.0 }
0x20b5   : > { %v7311_v26 = vsel %vm7295_vm8, %v7287_v10, %v7303_v17 }
0x20b6   : > { %v7310_v9 = vsel %vm7294_vm7, %v7286_v11, %v7302_v16 }
0x20b7   : > { %9714 = vmatprep.mubr.msk.f32.mxu1 %vm577_vm5, %v7310_v9 }
0x20b8   : > { %9715 = vmatmul.mubr.msk.f32.gmra.mrb[156].mxu1 %vm577_vm5, %v7311_v26 }
0x217f   : > { %v9707_v61 = vpop.f32.mrb[160].mxu0 }
0x2180   : > { %v7421_v4 = vadd.f32 %v9707_v61, %v7924_v27  ;;  %v7415_v28 = vpop.f32.mrb[161].mxu0 }
0x2181   : > { %v7416_v29 = vadd.f32 %v7924_v27, %v7415_v28 }
0x2182   : > { %7455 = vst.msk [vmem:[%s12098_s22 + $0x48] sm:$0xff] %vm3823_vm11, %v7421_v4 }
0x2183   : > { %7454 = vst.msk [vmem:[%s12098_s22 + $0x40] sm:$0xff] %vm3823_vm11, %v7416_v29  ;;  %v9710_v32 = vpop.f32.mrb[152].mxu1 }
0x2184   : > { %v7431_v33 = vadd.f32 %v9710_v32, %v7924_v27  ;;  %v7425_v36 = vpop.f32.mrb[153].mxu1 }
0x2185   : > { %v7426_v39 = vadd.f32 %v7924_v27, %v7425_v36 }
0x2186   : > { %7457 = vst.msk [vmem:[%s12098_s22 + $0x58] sm:$0xff] %vm3823_vm11, %v7431_v33 }
0x2187   : > { %7456 = vst.msk [vmem:[%s12098_s22 + $0x50] sm:$0xff] %vm3823_vm11, %v7426_v39  ;;  %v9713_v30 = vpop.f32.mrb[154].mxu1 }
0x2188   : > { %v7441_v45 = vadd.f32 %v9713_v30, %v7924_v27  ;;  %v7435_v48 = vpop.f32.mrb[155].mxu1 }
0x2189   : > { %v7436_v15 = vadd.f32 %v7924_v27, %v7435_v48 }
0x218a   : > { %7459 = vst.msk [vmem:[%s12098_s22 + $0x68] sm:$0xff] %vm3823_vm11, %v7441_v45 }
0x218b   : > { %7458 = vst.msk [vmem:[%s12098_s22 + $0x60] sm:$0xff] %vm3823_vm11, %v7436_v15  ;;  %v9716_v51 = vpop.f32.mrb[156].mxu1 }
0x218c   : > { %v7451_v24 = vadd.f32 %v9716_v51, %v7924_v27  ;;  %v7445_v54 = vpop.f32.mrb[157].mxu1 }
0x218d   : > { %v7446_v20 = vadd.f32 %v7924_v27, %v7445_v54 }
0x218e   : > { %7461 = vst.msk [vmem:[%s12098_s22 + $0x78] sm:$0xff] %vm3823_vm11, %v7451_v24 }
0x218f   : > { %7460 = vst.msk [vmem:[%s12098_s22 + $0x70] sm:$0xff] %vm3823_vm11, %v7446_v20 }
0x2190 PF: > { %s13_s12 = sadd.s32 1, %s10383_s12  }
0x2191   : > { %p10_p4 = scmp.ge.s32.totalorder %s13_s12, 4  }
0x2193   :  { %12 = sbr.rel (!%p10_p4) target bundleno = 1 (0x1), region = 65 }

</bundles_post_ra>
